<compile_context>
chip_gen: v5e
topology: v5e:2x2
jax: 0.10.0
libtpu: 0.0.40
codegen_flags: <defaults>
</compile_context>

<pallas_src>
import functools

import jax
import jax.numpy as jnp
from jax import lax
from jax.experimental import pallas as pl
from jax.experimental.pallas import tpu as pltpu

# ----------------------------- hyper-params (from the reference) -------------
dropout = 0.2            # nn.Dropout -> identity at eval time
n_embed = 96
block_size = 64
n_heads = 3
head_size = n_embed // n_heads

DTYPE = jnp.float32
MXU_DTYPE = jnp.bfloat16   # MXU operand dtype; accumulation is always f32
HEAD_LANE = 128            # per-head lane block in the packed QKV weight
assert 3 * head_size <= HEAD_LANE


# ------------------------------- fused kernel --------------------------------
def _block_kernel(x_ref, ln1g_ref, ln1b_ref, wqkv_ref, projw_ref, projb_ref,
                  ln2g_ref, ln2b_ref, fc1w_ref, fc1b_ref, fc2w_ref, fc2b_ref,
                  o_ref, *, b_blk, seq, num_heads, hs):
    f32 = jnp.float32
    x = x_ref[...].astype(f32)                                   # (R, C), R = b_blk*seq
    T = seq

    # ---------------- ln1 (f32 VPU math) ----------------
    mu = jnp.mean(x, axis=-1, keepdims=True)
    var = jnp.mean((x - mu) ** 2, axis=-1, keepdims=True)
    xln = (x - mu) * lax.rsqrt(var + 1e-5) * ln1g_ref[...] + ln1b_ref[...]

    # ---------------- fused QKV: one (R,C)@(C,H*128) matmul ----------------
    # attention scale is pre-folded into the Q columns; single bf16 cast of result
    qkv = jnp.dot(xln.astype(MXU_DTYPE), wqkv_ref[...],
                  preferred_element_type=f32).astype(MXU_DTYPE)  # (R, H*128)

    # causal mask bias, built once, shared across all (batch, head) pairs
    row = lax.broadcasted_iota(jnp.int32, (T, T), 0)
    col = lax.broadcasted_iota(jnp.int32, (T, T), 1)
    mask_bias = jnp.where(col <= row, 0.0, -1e30).astype(f32)

    projw = projw_ref[...]                                       # (C, C) bf16, loaded once

    # ---------------- per-(batch, head) causal attention ----------------
    sa_parts = []
    for b in range(b_blk):                                       # static unroll
        r0 = b * T
        acc = None
        for h in range(num_heads):                               # static unroll
            c0 = h * HEAD_LANE                                   # head-aligned, no tile straddle
            q = qkv[r0:r0 + T, c0:c0 + hs]                       # scale already folded in
            k = qkv[r0:r0 + T, c0 + hs:c0 + 2 * hs]
            v = qkv[r0:r0 + T, c0 + 2 * hs:c0 + 3 * hs]
            wei = jnp.dot(q, k.T, preferred_element_type=f32) + mask_bias
            wei = wei - jnp.max(wei, axis=-1, keepdims=True)
            p = jnp.exp(wei)                                     # (T, T) f32, unnormalized
            denom = jnp.sum(p, axis=-1, keepdims=True)
            ho = jnp.dot(p.astype(MXU_DTYPE), v, preferred_element_type=f32)
            ho = ho * pl.reciprocal(denom, approx=True)          # normalize (T,hs), EUP slot
            # per-head projection accumulation (no lane-concat of heads)
            contrib = jnp.dot(ho.astype(MXU_DTYPE), projw[h * hs:(h + 1) * hs, :],
                              preferred_element_type=f32)        # (T, C)
            acc = contrib if acc is None else acc + contrib
        sa_parts.append(acc)
    sa = sa_parts[0] if b_blk == 1 else jnp.concatenate(sa_parts, axis=0)  # (R, C), sublane concat

    # ---------------- output projection bias + residual ----------------
    x1 = x + sa + projb_ref[...]                                 # dropout -> identity

    # ---------------- ln2 ----------------
    mu2 = jnp.mean(x1, axis=-1, keepdims=True)
    var2 = jnp.mean((x1 - mu2) ** 2, axis=-1, keepdims=True)
    xln2 = (x1 - mu2) * lax.rsqrt(var2 + 1e-5) * ln2g_ref[...] + ln2b_ref[...]

    # ---------------- feed-forward + residual ----------------
    h1 = jnp.dot(xln2.astype(MXU_DTYPE), fc1w_ref[...],
                 preferred_element_type=f32) + fc1b_ref[...]
    h1 = jnp.maximum(h1, 0.0)                                    # ReLU
    ffn = jnp.dot(h1.astype(MXU_DTYPE), fc2w_ref[...],
                  preferred_element_type=f32) + fc2b_ref[...]

    o_ref[...] = (x1 + ffn).astype(o_ref.dtype)                  # dropout -> identity


# ------------------------------- one-time weight packing ----------------------
def pack_params(p):
    """One-time packing of raw params into kernel-ready arrays (call at init)."""
    C, H, hs = n_embed, n_heads, head_size
    scale = float(C) ** -0.5            # reference scales by n_embed (C), not head_size
    blocks = []
    for h in range(H):
        blk = jnp.zeros((C, HEAD_LANE), jnp.float32)
        blk = blk.at[:, 0:hs].set(p["wq"][h] * scale)            # fold scale into Q weight
        blk = blk.at[:, hs:2 * hs].set(p["wk"][h])
        blk = blk.at[:, 2 * hs:3 * hs].set(p["wv"][h])
        blocks.append(blk)
    wqkv = jnp.concatenate(blocks, axis=-1).astype(MXU_DTYPE)    # (C, H*128), head-major padded
    return {
        "wqkv": wqkv,
        "proj_w": p["proj_w"].astype(MXU_DTYPE),
        "proj_b": p["proj_b"].reshape(1, C).astype(jnp.float32),
        "ln1_g": p["ln1_g"].reshape(1, C).astype(jnp.float32),
        "ln1_b": p["ln1_b"].reshape(1, C).astype(jnp.float32),
        "ln2_g": p["ln2_g"].reshape(1, C).astype(jnp.float32),
        "ln2_b": p["ln2_b"].reshape(1, C).astype(jnp.float32),
        "fc1_w": p["fc1_w"].astype(MXU_DTYPE),
        "fc1_b": p["fc1_b"].reshape(1, 4 * C).astype(jnp.float32),
        "fc2_w": p["fc2_w"].astype(MXU_DTYPE),
        "fc2_b": p["fc2_b"].reshape(1, C).astype(jnp.float32),
    }


def _pick_batch_block(B, T):
    """Largest divisor of B whose row count (B_blk*T) stays <= 512 (targets M>=128)."""
    best = 1
    for cand in range(1, B + 1):
        if B % cand == 0 and cand * T <= 512:
            best = cand
    return best


# ------------------------------- wrapper (jitted) ------------------------------
def _block_forward_impl(x, pp):
    B, T, C = x.shape
    H, hs = n_heads, head_size

    b_blk = _pick_batch_block(B, T)
    R = b_blk * T                                   # rows per grid step
    grid = (B // b_blk,)

    x2 = x.reshape(B * T, C)                        # flatten batch*seq -> matmul M dim

    kern = functools.partial(_block_kernel, b_blk=b_blk, seq=T, num_heads=H, hs=hs)
    vmem = pl.BlockSpec(memory_space=pltpu.MemorySpace.VMEM)     # resident, non-pipelined

    out2 = pl.pallas_call(
        kern,
        out_shape=jax.ShapeDtypeStruct((B * T, C), x.dtype),
        grid=grid,
        in_specs=[
            pl.BlockSpec((R, C), lambda i: (i, 0)),              # x rows (per batch block)
            vmem, vmem,                                          # ln1 gamma/beta
            vmem,                                                # packed QKV weight
            vmem, vmem,                                          # proj w/b
            vmem, vmem,                                          # ln2 gamma/beta
            vmem, vmem,                                          # fc1 w/b
            vmem, vmem,                                          # fc2 w/b
        ],
        out_specs=pl.BlockSpec((R, C), lambda i: (i, 0)),
        compiler_params=pltpu.CompilerParams(
            dimension_semantics=("parallel",)),                  # shards steps across TCs (v7x)
    )(x2,
      pp["ln1_g"], pp["ln1_b"],
      pp["wqkv"],
      pp["proj_w"], pp["proj_b"],
      pp["ln2_g"], pp["ln2_b"],
      pp["fc1_w"], pp["fc1_b"],
      pp["fc2_w"], pp["fc2_b"])
    return out2.reshape(B, T, C)


block_forward = jax.jit(_block_forward_impl)


# ------------------------------ params / reference ----------------------------
def init_params(key):
    def normal(k, shape, std=0.02):
        return (std * jax.random.normal(k, shape)).astype(DTYPE)

    ks = iter(jax.random.split(key, 8))
    C = n_embed
    return {
        "wq": normal(next(ks), (n_heads, C, head_size)),
        "wk": normal(next(ks), (n_heads, C, head_size)),
        "wv": normal(next(ks), (n_heads, C, head_size)),
        "proj_w": normal(next(ks), (C, C)),
        "proj_b": jnp.zeros((C,), DTYPE),
        "fc1_w": normal(next(ks), (C, 4 * C)),
        "fc1_b": jnp.zeros((4 * C,), DTYPE),
        "fc2_w": normal(next(ks), (4 * C, C)),
        "fc2_b": jnp.zeros((C,), DTYPE),
        "ln1_g": jnp.ones((C,), DTYPE),
        "ln1_b": jnp.zeros((C,), DTYPE),
        "ln2_g": jnp.ones((C,), DTYPE),
        "ln2_b": jnp.zeros((C,), DTYPE),
    }


def block_ref(x, p):
    """Pure-JAX f32 reference matching the PyTorch Block (eval mode)."""
    def ln(v, g, b):
        mu = jnp.mean(v, -1, keepdims=True)
        var = jnp.mean((v - mu) ** 2, -1, keepdims=True)
        return (v - mu) * lax.rsqrt(var + 1e-5) * g + b

    B, T, C = x.shape
    xln = ln(x, p["ln1_g"], p["ln1_b"])
    tril = jnp.tril(jnp.ones((T, T), bool))
    heads = []
    for h in range(n_heads):
        q = xln @ p["wq"][h]
        k = xln @ p["wk"][h]
        v = xln @ p["wv"][h]
        wei = (q @ jnp.swapaxes(k, -1, -2)) * (float(C) ** -0.5)
        wei = jnp.where(tril, wei, -jnp.inf)
        wei = jax.nn.softmax(wei, axis=-1)
        heads.append(wei @ v)
    sa = jnp.concatenate(heads, -1) @ p["proj_w"] + p["proj_b"]
    x = x + sa
    xln2 = ln(x, p["ln2_g"], p["ln2_b"])
    h1 = jnp.maximum(xln2 @ p["fc1_w"] + p["fc1_b"], 0.0)
    return x + h1 @ p["fc2_w"] + p["fc2_b"]


# ------------------------------------ main -------------------------------------
if __name__ == "__main__":
    key = jax.random.PRNGKey(0)
    pkey, xkey = jax.random.split(key)
    params = init_params(pkey)
    packed = pack_params(params)                # one-time packing, outside the call path

    B, T, C = 2, block_size, n_embed            # (2, 64, 96)
    x = jax.random.normal(xkey, (B, T, C), DTYPE)

    out = block_forward(x, packed)
    jax.block_until_ready(out)

    assert out.shape == (B, T, C)
    assert out.dtype == DTYPE
    assert bool(jnp.all(jnp.isfinite(out)))

    # loose tolerance: kernel uses bf16 MXU operands + approx reciprocal
    ref = block_ref(x, params)
    max_err = float(jnp.max(jnp.abs(out - ref)))
    assert max_err < 5e-2, f"max |kernel - ref| = {max_err}"

    print("KERNEL_OK")
</pallas_src>

<mosaic_0001>
module attributes {stable_mosaic.version = 11 : i64} {
  func.func @_block_kernel(%arg0: i32, %arg1: memref<128x96xf32, #tpu.memory_space<vmem>>, %arg2: memref<1x96xf32, #tpu.memory_space<vmem>>, %arg3: memref<1x96xf32, #tpu.memory_space<vmem>>, %arg4: memref<96x384xbf16, #tpu.memory_space<vmem>>, %arg5: memref<96x96xbf16, #tpu.memory_space<vmem>>, %arg6: memref<1x96xf32, #tpu.memory_space<vmem>>, %arg7: memref<1x96xf32, #tpu.memory_space<vmem>>, %arg8: memref<1x96xf32, #tpu.memory_space<vmem>>, %arg9: memref<96x384xbf16, #tpu.memory_space<vmem>>, %arg10: memref<1x384xf32, #tpu.memory_space<vmem>>, %arg11: memref<384x96xbf16, #tpu.memory_space<vmem>>, %arg12: memref<1x96xf32, #tpu.memory_space<vmem>>, %arg13: memref<128x96xf32, #tpu.memory_space<vmem>>) attributes {dimension_semantics = [#tpu.dimension_semantics<parallel>], iteration_bounds = array<i64: 1>, scalar_prefetch = 0 : i64, scratch_operands = 0 : i64, tpu.core_type = #tpu.core_type<tc>, window_params = [{transform_indices = @transform_0, window_bounds = array<i64: 128, 96>}, {pipeline_mode = #tpu.pipeline_mode<synchronous>, transform_indices = @transform_1, window_bounds = array<i64: 1, 96>}, {pipeline_mode = #tpu.pipeline_mode<synchronous>, transform_indices = @transform_2, window_bounds = array<i64: 1, 96>}, {pipeline_mode = #tpu.pipeline_mode<synchronous>, transform_indices = @transform_3, window_bounds = array<i64: 96, 384>}, {pipeline_mode = #tpu.pipeline_mode<synchronous>, transform_indices = @transform_4, window_bounds = array<i64: 96, 96>}, {pipeline_mode = #tpu.pipeline_mode<synchronous>, transform_indices = @transform_5, window_bounds = array<i64: 1, 96>}, {pipeline_mode = #tpu.pipeline_mode<synchronous>, transform_indices = @transform_6, window_bounds = array<i64: 1, 96>}, {pipeline_mode = #tpu.pipeline_mode<synchronous>, transform_indices = @transform_7, window_bounds = array<i64: 1, 96>}, {pipeline_mode = #tpu.pipeline_mode<synchronous>, transform_indices = @transform_8, window_bounds = array<i64: 96, 384>}, {pipeline_mode = #tpu.pipeline_mode<synchronous>, transform_indices = @transform_9, window_bounds = array<i64: 1, 384>}, {pipeline_mode = #tpu.pipeline_mode<synchronous>, transform_indices = @transform_10, window_bounds = array<i64: 384, 96>}, {pipeline_mode = #tpu.pipeline_mode<synchronous>, transform_indices = @transform_11, window_bounds = array<i64: 1, 96>}, {transform_indices = @transform_12, window_bounds = array<i64: 128, 96>}]} {
    %c0 = arith.constant 0 : index
    %c0_0 = arith.constant 0 : index
    %0 = vector.load %arg1[%c0, %c0_0] : memref<128x96xf32, #tpu.memory_space<vmem>>, vector<128x96xf32>
    %cst = arith.constant dense<0.000000e+00> : vector<128xf32>
    %1 = vector.multi_reduction <add>, %0, %cst [1] : vector<128x96xf32> to vector<128xf32>
    %2 = vector.shape_cast %1 : vector<128xf32> to vector<128x1xf32>
    %cst_1 = arith.constant 9.600000e+01 : f32
    %3 = vector.broadcast %cst_1 : f32 to vector<128x1xf32>
    %4 = arith.divf %2, %3 : vector<128x1xf32>
    %5 = vector.broadcast %4 : vector<128x1xf32> to vector<128x96xf32>
    %6 = arith.subf %0, %5 : vector<128x96xf32>
    %7 = arith.mulf %6, %6 : vector<128x96xf32>
    %cst_2 = arith.constant dense<0.000000e+00> : vector<128xf32>
    %8 = vector.multi_reduction <add>, %7, %cst_2 [1] : vector<128x96xf32> to vector<128xf32>
    %9 = vector.shape_cast %8 : vector<128xf32> to vector<128x1xf32>
    %cst_3 = arith.constant 9.600000e+01 : f32
    %10 = vector.broadcast %cst_3 : f32 to vector<128x1xf32>
    %11 = arith.divf %9, %10 : vector<128x1xf32>
    %12 = vector.broadcast %4 : vector<128x1xf32> to vector<128x96xf32>
    %13 = arith.subf %0, %12 : vector<128x96xf32>
    %cst_4 = arith.constant 9.99999974E-6 : f32
    %14 = vector.broadcast %cst_4 : f32 to vector<128x1xf32>
    %15 = arith.addf %11, %14 : vector<128x1xf32>
    %16 = math.rsqrt %15 : vector<128x1xf32>
    %17 = vector.broadcast %16 : vector<128x1xf32> to vector<128x96xf32>
    %18 = arith.mulf %13, %17 : vector<128x96xf32>
    %c0_5 = arith.constant 0 : index
    %c0_6 = arith.constant 0 : index
    %19 = vector.load %arg2[%c0_5, %c0_6] : memref<1x96xf32, #tpu.memory_space<vmem>>, vector<1x96xf32>
    %20 = vector.broadcast %19 : vector<1x96xf32> to vector<128x96xf32>
    %21 = arith.mulf %18, %20 : vector<128x96xf32>
    %c0_7 = arith.constant 0 : index
    %c0_8 = arith.constant 0 : index
    %22 = vector.load %arg3[%c0_7, %c0_8] : memref<1x96xf32, #tpu.memory_space<vmem>>, vector<1x96xf32>
    %23 = vector.broadcast %22 : vector<1x96xf32> to vector<128x96xf32>
    %24 = arith.addf %21, %23 : vector<128x96xf32>
    %25 = arith.truncf %24 : vector<128x96xf32> to vector<128x96xbf16>
    %c0_9 = arith.constant 0 : index
    %c0_10 = arith.constant 0 : index
    %26 = vector.load %arg4[%c0_9, %c0_10] : memref<96x384xbf16, #tpu.memory_space<vmem>>, vector<96x384xbf16>
    %cst_11 = arith.constant dense<0.000000e+00> : vector<128x384xf32>
    %27 = tpu.matmul %25, %26, %cst_11 {dimension_numbers = #tpu.dot_dimension_numbers<[1], [0], [0], [1], [0, 0, 1, 1], [], []>} : vector<128x96xbf16>, vector<96x384xbf16>, vector<128x384xf32> -> vector<128x384xf32>
    %28 = arith.truncf %27 : vector<128x384xf32> to vector<128x384xbf16>
    %29 = tpu.iota {dimensions = array<i32: 0>} : vector<64x64xi32>
    %30 = tpu.iota {dimensions = array<i32: 1>} : vector<64x64xi32>
    %31 = arith.cmpi sle, %30, %29 : vector<64x64xi32>
    %cst_12 = arith.constant 0.000000e+00 : f32
    %cst_13 = arith.constant -1.000000e+30 : f32
    %32 = vector.broadcast %cst_12 : f32 to vector<64x64xf32>
    %33 = vector.broadcast %cst_13 : f32 to vector<64x64xf32>
    %34 = arith.select %31, %32, %33 : vector<64x64xi1>, vector<64x64xf32>
    %c0_14 = arith.constant 0 : index
    %c0_15 = arith.constant 0 : index
    %35 = vector.load %arg5[%c0_14, %c0_15] : memref<96x96xbf16, #tpu.memory_space<vmem>>, vector<96x96xbf16>
    %36 = vector.extract_strided_slice %28 {offsets = [0, 0], sizes = [64, 32], strides = [1, 1]} : vector<128x384xbf16> to vector<64x32xbf16>
    %37 = vector.extract_strided_slice %28 {offsets = [0, 32], sizes = [64, 32], strides = [1, 1]} : vector<128x384xbf16> to vector<64x32xbf16>
    %38 = vector.extract_strided_slice %28 {offsets = [0, 64], sizes = [64, 32], strides = [1, 1]} : vector<128x384xbf16> to vector<64x32xbf16>
    %39 = tpu.transpose %37, [1, 0] : vector<64x32xbf16> -> vector<32x64xbf16>
    %cst_16 = arith.constant dense<0.000000e+00> : vector<64x64xf32>
    %40 = tpu.matmul %36, %39, %cst_16 {dimension_numbers = #tpu.dot_dimension_numbers<[1], [0], [0], [1], [0, 0, 1, 1], [], []>} : vector<64x32xbf16>, vector<32x64xbf16>, vector<64x64xf32> -> vector<64x64xf32>
    %41 = arith.addf %40, %34 : vector<64x64xf32>
    %cst_17 = arith.constant dense<0xFF800000> : vector<64xf32>
    %42 = vector.multi_reduction <maximumf>, %41, %cst_17 [1] : vector<64x64xf32> to vector<64xf32>
    %43 = vector.shape_cast %42 : vector<64xf32> to vector<64x1xf32>
    %44 = vector.broadcast %43 : vector<64x1xf32> to vector<64x64xf32>
    %45 = arith.subf %41, %44 : vector<64x64xf32>
    %46 = math.exp %45 : vector<64x64xf32>
    %cst_18 = arith.constant dense<0.000000e+00> : vector<64xf32>
    %47 = vector.multi_reduction <add>, %46, %cst_18 [1] : vector<64x64xf32> to vector<64xf32>
    %48 = vector.shape_cast %47 : vector<64xf32> to vector<64x1xf32>
    %49 = arith.truncf %46 : vector<64x64xf32> to vector<64x64xbf16>
    %cst_19 = arith.constant dense<0.000000e+00> : vector<64x32xf32>
    %50 = tpu.matmul %49, %38, %cst_19 {dimension_numbers = #tpu.dot_dimension_numbers<[1], [0], [0], [1], [0, 0, 1, 1], [], []>} : vector<64x64xbf16>, vector<64x32xbf16>, vector<64x32xf32> -> vector<64x32xf32>
    %51 = tpu.reciprocal %48 {approx = true} : vector<64x1xf32> -> vector<64x1xf32>
    %52 = vector.broadcast %51 : vector<64x1xf32> to vector<64x32xf32>
    %53 = arith.mulf %50, %52 : vector<64x32xf32>
    %54 = arith.truncf %53 : vector<64x32xf32> to vector<64x32xbf16>
    %55 = vector.extract_strided_slice %35 {offsets = [0, 0], sizes = [32, 96], strides = [1, 1]} : vector<96x96xbf16> to vector<32x96xbf16>
    %cst_20 = arith.constant dense<0.000000e+00> : vector<64x96xf32>
    %56 = tpu.matmul %54, %55, %cst_20 {dimension_numbers = #tpu.dot_dimension_numbers<[1], [0], [0], [1], [0, 0, 1, 1], [], []>} : vector<64x32xbf16>, vector<32x96xbf16>, vector<64x96xf32> -> vector<64x96xf32>
    %57 = vector.extract_strided_slice %28 {offsets = [0, 128], sizes = [64, 32], strides = [1, 1]} : vector<128x384xbf16> to vector<64x32xbf16>
    %58 = vector.extract_strided_slice %28 {offsets = [0, 160], sizes = [64, 32], strides = [1, 1]} : vector<128x384xbf16> to vector<64x32xbf16>
    %59 = vector.extract_strided_slice %28 {offsets = [0, 192], sizes = [64, 32], strides = [1, 1]} : vector<128x384xbf16> to vector<64x32xbf16>
    %60 = tpu.transpose %58, [1, 0] : vector<64x32xbf16> -> vector<32x64xbf16>
    %cst_21 = arith.constant dense<0.000000e+00> : vector<64x64xf32>
    %61 = tpu.matmul %57, %60, %cst_21 {dimension_numbers = #tpu.dot_dimension_numbers<[1], [0], [0], [1], [0, 0, 1, 1], [], []>} : vector<64x32xbf16>, vector<32x64xbf16>, vector<64x64xf32> -> vector<64x64xf32>
    %62 = arith.addf %61, %34 : vector<64x64xf32>
    %cst_22 = arith.constant dense<0xFF800000> : vector<64xf32>
    %63 = vector.multi_reduction <maximumf>, %62, %cst_22 [1] : vector<64x64xf32> to vector<64xf32>
    %64 = vector.shape_cast %63 : vector<64xf32> to vector<64x1xf32>
    %65 = vector.broadcast %64 : vector<64x1xf32> to vector<64x64xf32>
    %66 = arith.subf %62, %65 : vector<64x64xf32>
    %67 = math.exp %66 : vector<64x64xf32>
    %cst_23 = arith.constant dense<0.000000e+00> : vector<64xf32>
    %68 = vector.multi_reduction <add>, %67, %cst_23 [1] : vector<64x64xf32> to vector<64xf32>
    %69 = vector.shape_cast %68 : vector<64xf32> to vector<64x1xf32>
    %70 = arith.truncf %67 : vector<64x64xf32> to vector<64x64xbf16>
    %cst_24 = arith.constant dense<0.000000e+00> : vector<64x32xf32>
    %71 = tpu.matmul %70, %59, %cst_24 {dimension_numbers = #tpu.dot_dimension_numbers<[1], [0], [0], [1], [0, 0, 1, 1], [], []>} : vector<64x64xbf16>, vector<64x32xbf16>, vector<64x32xf32> -> vector<64x32xf32>
    %72 = tpu.reciprocal %69 {approx = true} : vector<64x1xf32> -> vector<64x1xf32>
    %73 = vector.broadcast %72 : vector<64x1xf32> to vector<64x32xf32>
    %74 = arith.mulf %71, %73 : vector<64x32xf32>
    %75 = arith.truncf %74 : vector<64x32xf32> to vector<64x32xbf16>
    %76 = vector.extract_strided_slice %35 {offsets = [32, 0], sizes = [32, 96], strides = [1, 1]} : vector<96x96xbf16> to vector<32x96xbf16>
    %cst_25 = arith.constant dense<0.000000e+00> : vector<64x96xf32>
    %77 = tpu.matmul %75, %76, %cst_25 {dimension_numbers = #tpu.dot_dimension_numbers<[1], [0], [0], [1], [0, 0, 1, 1], [], []>} : vector<64x32xbf16>, vector<32x96xbf16>, vector<64x96xf32> -> vector<64x96xf32>
    %78 = arith.addf %56, %77 : vector<64x96xf32>
    %79 = vector.extract_strided_slice %28 {offsets = [0, 256], sizes = [64, 32], strides = [1, 1]} : vector<128x384xbf16> to vector<64x32xbf16>
    %80 = vector.extract_strided_slice %28 {offsets = [0, 288], sizes = [64, 32], strides = [1, 1]} : vector<128x384xbf16> to vector<64x32xbf16>
    %81 = vector.extract_strided_slice %28 {offsets = [0, 320], sizes = [64, 32], strides = [1, 1]} : vector<128x384xbf16> to vector<64x32xbf16>
    %82 = tpu.transpose %80, [1, 0] : vector<64x32xbf16> -> vector<32x64xbf16>
    %cst_26 = arith.constant dense<0.000000e+00> : vector<64x64xf32>
    %83 = tpu.matmul %79, %82, %cst_26 {dimension_numbers = #tpu.dot_dimension_numbers<[1], [0], [0], [1], [0, 0, 1, 1], [], []>} : vector<64x32xbf16>, vector<32x64xbf16>, vector<64x64xf32> -> vector<64x64xf32>
    %84 = arith.addf %83, %34 : vector<64x64xf32>
    %cst_27 = arith.constant dense<0xFF800000> : vector<64xf32>
    %85 = vector.multi_reduction <maximumf>, %84, %cst_27 [1] : vector<64x64xf32> to vector<64xf32>
    %86 = vector.shape_cast %85 : vector<64xf32> to vector<64x1xf32>
    %87 = vector.broadcast %86 : vector<64x1xf32> to vector<64x64xf32>
    %88 = arith.subf %84, %87 : vector<64x64xf32>
    %89 = math.exp %88 : vector<64x64xf32>
    %cst_28 = arith.constant dense<0.000000e+00> : vector<64xf32>
    %90 = vector.multi_reduction <add>, %89, %cst_28 [1] : vector<64x64xf32> to vector<64xf32>
    %91 = vector.shape_cast %90 : vector<64xf32> to vector<64x1xf32>
    %92 = arith.truncf %89 : vector<64x64xf32> to vector<64x64xbf16>
    %cst_29 = arith.constant dense<0.000000e+00> : vector<64x32xf32>
    %93 = tpu.matmul %92, %81, %cst_29 {dimension_numbers = #tpu.dot_dimension_numbers<[1], [0], [0], [1], [0, 0, 1, 1], [], []>} : vector<64x64xbf16>, vector<64x32xbf16>, vector<64x32xf32> -> vector<64x32xf32>
    %94 = tpu.reciprocal %91 {approx = true} : vector<64x1xf32> -> vector<64x1xf32>
    %95 = vector.broadcast %94 : vector<64x1xf32> to vector<64x32xf32>
    %96 = arith.mulf %93, %95 : vector<64x32xf32>
    %97 = arith.truncf %96 : vector<64x32xf32> to vector<64x32xbf16>
    %98 = vector.extract_strided_slice %35 {offsets = [64, 0], sizes = [32, 96], strides = [1, 1]} : vector<96x96xbf16> to vector<32x96xbf16>
    %cst_30 = arith.constant dense<0.000000e+00> : vector<64x96xf32>
    %99 = tpu.matmul %97, %98, %cst_30 {dimension_numbers = #tpu.dot_dimension_numbers<[1], [0], [0], [1], [0, 0, 1, 1], [], []>} : vector<64x32xbf16>, vector<32x96xbf16>, vector<64x96xf32> -> vector<64x96xf32>
    %100 = arith.addf %78, %99 : vector<64x96xf32>
    %101 = vector.extract_strided_slice %28 {offsets = [64, 0], sizes = [64, 32], strides = [1, 1]} : vector<128x384xbf16> to vector<64x32xbf16>
    %102 = vector.extract_strided_slice %28 {offsets = [64, 32], sizes = [64, 32], strides = [1, 1]} : vector<128x384xbf16> to vector<64x32xbf16>
    %103 = vector.extract_strided_slice %28 {offsets = [64, 64], sizes = [64, 32], strides = [1, 1]} : vector<128x384xbf16> to vector<64x32xbf16>
    %104 = tpu.transpose %102, [1, 0] : vector<64x32xbf16> -> vector<32x64xbf16>
    %cst_31 = arith.constant dense<0.000000e+00> : vector<64x64xf32>
    %105 = tpu.matmul %101, %104, %cst_31 {dimension_numbers = #tpu.dot_dimension_numbers<[1], [0], [0], [1], [0, 0, 1, 1], [], []>} : vector<64x32xbf16>, vector<32x64xbf16>, vector<64x64xf32> -> vector<64x64xf32>
    %106 = arith.addf %105, %34 : vector<64x64xf32>
    %cst_32 = arith.constant dense<0xFF800000> : vector<64xf32>
    %107 = vector.multi_reduction <maximumf>, %106, %cst_32 [1] : vector<64x64xf32> to vector<64xf32>
    %108 = vector.shape_cast %107 : vector<64xf32> to vector<64x1xf32>
    %109 = vector.broadcast %108 : vector<64x1xf32> to vector<64x64xf32>
    %110 = arith.subf %106, %109 : vector<64x64xf32>
    %111 = math.exp %110 : vector<64x64xf32>
    %cst_33 = arith.constant dense<0.000000e+00> : vector<64xf32>
    %112 = vector.multi_reduction <add>, %111, %cst_33 [1] : vector<64x64xf32> to vector<64xf32>
    %113 = vector.shape_cast %112 : vector<64xf32> to vector<64x1xf32>
    %114 = arith.truncf %111 : vector<64x64xf32> to vector<64x64xbf16>
    %cst_34 = arith.constant dense<0.000000e+00> : vector<64x32xf32>
    %115 = tpu.matmul %114, %103, %cst_34 {dimension_numbers = #tpu.dot_dimension_numbers<[1], [0], [0], [1], [0, 0, 1, 1], [], []>} : vector<64x64xbf16>, vector<64x32xbf16>, vector<64x32xf32> -> vector<64x32xf32>
    %116 = tpu.reciprocal %113 {approx = true} : vector<64x1xf32> -> vector<64x1xf32>
    %117 = vector.broadcast %116 : vector<64x1xf32> to vector<64x32xf32>
    %118 = arith.mulf %115, %117 : vector<64x32xf32>
    %119 = arith.truncf %118 : vector<64x32xf32> to vector<64x32xbf16>
    %120 = vector.extract_strided_slice %35 {offsets = [0, 0], sizes = [32, 96], strides = [1, 1]} : vector<96x96xbf16> to vector<32x96xbf16>
    %cst_35 = arith.constant dense<0.000000e+00> : vector<64x96xf32>
    %121 = tpu.matmul %119, %120, %cst_35 {dimension_numbers = #tpu.dot_dimension_numbers<[1], [0], [0], [1], [0, 0, 1, 1], [], []>} : vector<64x32xbf16>, vector<32x96xbf16>, vector<64x96xf32> -> vector<64x96xf32>
    %122 = vector.extract_strided_slice %28 {offsets = [64, 128], sizes = [64, 32], strides = [1, 1]} : vector<128x384xbf16> to vector<64x32xbf16>
    %123 = vector.extract_strided_slice %28 {offsets = [64, 160], sizes = [64, 32], strides = [1, 1]} : vector<128x384xbf16> to vector<64x32xbf16>
    %124 = vector.extract_strided_slice %28 {offsets = [64, 192], sizes = [64, 32], strides = [1, 1]} : vector<128x384xbf16> to vector<64x32xbf16>
    %125 = tpu.transpose %123, [1, 0] : vector<64x32xbf16> -> vector<32x64xbf16>
    %cst_36 = arith.constant dense<0.000000e+00> : vector<64x64xf32>
    %126 = tpu.matmul %122, %125, %cst_36 {dimension_numbers = #tpu.dot_dimension_numbers<[1], [0], [0], [1], [0, 0, 1, 1], [], []>} : vector<64x32xbf16>, vector<32x64xbf16>, vector<64x64xf32> -> vector<64x64xf32>
    %127 = arith.addf %126, %34 : vector<64x64xf32>
    %cst_37 = arith.constant dense<0xFF800000> : vector<64xf32>
    %128 = vector.multi_reduction <maximumf>, %127, %cst_37 [1] : vector<64x64xf32> to vector<64xf32>
    %129 = vector.shape_cast %128 : vector<64xf32> to vector<64x1xf32>
    %130 = vector.broadcast %129 : vector<64x1xf32> to vector<64x64xf32>
    %131 = arith.subf %127, %130 : vector<64x64xf32>
    %132 = math.exp %131 : vector<64x64xf32>
    %cst_38 = arith.constant dense<0.000000e+00> : vector<64xf32>
    %133 = vector.multi_reduction <add>, %132, %cst_38 [1] : vector<64x64xf32> to vector<64xf32>
    %134 = vector.shape_cast %133 : vector<64xf32> to vector<64x1xf32>
    %135 = arith.truncf %132 : vector<64x64xf32> to vector<64x64xbf16>
    %cst_39 = arith.constant dense<0.000000e+00> : vector<64x32xf32>
    %136 = tpu.matmul %135, %124, %cst_39 {dimension_numbers = #tpu.dot_dimension_numbers<[1], [0], [0], [1], [0, 0, 1, 1], [], []>} : vector<64x64xbf16>, vector<64x32xbf16>, vector<64x32xf32> -> vector<64x32xf32>
    %137 = tpu.reciprocal %134 {approx = true} : vector<64x1xf32> -> vector<64x1xf32>
    %138 = vector.broadcast %137 : vector<64x1xf32> to vector<64x32xf32>
    %139 = arith.mulf %136, %138 : vector<64x32xf32>
    %140 = arith.truncf %139 : vector<64x32xf32> to vector<64x32xbf16>
    %141 = vector.extract_strided_slice %35 {offsets = [32, 0], sizes = [32, 96], strides = [1, 1]} : vector<96x96xbf16> to vector<32x96xbf16>
    %cst_40 = arith.constant dense<0.000000e+00> : vector<64x96xf32>
    %142 = tpu.matmul %140, %141, %cst_40 {dimension_numbers = #tpu.dot_dimension_numbers<[1], [0], [0], [1], [0, 0, 1, 1], [], []>} : vector<64x32xbf16>, vector<32x96xbf16>, vector<64x96xf32> -> vector<64x96xf32>
    %143 = arith.addf %121, %142 : vector<64x96xf32>
    %144 = vector.extract_strided_slice %28 {offsets = [64, 256], sizes = [64, 32], strides = [1, 1]} : vector<128x384xbf16> to vector<64x32xbf16>
    %145 = vector.extract_strided_slice %28 {offsets = [64, 288], sizes = [64, 32], strides = [1, 1]} : vector<128x384xbf16> to vector<64x32xbf16>
    %146 = vector.extract_strided_slice %28 {offsets = [64, 320], sizes = [64, 32], strides = [1, 1]} : vector<128x384xbf16> to vector<64x32xbf16>
    %147 = tpu.transpose %145, [1, 0] : vector<64x32xbf16> -> vector<32x64xbf16>
    %cst_41 = arith.constant dense<0.000000e+00> : vector<64x64xf32>
    %148 = tpu.matmul %144, %147, %cst_41 {dimension_numbers = #tpu.dot_dimension_numbers<[1], [0], [0], [1], [0, 0, 1, 1], [], []>} : vector<64x32xbf16>, vector<32x64xbf16>, vector<64x64xf32> -> vector<64x64xf32>
    %149 = arith.addf %148, %34 : vector<64x64xf32>
    %cst_42 = arith.constant dense<0xFF800000> : vector<64xf32>
    %150 = vector.multi_reduction <maximumf>, %149, %cst_42 [1] : vector<64x64xf32> to vector<64xf32>
    %151 = vector.shape_cast %150 : vector<64xf32> to vector<64x1xf32>
    %152 = vector.broadcast %151 : vector<64x1xf32> to vector<64x64xf32>
    %153 = arith.subf %149, %152 : vector<64x64xf32>
    %154 = math.exp %153 : vector<64x64xf32>
    %cst_43 = arith.constant dense<0.000000e+00> : vector<64xf32>
    %155 = vector.multi_reduction <add>, %154, %cst_43 [1] : vector<64x64xf32> to vector<64xf32>
    %156 = vector.shape_cast %155 : vector<64xf32> to vector<64x1xf32>
    %157 = arith.truncf %154 : vector<64x64xf32> to vector<64x64xbf16>
    %cst_44 = arith.constant dense<0.000000e+00> : vector<64x32xf32>
    %158 = tpu.matmul %157, %146, %cst_44 {dimension_numbers = #tpu.dot_dimension_numbers<[1], [0], [0], [1], [0, 0, 1, 1], [], []>} : vector<64x64xbf16>, vector<64x32xbf16>, vector<64x32xf32> -> vector<64x32xf32>
    %159 = tpu.reciprocal %156 {approx = true} : vector<64x1xf32> -> vector<64x1xf32>
    %160 = vector.broadcast %159 : vector<64x1xf32> to vector<64x32xf32>
    %161 = arith.mulf %158, %160 : vector<64x32xf32>
    %162 = arith.truncf %161 : vector<64x32xf32> to vector<64x32xbf16>
    %163 = vector.extract_strided_slice %35 {offsets = [64, 0], sizes = [32, 96], strides = [1, 1]} : vector<96x96xbf16> to vector<32x96xbf16>
    %cst_45 = arith.constant dense<0.000000e+00> : vector<64x96xf32>
    %164 = tpu.matmul %162, %163, %cst_45 {dimension_numbers = #tpu.dot_dimension_numbers<[1], [0], [0], [1], [0, 0, 1, 1], [], []>} : vector<64x32xbf16>, vector<32x96xbf16>, vector<64x96xf32> -> vector<64x96xf32>
    %165 = arith.addf %143, %164 : vector<64x96xf32>
    %166 = tpu.concatenate %100, %165 in 0 : vector<64x96xf32>, vector<64x96xf32> -> vector<128x96xf32>
    %167 = arith.addf %0, %166 : vector<128x96xf32>
    %c0_46 = arith.constant 0 : index
    %c0_47 = arith.constant 0 : index
    %168 = vector.load %arg6[%c0_46, %c0_47] : memref<1x96xf32, #tpu.memory_space<vmem>>, vector<1x96xf32>
    %169 = vector.broadcast %168 : vector<1x96xf32> to vector<128x96xf32>
    %170 = arith.addf %167, %169 : vector<128x96xf32>
    %cst_48 = arith.constant dense<0.000000e+00> : vector<128xf32>
    %171 = vector.multi_reduction <add>, %170, %cst_48 [1] : vector<128x96xf32> to vector<128xf32>
    %172 = vector.shape_cast %171 : vector<128xf32> to vector<128x1xf32>
    %cst_49 = arith.constant 9.600000e+01 : f32
    %173 = vector.broadcast %cst_49 : f32 to vector<128x1xf32>
    %174 = arith.divf %172, %173 : vector<128x1xf32>
    %175 = vector.broadcast %174 : vector<128x1xf32> to vector<128x96xf32>
    %176 = arith.subf %170, %175 : vector<128x96xf32>
    %177 = arith.mulf %176, %176 : vector<128x96xf32>
    %cst_50 = arith.constant dense<0.000000e+00> : vector<128xf32>
    %178 = vector.multi_reduction <add>, %177, %cst_50 [1] : vector<128x96xf32> to vector<128xf32>
    %179 = vector.shape_cast %178 : vector<128xf32> to vector<128x1xf32>
    %cst_51 = arith.constant 9.600000e+01 : f32
    %180 = vector.broadcast %cst_51 : f32 to vector<128x1xf32>
    %181 = arith.divf %179, %180 : vector<128x1xf32>
    %182 = vector.broadcast %174 : vector<128x1xf32> to vector<128x96xf32>
    %183 = arith.subf %170, %182 : vector<128x96xf32>
    %cst_52 = arith.constant 9.99999974E-6 : f32
    %184 = vector.broadcast %cst_52 : f32 to vector<128x1xf32>
    %185 = arith.addf %181, %184 : vector<128x1xf32>
    %186 = math.rsqrt %185 : vector<128x1xf32>
    %187 = vector.broadcast %186 : vector<128x1xf32> to vector<128x96xf32>
    %188 = arith.mulf %183, %187 : vector<128x96xf32>
    %c0_53 = arith.constant 0 : index
    %c0_54 = arith.constant 0 : index
    %189 = vector.load %arg7[%c0_53, %c0_54] : memref<1x96xf32, #tpu.memory_space<vmem>>, vector<1x96xf32>
    %190 = vector.broadcast %189 : vector<1x96xf32> to vector<128x96xf32>
    %191 = arith.mulf %188, %190 : vector<128x96xf32>
    %c0_55 = arith.constant 0 : index
    %c0_56 = arith.constant 0 : index
    %192 = vector.load %arg8[%c0_55, %c0_56] : memref<1x96xf32, #tpu.memory_space<vmem>>, vector<1x96xf32>
    %193 = vector.broadcast %192 : vector<1x96xf32> to vector<128x96xf32>
    %194 = arith.addf %191, %193 : vector<128x96xf32>
    %195 = arith.truncf %194 : vector<128x96xf32> to vector<128x96xbf16>
    %c0_57 = arith.constant 0 : index
    %c0_58 = arith.constant 0 : index
    %196 = vector.load %arg9[%c0_57, %c0_58] : memref<96x384xbf16, #tpu.memory_space<vmem>>, vector<96x384xbf16>
    %cst_59 = arith.constant dense<0.000000e+00> : vector<128x384xf32>
    %197 = tpu.matmul %195, %196, %cst_59 {dimension_numbers = #tpu.dot_dimension_numbers<[1], [0], [0], [1], [0, 0, 1, 1], [], []>} : vector<128x96xbf16>, vector<96x384xbf16>, vector<128x384xf32> -> vector<128x384xf32>
    %c0_60 = arith.constant 0 : index
    %c0_61 = arith.constant 0 : index
    %198 = vector.load %arg10[%c0_60, %c0_61] : memref<1x384xf32, #tpu.memory_space<vmem>>, vector<1x384xf32>
    %199 = vector.broadcast %198 : vector<1x384xf32> to vector<128x384xf32>
    %200 = arith.addf %197, %199 : vector<128x384xf32>
    %cst_62 = arith.constant 0.000000e+00 : f32
    %201 = vector.broadcast %cst_62 : f32 to vector<128x384xf32>
    %202 = arith.maximumf %200, %201 : vector<128x384xf32>
    %203 = arith.truncf %202 : vector<128x384xf32> to vector<128x384xbf16>
    %c0_63 = arith.constant 0 : index
    %c0_64 = arith.constant 0 : index
    %204 = vector.load %arg11[%c0_63, %c0_64] : memref<384x96xbf16, #tpu.memory_space<vmem>>, vector<384x96xbf16>
    %cst_65 = arith.constant dense<0.000000e+00> : vector<128x96xf32>
    %205 = tpu.matmul %203, %204, %cst_65 {dimension_numbers = #tpu.dot_dimension_numbers<[1], [0], [0], [1], [0, 0, 1, 1], [], []>} : vector<128x384xbf16>, vector<384x96xbf16>, vector<128x96xf32> -> vector<128x96xf32>
    %c0_66 = arith.constant 0 : index
    %c0_67 = arith.constant 0 : index
    %206 = vector.load %arg12[%c0_66, %c0_67] : memref<1x96xf32, #tpu.memory_space<vmem>>, vector<1x96xf32>
    %207 = vector.broadcast %206 : vector<1x96xf32> to vector<128x96xf32>
    %208 = arith.addf %205, %207 : vector<128x96xf32>
    %209 = arith.addf %170, %208 : vector<128x96xf32>
    %c0_68 = arith.constant 0 : index
    %c0_69 = arith.constant 0 : index
    %210 = vector.load %arg13[%c0_68, %c0_69] : memref<128x96xf32, #tpu.memory_space<vmem>>, vector<128x96xf32>
    tpu.vector_store %arg13[%c0_68, %c0_69], %209 {strides = array<i32>} : memref<128x96xf32, #tpu.memory_space<vmem>>, vector<128x96xf32>,
    return
  }
  func.func @transform_0(%arg0: i32) -> (i32, i32) {
    %c0_i32 = arith.constant 0 : i32
    %c0_i32_0 = arith.constant 0 : i32
    return %arg0, %c0_i32 : i32, i32
  }
  func.func @transform_1(%arg0: i32) -> (i32, i32) {
    %c0_i32 = arith.constant 0 : i32
    %c0_i32_0 = arith.constant 0 : i32
    %c0_i32_1 = arith.constant 0 : i32
    return %c0_i32, %c0_i32_0 : i32, i32
  }
  func.func @transform_2(%arg0: i32) -> (i32, i32) {
    %c0_i32 = arith.constant 0 : i32
    %c0_i32_0 = arith.constant 0 : i32
    %c0_i32_1 = arith.constant 0 : i32
    return %c0_i32, %c0_i32_0 : i32, i32
  }
  func.func @transform_3(%arg0: i32) -> (i32, i32) {
    %c0_i32 = arith.constant 0 : i32
    %c0_i32_0 = arith.constant 0 : i32
    %c0_i32_1 = arith.constant 0 : i32
    return %c0_i32, %c0_i32_0 : i32, i32
  }
  func.func @transform_4(%arg0: i32) -> (i32, i32) {
    %c0_i32 = arith.constant 0 : i32
    %c0_i32_0 = arith.constant 0 : i32
    %c0_i32_1 = arith.constant 0 : i32
    return %c0_i32, %c0_i32_0 : i32, i32
  }
  func.func @transform_5(%arg0: i32) -> (i32, i32) {
    %c0_i32 = arith.constant 0 : i32
    %c0_i32_0 = arith.constant 0 : i32
    %c0_i32_1 = arith.constant 0 : i32
    return %c0_i32, %c0_i32_0 : i32, i32
  }
  func.func @transform_6(%arg0: i32) -> (i32, i32) {
    %c0_i32 = arith.constant 0 : i32
    %c0_i32_0 = arith.constant 0 : i32
    %c0_i32_1 = arith.constant 0 : i32
    return %c0_i32, %c0_i32_0 : i32, i32
  }
  func.func @transform_7(%arg0: i32) -> (i32, i32) {
    %c0_i32 = arith.constant 0 : i32
    %c0_i32_0 = arith.constant 0 : i32
    %c0_i32_1 = arith.constant 0 : i32
    return %c0_i32, %c0_i32_0 : i32, i32
  }
  func.func @transform_8(%arg0: i32) -> (i32, i32) {
    %c0_i32 = arith.constant 0 : i32
    %c0_i32_0 = arith.constant 0 : i32
    %c0_i32_1 = arith.constant 0 : i32
    return %c0_i32, %c0_i32_0 : i32, i32
  }
  func.func @transform_9(%arg0: i32) -> (i32, i32) {
    %c0_i32 = arith.constant 0 : i32
    %c0_i32_0 = arith.constant 0 : i32
    %c0_i32_1 = arith.constant 0 : i32
    return %c0_i32, %c0_i32_0 : i32, i32
  }
  func.func @transform_10(%arg0: i32) -> (i32, i32) {
    %c0_i32 = arith.constant 0 : i32
    %c0_i32_0 = arith.constant 0 : i32
    %c0_i32_1 = arith.constant 0 : i32
    return %c0_i32, %c0_i32_0 : i32, i32
  }
  func.func @transform_11(%arg0: i32) -> (i32, i32) {
    %c0_i32 = arith.constant 0 : i32
    %c0_i32_0 = arith.constant 0 : i32
    %c0_i32_1 = arith.constant 0 : i32
    return %c0_i32, %c0_i32_0 : i32, i32
  }
  func.func @transform_12(%arg0: i32) -> (i32, i32) {
    %c0_i32 = arith.constant 0 : i32
    %c0_i32_0 = arith.constant 0 : i32
    return %arg0, %c0_i32 : i32, i32
  }
}

</mosaic_0001>

<bundles_post_ra>
// kernel: _block_forward_impl.1
= control target key start
LH: loop header
LB: loop body
LE: loop exit
PB: predicated region body
PF: predicated region fallthrough
CT: control target
= control target key end

     0   :  { %17 = vsyncpa [#allocation3], 0  ;;  %s6654_s0 = inlined_call_operand.hbm [shape: f32[128,96], index: 0, kind: input, shape index: {}]   ;;  %s6655_s1 = inlined_call_operand.vmem [shape: f32[1,96], index: 1, kind: input, shape index: {}]   ;;  %s6656_s2 = inlined_call_operand.vmem [shape: f32[1,96], index: 2, kind: input, shape index: {}]   ;;  %s6657_s3 = inlined_call_operand.vmem [shape: bf16[96,384], index: 3, kind: input, shape index: {}]   ;;  %s6658_s4 = inlined_call_operand.vmem [shape: bf16[96,96], index: 4, kind: input, shape index: {}]   ;;  %s6659_s5 = inlined_call_operand.vmem [shape: f32[1,96], index: 5, kind: input, shape index: {}]   ;;  %s6660_s6 = inlined_call_operand.vmem [shape: f32[1,96], index: 6, kind: input, shape index: {}]   ;;  %s6661_s7 = inlined_call_operand.vmem [shape: f32[1,96], index: 7, kind: input, shape index: {}]   ;;  %s6662_s8 = inlined_call_operand.vmem [shape: bf16[96,384], index: 8, kind: input, shape index: {}]   ;;  %s6663_s9 = inlined_call_operand.hbm [shape: f32[1,384], index: 9, kind: input, shape index: {}]   ;;  %s6664_s10 = inlined_call_operand.vmem [shape: bf16[384,96], index: 10, kind: input, shape index: {}]   ;;  %s6665_s11 = inlined_call_operand.hbm [shape: f32[1,96], index: 11, kind: input, shape index: {}]   ;;  %s6666_s12 = inlined_call_operand.hbm [shape: f32[128,96], index: 12, kind: output, shape index: {}]  }
   0x1   :  { %18 = vsyncpa [#allocation6], 0  ;;  %s54_s23 = sshll.u32 %s6663_s9, 4  ;;  %s55_s23 = int_to_ptr.hbm [resolvable:$true] %s54_s23 }
   0x2   :  { %19 = vsyncpa [#allocation4], 0  ;;  %s4588_s24 = smov [#allocation5]   ;;  %s24_s28 = sshll.u32 %s6654_s0, 4  ;;  %s25_s28 = int_to_ptr.hbm [resolvable:$true] %s24_s28 }
   0x3   :  { %s56_s25 = sshll.u32 %s4588_s24, 4  ;;  %s4589_s29 = smov [#allocation2]   ;;  %s57_s25 = int_to_ptr.vmem [resolvable:$true] %s56_s25 }
   0x4   :  { %59 = dma.hbm_to_vmem [thread:$0]  %s55_s23, 48, %s57_s25, [#allocation6]  }
   0x5   :  { %s26_s30 = sshll.u32 %s4589_s29, 4  ;;  %s4590_s13 = smov 128   ;;  %s27_s30 = int_to_ptr.vmem [resolvable:$true] %s26_s30 }
   0x6   :  { %s4591_s14 = smov 8   ;;  %s67_s16 = sshll.u32 %s6665_s11, 4  ;;  %s68_s16 = int_to_ptr.hbm [resolvable:$true] %s67_s16 }
   0x7   :  { %32 = dma.hbm_to_vmem [thread:$0]  %s25_s28, 2048, %s27_s30, [#allocation3], %s4590_s13, %s4590_s13, %s4591_s14  }
   0x8   :  { %s4592_s17 = smov [#allocation7]  }
   0x9   :  { %s69_s18 = sshll.u32 %s4592_s17, 4  ;;  %s70_s18 = int_to_ptr.vmem [resolvable:$true] %s69_s18 }
   0xa   :  { %72 = dma.hbm_to_vmem [thread:$0]  %s68_s16, 16, %s70_s18, [#allocation6]  }
   0xb   :  { %4582 = dma.done.wait [#allocation3], 2048  }
   0xc   :  { %4583 = vsyncadd [#allocation3], 4294965248 }
   0xd   :  { %4584 = dma.done.wait [#allocation6], 64  }
   0xe   :  { %4585 = vsyncadd [#allocation6], 4294967232  ;;  %vm102_vm0 = vcmask 785408   ;;  %v90_v0 = vld [vmem:[#allocation2 + $0x20] sm:$0xff]  ;;  %v88_v1 = vld [vmem:[#allocation2 + $0x10] sm:$0xff]  ;;  %v4593_v14 = vmov 96.0  }
   0xf   :  { %v86_v2 = vld [vmem:[#allocation2] sm:$0xff]  ;;  %v115_v3 = vsel %vm102_vm0, %v90_v0, 0.0  ;;  %v109_v4 = vsel %vm102_vm0, %v88_v1, 0.0  ;;  %v91_v6 = vld [vmem:[#allocation2 + $0x28] sm:$0xff]  ;;  %v89_v7 = vld [vmem:[#allocation2 + $0x18] sm:$0xff]  ;;  %4210 = vrcp.f32 %v4593_v14  ;;  %s4595_s17 = smov 64  }
  0x10   :  { %v103_v5 = vsel %vm102_vm0, %v86_v2, 0.0  ;;  %116 = vadd.xlane.f32.xlu2 %v115_v3  ;;  %110 = vadd.xlane.f32.xlu1 %v109_v4  ;;  %v87_v8 = vld [vmem:[#allocation2 + $0x8] sm:$0xff]  ;;  %v118_v9 = vsel %vm102_vm0, %v91_v6, 0.0  ;;  %v112_v10 = vsel %vm102_vm0, %v89_v7, 0.0  ;;  %v92_v12 = vld [vmem:[#allocation2 + $0x30] sm:$0xff]  ;;  %v4696_v36 = vld [vmem:[#allocation2 + $0x38] sm:$0xff] }
  0x11   :  { %104 = vadd.xlane.f32.xlu0 %v103_v5  ;;  %v106_v11 = vsel %vm102_vm0, %v87_v8, 0.0  ;;  %v121_v13 = vsel %vm102_vm0, %v92_v12, 0.0  ;;  %v124_v41 = vsel %vm102_vm0, %v4696_v36, 0.0  ;;  %v4729_v57 = vld [vmem:[#allocation2 + $0x48] sm:$0xff]  ;;  %v4734_v60 = vld [vmem:[#allocation2 + $0x40] sm:$0xff]  ;;  %v4738_v62 = vld [vmem:[#allocation2 + $0x58] sm:$0xff] }
  0x12   :  { %v130_v58 = vsel %vm102_vm0, %v4729_v57, 0.0  ;;  %v127_v61 = vsel %vm102_vm0, %v4734_v60, 0.0  ;;  %v136_v63 = vsel %vm102_vm0, %v4738_v62, 0.0  ;;  %v4138_v3 = vld [vmem:[%s6657_s3 + $0x80] sm:$0xf0] }
  0x13   :  { %v4137_v4 = vld [vmem:[%s6657_s3 + $0x7c] sm:$0xf] }
  0x15   :  { %v4211_v15 = vpop.eup %4210 }
  0x16   :  { %v152_v16 = vmul.f32 96.0, %v4211_v15  ;;  %vm156_vm1 = vweird.f32 %v4211_v15 }
  0x18   :  { %119 = vadd.xlane.f32.xlu2 %v118_v9  ;;  %113 = vadd.xlane.f32.xlu1 %v112_v10  ;;  %v153_v17 = vsub.f32 1.0, %v152_v16  ;;  %v3796_v16 = vld [vmem:[%s6657_s3 + $0x68] sm:$0xf] }
  0x19   :  { %107 = vadd.xlane.f32.xlu0 %v106_v11  ;;  %v3788_v11 = vld [vmem:[%s6657_s3 + $0x60] sm:$0xf] }
  0x1a   :  { %v154_v18 = vmul.f32 %v4211_v15, %v153_v17  ;;  %v4136_v17 = vld [vmem:[%s6657_s3 + $0x70] sm:$0xf0] }
  0x1c   :  { %v155_v19 = vadd.f32 %v4211_v15, %v154_v18 }
  0x1e   :  { %v4682_v20 = vsel %vm156_vm1, %v4211_v15, %v155_v19  ;;  %v3790_v15 = vld [vmem:[%s6657_s3 + $0x6c] sm:$0xf0]  ;;  %v3797_v19 = vor.u32 %v4136_v17, %v3796_v16 }
  0x20   :  { %122 = vadd.xlane.f32.xlu2 %v121_v13  ;;  %v4134_v13 = vld [vmem:[%s6657_s3 + $0x64] sm:$0xf] }
  0x21   :  { %v3793_v18 = vor.u32 %v4134_v13, %v3790_v15 }
  0x83   :  { %v117_v21 = vpop.xlane.xlu2 %116  ;;  %v111_v22 = vpop.xlane.xlu1 %110 }
  0x84   :  { %v105_v23 = vpop.xlane.xlu0 %104  ;;  %v162_v32 = vmul.f32 %v4682_v20, %v117_v21  ;;  %v160_v33 = vmul.f32 %v4682_v20, %v111_v22  ;;  %v3776_v21 = vld [vmem:[%s6657_s3 + $0x48] sm:$0xf]  ;;  %v4132_v22 = vld [vmem:[%s6657_s3 + $0x50] sm:$0xf0] }
  0x85   :  { %v158_v24 = vmul.f32 %v4682_v20, %v105_v23  ;;  %v4131_v23 = vld [vmem:[%s6657_s3 + $0x4c] sm:$0xf] }
  0x86   :  { %v4702_v39 = vsub.f32 %v90_v0, %v162_v32  ;;  %v4704_v40 = vsub.f32 %v88_v1, %v160_v33  ;;  %v4742_v0 = vld [vmem:[#allocation2 + $0x60] sm:$0xff]  ;;  %v4129_v32 = vld [vmem:[%s6657_s3 + $0x38] sm:$0xf0]  ;;  %v4128_v33 = vld [vmem:[%s6657_s3 + $0x34] sm:$0xf] }
  0x87   :  { %v4685_v25 = vsub.f32 %v86_v2, %v158_v24  ;;  %v139_v1 = vsel %vm102_vm0, %v4742_v0, 0.0  ;;  %v3800_v2 = vld [vmem:[%s6657_s3 + $0x78] sm:$0xf]  ;;  %v3777_v24 = vor.u32 %v4132_v22, %v3776_v21 }
  0x88   :  { %v194_v48 = vmul.f32 %v4702_v39, %v4702_v39  ;;  %v192_v49 = vmul.f32 %v4704_v40, %v4704_v40  ;;  %v3801_v5 = vor.u32 %v4138_v3, %v3800_v2  ;;  %v3742_v3 = vld [vmem:[%s6657_s3 + $0xc] sm:$0xf0] }
  0x89   :  { %v190_v26 = vmul.f32 %v4685_v25, %v4685_v25 }
  0x8a   :  { %v218_v53 = vsel %vm102_vm0, %v194_v48, 0.0  ;;  %v212_v54 = vsel %vm102_vm0, %v192_v49, 0.0  ;;  %656 = vmatpush.bf16.msra.mxu0 %v3801_v5  ;;  %v3754_v49 = vld [vmem:[%s6657_s3 + $0x24] sm:$0xf0] }
  0x8b   :  { %v120_v27 = vpop.xlane.xlu2 %119  ;;  %v114_v28 = vpop.xlane.xlu1 %113  ;;  %v206_v29 = vsel %vm102_vm0, %v190_v26, 0.0  ;;  %v3778_v26 = vld [vmem:[%s6657_s3 + $0x54] sm:$0xf0] }
  0x8c   :  { %v161_v30 = vmul.f32 %v4682_v20, %v114_v28  ;;  %207 = vadd.xlane.f32.xlu0 %v206_v29  ;;  %v108_v31 = vpop.xlane.xlu0 %107  ;;  %v163_v47 = vmul.f32 %v4682_v20, %v120_v27  ;;  %v3784_v27 = vld [vmem:[%s6657_s3 + $0x50] sm:$0xf]  ;;  %v4133_v28 = vld [vmem:[%s6657_s3 + $0x58] sm:$0xf0]  ;;  %v3781_v29 = vor.u32 %v4131_v23, %v3778_v26 }
  0x8d   :  { %v159_v34 = vmul.f32 %v4682_v20, %v108_v31  ;;  %v3764_v31 = vld [vmem:[%s6657_s3 + $0x30] sm:$0xf] }
  0x8e   :  { %v4694_v35 = vsub.f32 %v89_v7, %v161_v30  ;;  %v4722_v52 = vsub.f32 %v91_v6, %v163_v47  ;;  %v3802_v6 = vld [vmem:[%s6657_s3 + $0x84] sm:$0xf0]  ;;  %v3808_v7 = vld [vmem:[%s6657_s3 + $0x80] sm:$0xf]  ;;  %v3785_v30 = vor.u32 %v4133_v28, %v3784_v27  ;;  %v4125_v47 = vld [vmem:[%s6657_s3 + $0x1c] sm:$0xf] }
  0x8f   :  { %v4698_v37 = vsub.f32 %v87_v8, %v159_v34  ;;  %v4139_v8 = vld [vmem:[%s6657_s3 + $0x88] sm:$0xf0]  ;;  %v3805_v9 = vor.u32 %v4137_v4, %v3802_v6  ;;  %v3765_v34 = vor.u32 %v4129_v32, %v3764_v31  ;;  %v3748_v4 = vld [vmem:[%s6657_s3 + $0x8] sm:$0xf]  ;;  %v4124_v6 = vld [vmem:[%s6657_s3 + $0x10] sm:$0xf0] }
  0x90   :  { %v193_v38 = vmul.f32 %v4694_v35, %v4694_v35  ;;  %v195_v56 = vmul.f32 %v4722_v52, %v4722_v52  ;;  %v3809_v10 = vor.u32 %v4139_v8, %v3808_v7  ;;  %v3749_v7 = vor.u32 %v4124_v6, %v3748_v4 }
  0x91   :  { %v191_v42 = vmul.f32 %v4698_v37, %v4698_v37  ;;  %705 = vmatpush.bf16.msra.mxu1 %v3805_v9  ;;  %4188 = vmatpush.bf16.msra.mxu3 %v3805_v9 }
  0x92   :  { %v215_v43 = vsel %vm102_vm0, %v193_v38, 0.0  ;;  %v221_v59 = vsel %vm102_vm0, %v195_v56, 0.0  ;;  %754 = vmatpush.bf16.msra.mxu2 %v3809_v10  ;;  %v3766_v38 = vld [vmem:[%s6657_s3 + $0x3c] sm:$0xf0] }
  0x93   :  { %v123_v44 = vpop.xlane.xlu2 %122  ;;  %216 = vadd.xlane.f32.xlu2 %v215_v43  ;;  %v209_v45 = vsel %vm102_vm0, %v191_v42, 0.0  ;;  %v4130_v42 = vld [vmem:[%s6657_s3 + $0x40] sm:$0xf0]  ;;  %v3769_v43 = vor.u32 %v4128_v33, %v3766_v38 }
  0x94   :  { %v164_v46 = vmul.f32 %v4682_v20, %v123_v44  ;;  %125 = vadd.xlane.f32.xlu0 %v124_v41  ;;  %210 = vadd.xlane.f32.xlu1 %v209_v45  ;;  %v3772_v41 = vld [vmem:[%s6657_s3 + $0x38] sm:$0xf] }
  0x95   :  { %706 = vmatpush.bf16.msra.mxu1 %v3793_v18  ;;  %4189 = vmatpush.bf16.msra.mxu3 %v3793_v18  ;;  %v3773_v44 = vor.u32 %v4130_v42, %v3772_v41  ;;  %v3752_v45 = vld [vmem:[%s6657_s3 + $0x18] sm:$0xf] }
  0x96   :  { %v4718_v50 = vsub.f32 %v92_v12, %v164_v46  ;;  %v4135_v12 = vld [vmem:[%s6657_s3 + $0x68] sm:$0xf0]  ;;  %755 = vmatpush.bf16.msra.mxu2 %v3797_v19  ;;  %v4126_v46 = vld [vmem:[%s6657_s3 + $0x20] sm:$0xf0] }
  0x97   :  { %v3789_v14 = vor.u32 %v4135_v12, %v3788_v11  ;;  %v3753_v48 = vor.u32 %v4126_v46, %v3752_v45 }
  0x98   :  { %v196_v51 = vmul.f32 %v4718_v50, %v4718_v50 }
  0x99   :  { %657 = vmatpush.bf16.msra.mxu0 %v3789_v14  ;;  %707 = vmatpush.bf16.msra.mxu1 %v3781_v29 }
  0x9a   :  { %v224_v55 = vsel %vm102_vm0, %v196_v51, 0.0  ;;  %756 = vmatpush.bf16.msra.mxu2 %v3785_v30  ;;  %4190 = vmatpush.bf16.msra.mxu3 %v3781_v29  ;;  %v3760_v51 = vld [vmem:[%s6657_s3 + $0x20] sm:$0xf] }
  0x9b   :  { %225 = vadd.xlane.f32.xlu2 %v224_v55  ;;  %v3757_v55 = vor.u32 %v4125_v47, %v3754_v49 }
  0x9c   :  { %219 = vadd.xlane.f32.xlu0 %v218_v53  ;;  %213 = vadd.xlane.f32.xlu1 %v212_v54  ;;  %v4127_v53 = vld [vmem:[%s6657_s3 + $0x28] sm:$0xf0] }
  0x9d   :  { %658 = vmatpush.bf16.msra.mxu0 %v3777_v24  ;;  %708 = vmatpush.bf16.msra.mxu1 %v3769_v43  ;;  %v3761_v56 = vor.u32 %v4127_v53, %v3760_v51 }
  0x9e   :  { %757 = vmatpush.bf16.msra.mxu2 %v3773_v44  ;;  %4191 = vmatpush.bf16.msra.mxu3 %v3769_v43 }
  0xa1   :  { %659 = vmatpush.bf16.msra.mxu0 %v3765_v34  ;;  %709 = vmatpush.bf16.msra.mxu1 %v3757_v55 }
  0xa2   :  { %758 = vmatpush.bf16.msra.mxu2 %v3761_v56  ;;  %4192 = vmatpush.bf16.msra.mxu3 %v3757_v55  ;;  %v4890_v56 = vld [vmem:[#allocation2 + $0x68] sm:$0xff] }
  0xa3   :  { %131 = vadd.xlane.f32.xlu2 %v130_v58 }
  0xa4   :  { %222 = vadd.xlane.f32.xlu1 %v221_v59  ;;  %v3740_v59 = vld [vmem:[%s6657_s3] sm:$0xf] }
  0xa5   :  { %660 = vmatpush.bf16.msra.mxu0 %v3753_v48 }
  0xa6   :  { %759 = vmatpush.bf16.msra.mxu2 %v3749_v7 }
  0xab   :  { %140 = vadd.xlane.f32.xlu2 %v139_v1 }
  0xac   :  { %128 = vadd.xlane.f32.xlu1 %v127_v61  ;;  %v4123_v61 = vld [vmem:[%s6657_s3 + $0x8] sm:$0xf0] }
  0xad   :  { %v3741_v2 = vor.u32 %v4123_v61, %v3740_v59 }
  0xaf   :  { %661 = vmatpush.bf16.msra.mxu0 %v3741_v2 }
  0xb4   :  { %137 = vadd.xlane.f32.xlu1 %v136_v63  ;;  %v4122_v63 = vld [vmem:[%s6657_s3 + $0x4] sm:$0xf] }
  0xb5   :  { %v3745_v5 = vor.u32 %v4122_v63, %v3742_v3  ;;  %v4903_v3 = vld [vmem:[%s6655_s1] ss:$0 sm:$0xff] }
  0xb7   :  { %710 = vmatpush.bf16.msra.mxu1 %v3745_v5  ;;  %4193 = vmatpush.bf16.msra.mxu3 %v3745_v5  ;;  %v142_v5 = vsel %vm102_vm0, %v4890_v56, 0.0 }
  0xff   :  { %v208_v54 = vpop.xlane.xlu0 %207 }
 0x100   :  { %v254_v58 = vmul.f32 %v208_v54, %v4682_v20 }
 0x102   :  { %v270_v1 = vadd.f32 1e-05, %v254_v58 }
 0x104   :  { %4212 = vrsqrt.f32 %v270_v1  ;;  %vm292_vm3 = vweird.f32 %v270_v1 }
 0x106   :  { %v217_v8 = vpop.xlane.xlu2 %216 }
 0x107   :  { %v257_v9 = vmul.f32 %v217_v8, %v4682_v20  ;;  %v211_v10 = vpop.xlane.xlu1 %210  ;;  %v126_v11 = vpop.xlane.xlu0 %125 }
 0x108   :  { %v255_v12 = vmul.f32 %v211_v10, %v4682_v20  ;;  %v165_v13 = vmul.f32 %v4682_v20, %v126_v11  ;;  %v4915_v11 = vld [vmem:[%s6656_s2] ss:$0 sm:$0xff]  ;;  %s4594_s2 = smov 96  }
 0x109   :  { %v4858_v14 = vadd.f32 1e-05, %v257_v9 }
 0x10a   :  { %v4213_v15 = vpop.eup %4212  ;;  %v271_v16 = vadd.f32 1e-05, %v255_v12  ;;  %v4861_v17 = vsub.f32 %v4696_v36, %v165_v13  ;;  %v4870_v36 = vld [vmem:[#allocation2 + $0x50] sm:$0xff] }
 0x10b   :  { %v287_v18 = vmul.f32 %v4213_v15, %v270_v1  ;;  %4214 = vrsqrt.f32 %v4858_v14  ;;  %v133_v38 = vsel %vm102_vm0, %v4870_v36, 0.0  ;;  %vm293_vm2 = vweird.f32 %v4213_v15 }
 0x10c   :  { %4216 = vrsqrt.f32 %v271_v16  ;;  %v197_v19 = vmul.f32 %v4861_v17, %v4861_v17  ;;  %vm302_vm4 = vweird.f32 %v271_v16  ;;  %vm4879_vm5 = vmor %vm292_vm3, %vm293_vm2  ;;  %vm322_vm10 = vweird.f32 %v4858_v14 }
 0x10d   :  { %v288_v21 = vmul.f32 %v4213_v15, %v287_v18 }
 0x10e   :  { %v4866_v22 = vpop.xlane.xlu2 %225  ;;  %v227_v23 = vsel %vm102_vm0, %v197_v19, 0.0 }
 0x10f   :  { %v289_v24 = vmul.f32 0.5, %v288_v21  ;;  %v214_v26 = vpop.xlane.xlu1 %213  ;;  %228 = vadd.xlane.f32.xlu0 %v227_v23  ;;  %v220_v28 = vpop.xlane.xlu0 %219 }
 0x110   :  { %v256_v27 = vmul.f32 %v214_v26, %v4682_v20  ;;  %v258_v34 = vmul.f32 %v220_v28, %v4682_v20  ;;  %v4934_v28 = vld [vmem:[#allocation2 + $0x70] sm:$0xff] }
 0x111   :  { %v4872_v29 = vpop.eup %4214  ;;  %v290_v30 = vsub.f32 1.5, %v289_v24 }
 0x112   :  { %v4217_v31 = vpop.eup %4216  ;;  %v272_v32 = vadd.f32 1e-05, %v256_v27  ;;  %v317_v42 = vmul.f32 %v4872_v29, %v4858_v14  ;;  %v4883_v47 = vadd.f32 1e-05, %v258_v34  ;;  %vm323_vm11 = vweird.f32 %v4872_v29 }
 0x113   :  { %v297_v33 = vmul.f32 %v4217_v31, %v271_v16  ;;  %v291_v41 = vmul.f32 %v4213_v15, %v290_v30  ;;  %vm303_vm6 = vweird.f32 %v4217_v31  ;;  %vm4940_vm13 = vmor %vm322_vm10, %vm323_vm11 }
 0x114   :  { %4218 = vrsqrt.f32 %v272_v32  ;;  %v318_v53 = vmul.f32 %v4872_v29, %v317_v42  ;;  %vm304_vm7 = vmor %vm302_vm4, %vm303_vm6  ;;  %vm312_vm8 = vweird.f32 %v272_v32  ;;  %vm332_vm1 = vweird.f32 %v4883_v47 }
 0x115   :  { %v298_v43 = vmul.f32 %v4217_v31, %v297_v33  ;;  %v295_v51 = vsel %vm4879_vm5, %v4213_v15, %v291_v41  ;;  %4220 = vrsqrt.f32 %v4883_v47  ;;  %v145_v41 = vsel %vm102_vm0, %v4934_v28, 0.0 }
 0x116   :  { %v132_v44 = vpop.xlane.xlu2 %131  ;;  %v446_v2 = vmul.f32 %v295_v51, %v4685_v25  ;;  %v319_v4 = vmul.f32 0.5, %v318_v53 }
 0x117   :  { %v299_v46 = vmul.f32 0.5, %v298_v43  ;;  %v223_v48 = vpop.xlane.xlu1 %222  ;;  %134 = vadd.xlane.f32.xlu0 %v133_v38  ;;  %v167_v49 = vmul.f32 %v4682_v20, %v132_v44 }
 0x118   :  { %v259_v54 = vmul.f32 %v223_v48, %v4682_v20  ;;  %v466_v10 = vmul.f32 %v4903_v3, %v446_v2  ;;  %v320_v12 = vsub.f32 1.5, %v319_v4  ;;  %v4959_v48 = vld [vmem:[#allocation2 + $0x78] sm:$0xff] }
 0x119   :  { %v300_v55 = vsub.f32 1.5, %v299_v46  ;;  %v4896_v61 = vsub.f32 %v4729_v57, %v167_v49 }
 0x11a   :  { %v4219_v58 = vpop.eup %4218  ;;  %v4893_v59 = vadd.f32 1e-05, %v259_v54  ;;  %v486_v27 = vadd.f32 %v4915_v11, %v466_v10  ;;  %v321_v14 = vmul.f32 %v4872_v29, %v320_v12  ;;  %v148_v54 = vsel %vm102_vm0, %v4959_v48, 0.0 }
 0x11b   :  { %v301_v63 = vmul.f32 %v4217_v31, %v300_v55  ;;  %v307_v1 = vmul.f32 %v4219_v58, %v272_v32  ;;  %v199_v8 = vmul.f32 %v4896_v61, %v4896_v61  ;;  %vm313_vm9 = vweird.f32 %v4219_v58  ;;  %v4919_v15 = vpop.eup %4220 }
 0x11c   :  { %4222 = vrsqrt.f32 %v4893_v59  ;;  %vm4929_vm12 = vmor %vm312_vm8, %vm313_vm9  ;;  %v325_v43 = vsel %vm4940_vm13, %v4872_v29, %v321_v14  ;;  %vm342_vm14 = vweird.f32 %v4893_v59  ;;  %vm333_vm2 = vweird.f32 %v4919_v15 }
 0x11d   :  { %v305_v6 = vsel %vm304_vm7, %v4217_v31, %v301_v63  ;;  %v308_v7 = vmul.f32 %v4219_v58, %v307_v1  ;;  %v233_v18 = vsel %vm102_vm0, %v199_v8, 0.0  ;;  %v449_v49 = vmul.f32 %v325_v43, %v4694_v35  ;;  %vm334_vm4 = vmor %vm332_vm1, %vm333_vm2 }
 0x11e   :  { %v447_v57 = vmul.f32 %v305_v6, %v4698_v37  ;;  %234 = vadd.xlane.f32.xlu2 %v233_v18  ;;  %v260_v18 = vmul.f32 %v4866_v22, %v4682_v20 }
 0x11f   :  { %v309_v9 = vmul.f32 0.5, %v308_v7  ;;  %v129_v25 = vpop.xlane.xlu1 %128  ;;  %143 = vadd.xlane.f32.xlu0 %v142_v5  ;;  %v469_v63 = vmul.f32 %v4903_v3, %v449_v49 }
 0x120   :  { %v166_v13 = vmul.f32 %v4682_v20, %v129_v25  ;;  %v467_v37 = vmul.f32 %v4903_v3, %v447_v57 }
 0x121   :  { %v310_v16 = vsub.f32 1.5, %v309_v9  ;;  %v489_v4 = vadd.f32 %v4915_v11, %v469_v63 }
 0x122   :  { %v4925_v19 = vsub.f32 %v4734_v60, %v166_v13  ;;  %v487_v21 = vadd.f32 %v4915_v11, %v467_v37  ;;  %v4223_v23 = vpop.eup %4222  ;;  %v327_v60 = vmul.f32 %v4919_v15, %v4883_v47  ;;  %v141_v37 = vpop.xlane.xlu2 %140 }
 0x123   :  { %v311_v24 = vmul.f32 %v4219_v58, %v310_v16  ;;  %v337_v30 = vmul.f32 %v4223_v23, %v4893_v59  ;;  %vm343_vm15 = vweird.f32 %v4223_v23 }
 0x124   :  { %v502_v32 = vpack.c.bf16 %v487_v21, %v486_v27  ;;  %v198_v33 = vmul.f32 %v4925_v19, %v4925_v19  ;;  %v328_v44 = vmul.f32 %v4919_v15, %v327_v60  ;;  %vm344_vm3 = vmor %vm342_vm14, %vm343_vm15  ;;  %v276_v21 = vadd.f32 1e-05, %v260_v18 }
 0x125   :  { %v315_v34 = vsel %vm4929_vm12, %v4219_v58, %v311_v24  ;;  %v338_v38 = vmul.f32 %v4223_v23, %v337_v30 }
 0x126   :  { %3810 = vmatmul.msk.bf16.vlgmr.msra.gmra.mxu0 %vm102_vm0, %v502_v32  ;;  %3818 = vmatmul.msk.bf16.vlgmr.msra.gmra.mxu1 %vm102_vm0, %v502_v32  ;;  %v230_v42 = vsel %vm102_vm0, %v198_v33, 0.0  ;;  %v448_v45 = vmul.f32 %v315_v34, %v4704_v40  ;;  %v329_v53 = vmul.f32 0.5, %v328_v44  ;;  %4224 = vrsqrt.f32 %v276_v21 }
 0x127   :  { %3826 = vmatmul.msk.bf16.vlgmr.msra.gmra.mxu2 %vm102_vm0, %v502_v32  ;;  %231 = vadd.xlane.f32.xlu1 %v230_v42  ;;  %v339_v46 = vmul.f32 0.5, %v338_v38  ;;  %v138_v51 = vpop.xlane.xlu1 %137  ;;  %vm352_vm5 = vweird.f32 %v276_v21 }
 0x128   :  { %146 = vadd.xlane.f32.xlu0 %v145_v41  ;;  %v468_v29 = vmul.f32 %v4903_v3, %v448_v45  ;;  %v169_v58 = vmul.f32 %v4682_v20, %v138_v51  ;;  %v330_v1 = vsub.f32 1.5, %v329_v53 }
 0x129   :  { %v340_v55 = vsub.f32 1.5, %v339_v46 }
 0x12a   :  { %v488_v40 = vadd.f32 %v4915_v11, %v468_v29  ;;  %v4972_v2 = vsub.f32 %v4738_v62, %v169_v58  ;;  %v331_v5 = vmul.f32 %v4919_v15, %v330_v1 }
 0x12b   :  { %v341_v35 = vmul.f32 %v4223_v23, %v340_v55 }
 0x12c   :  { %v503_v6 = vpack.c.bf16 %v489_v4, %v488_v40  ;;  %v201_v7 = vmul.f32 %v4972_v2, %v4972_v2  ;;  %v335_v47 = vsel %vm334_vm4, %v4919_v15, %v331_v5 }
 0x12d   :  { %v345_v59 = vsel %vm344_vm3, %v4223_v23, %v341_v35  ;;  %v450_v8 = vmul.f32 %v335_v47, %v4702_v39  ;;  %v4225_v23 = vpop.eup %4224 }
 0x12e   :  { %v239_v62 = vsel %vm102_vm0, %v201_v7, 0.0  ;;  %v451_v57 = vmul.f32 %v345_v59, %v4722_v52  ;;  %v170_v52 = vmul.f32 %v4682_v20, %v141_v37  ;;  %v347_v24 = vmul.f32 %v4225_v23, %v276_v21 }
 0x12f   :  { %149 = vadd.xlane.f32.xlu1 %v148_v54  ;;  %v470_v25 = vmul.f32 %v4903_v3, %v450_v8  ;;  %vm353_vm6 = vweird.f32 %v4225_v23 }
 0x130   :  { %240 = vadd.xlane.f32.xlu0 %v239_v62  ;;  %v471_v9 = vmul.f32 %v4903_v3, %v451_v57  ;;  %v4994_v39 = vsub.f32 %v4742_v0, %v170_v52  ;;  %v348_v26 = vmul.f32 %v4225_v23, %v347_v24  ;;  %vm354_vm7 = vmor %vm352_vm5, %vm353_vm6 }
 0x131   :  { %v490_v12 = vadd.f32 %v4915_v11, %v470_v25 }
 0x132   :  { %v491_v10 = vadd.f32 %v4915_v11, %v471_v9  ;;  %v202_v15 = vmul.f32 %v4994_v39, %v4994_v39  ;;  %v349_v0 = vmul.f32 0.5, %v348_v26 }
 0x134   :  { %v504_v13 = vpack.c.bf16 %v491_v10, %v490_v12  ;;  %v242_v16 = vsel %vm102_vm0, %v202_v15, 0.0  ;;  %v350_v30 = vsub.f32 1.5, %v349_v0 }
 0x136   :  { %3811 = vmatmul.msk.bf16.gmra.mxu0 %vm102_vm0, %v503_v6  ;;  %3819 = vmatmul.msk.bf16.gmra.mxu1 %vm102_vm0, %v503_v6  ;;  %v351_v34 = vmul.f32 %v4225_v23, %v350_v30 }
 0x137   :  { %3827 = vmatmul.msk.bf16.gmra.mxu2 %vm102_vm0, %v503_v6  ;;  %243 = vadd.xlane.f32.xlu1 %v242_v16 }
 0x138   :  { %v355_v44 = vsel %vm354_vm7, %v4225_v23, %v351_v34 }
 0x139   :  { %v452_v54 = vmul.f32 %v355_v44, %v4718_v50 }
 0x146   :  { %3812 = vmatmul.msk.bf16.gmra.mxu0 %vm102_vm0, %v504_v13  ;;  %3820 = vmatmul.msk.bf16.gmra.mxu1 %vm102_vm0, %v504_v13 }
 0x147   :  { %3828 = vmatmul.msk.bf16.gmra.mxu2 %vm102_vm0, %v504_v13 }
 0x182   :  { %v229_v27 = vpop.xlane.xlu0 %228 }
 0x183   :  { %v261_v14 = vmul.f32 %v229_v27, %v4682_v20 }
 0x185   :  { %v277_v60 = vadd.f32 1e-05, %v261_v14 }
 0x187   :  { %4226 = vrsqrt.f32 %v277_v60  ;;  %vm362_vm9 = vweird.f32 %v277_v60 }
 0x18a   :  { %v135_v31 = vpop.xlane.xlu0 %134 }
 0x18b   :  { %v168_v32 = vmul.f32 %v4682_v20, %v135_v31 }
 0x18d   :  { %v4227_v33 = vpop.eup %4226  ;;  %v5004_v22 = vsub.f32 %v4870_v36, %v168_v32 }
 0x18e   :  { %v357_v38 = vmul.f32 %v4227_v33, %v277_v60  ;;  %vm363_vm8 = vweird.f32 %v4227_v33 }
 0x18f   :  { %v200_v41 = vmul.f32 %v5004_v22, %v5004_v22  ;;  %vm364_vm10 = vmor %vm362_vm9, %vm363_vm8 }
 0x190   :  { %v358_v42 = vmul.f32 %v4227_v33, %v357_v38 }
 0x191   :  { %v236_v43 = vsel %vm102_vm0, %v200_v41, 0.0  ;;  %v235_v53 = vpop.xlane.xlu2 %234 }
 0x192   :  { %v359_v45 = vmul.f32 0.5, %v358_v42  ;;  %237 = vadd.xlane.f32.xlu2 %v236_v43  ;;  %v144_v46 = vpop.xlane.xlu0 %143  ;;  %v263_v55 = vmul.f32 %v235_v53, %v4682_v20 }
 0x193   :  { %v171_v49 = vmul.f32 %v4682_v20, %v144_v46 }
 0x194   :  { %v360_v51 = vsub.f32 1.5, %v359_v45  ;;  %v279_v1 = vadd.f32 1e-05, %v263_v55 }
 0x195   :  { %v5011_v36 = vsub.f32 %v4890_v56, %v171_v49  ;;  %v472_v56 = vmul.f32 %v4903_v3, %v452_v54 }
 0x196   :  { %v361_v29 = vmul.f32 %v4227_v33, %v360_v51  ;;  %4228 = vrsqrt.f32 %v279_v1  ;;  %vm382_vm11 = vweird.f32 %v279_v1 }
 0x197   :  { %v203_v58 = vmul.f32 %v5011_v36, %v5011_v36  ;;  %v492_v7 = vadd.f32 %v4915_v11, %v472_v56 }
 0x198   :  { %v365_v63 = vsel %vm364_vm10, %v4227_v33, %v361_v29 }
 0x199   :  { %v245_v40 = vsel %vm102_vm0, %v203_v58, 0.0  ;;  %v453_v35 = vmul.f32 %v365_v63, %v4861_v17 }
 0x19a   :  { %246 = vadd.xlane.f32.xlu2 %v245_v40  ;;  %v232_v4 = vpop.xlane.xlu1 %231 }
 0x19b   :  { %v473_v50 = vmul.f32 %v4903_v3, %v453_v35  ;;  %v262_v5 = vmul.f32 %v232_v4, %v4682_v20  ;;  %v147_v6 = vpop.xlane.xlu0 %146 }
 0x19c   :  { %v172_v59 = vmul.f32 %v4682_v20, %v147_v6  ;;  %v4229_v8 = vpop.eup %4228 }
 0x19d   :  { %v493_v47 = vadd.f32 %v4915_v11, %v473_v50  ;;  %v278_v62 = vadd.f32 1e-05, %v262_v5  ;;  %v377_v9 = vmul.f32 %v4229_v8, %v279_v1  ;;  %vm383_vm12 = vweird.f32 %v4229_v8 }
 0x19e   :  { %v5026_v57 = vsub.f32 %v4934_v28, %v172_v59  ;;  %vm384_vm13 = vmor %vm382_vm11, %vm383_vm12 }
 0x19f   :  { %v505_v17 = vpack.c.bf16 %v493_v47, %v492_v7  ;;  %4230 = vrsqrt.f32 %v278_v62  ;;  %v378_v10 = vmul.f32 %v4229_v8, %v377_v9  ;;  %vm372_vm14 = vweird.f32 %v278_v62 }
 0x1a0   :  { %v204_v25 = vmul.f32 %v5026_v57, %v5026_v57 }
 0x1a1   :  { %3813 = vmatmul.msk.bf16.gmra.mxu0 %vm102_vm0, %v505_v17  ;;  %3821 = vmatmul.msk.bf16.gmra.mxu1 %vm102_vm0, %v505_v17  ;;  %v379_v15 = vmul.f32 0.5, %v378_v10 }
 0x1a2   :  { %3829 = vmatmul.msk.bf16.gmra.mxu2 %vm102_vm0, %v505_v17  ;;  %v150_v12 = vpop.xlane.xlu1 %149  ;;  %v248_v13 = vsel %vm102_vm0, %v204_v25, 0.0 }
 0x1a3   :  { %v173_v28 = vmul.f32 %v4682_v20, %v150_v12  ;;  %v663_v37 = vpop.f32.mrf.mxu0  ;;  %v712_v52 = vpop.f32.mrf.mxu1  ;;  %249 = vadd.xlane.f32.xlu0 %v248_v13  ;;  %v380_v21 = vsub.f32 1.5, %v379_v15 }
 0x1a4   :  { %v801_v30 = vpack.c.bf16 %v712_v52, %v663_v37 }
 0x1a5   :  { %v4231_v16 = vpop.eup %4230  ;;  %v5036_v18 = vsub.f32 %v4959_v48, %v173_v28  ;;  %v381_v26 = vmul.f32 %v4229_v8, %v380_v21 }
 0x1a6   :  { %v367_v23 = vmul.f32 %v4231_v16, %v278_v62  ;;  %vm373_vm15 = vweird.f32 %v4231_v16  ;;  %v880_v41 = vunpack.c.l.b16 %v801_v30  ;;  %v1104_v37 = vunpack.c.h.b16 %v801_v30 }
 0x1a7   :  { %v205_v24 = vmul.f32 %v5036_v18, %v5036_v18  ;;  %v385_v60 = vsel %vm384_vm13, %v4229_v8, %v381_v26  ;;  %vm374_vm1 = vmor %vm372_vm14, %vm373_vm15 }
 0x1a8   :  { %v368_v27 = vmul.f32 %v4231_v16, %v367_v23  ;;  %v455_v48 = vmul.f32 %v385_v60, %v4896_v61 }
 0x1a9   :  { %v251_v14 = vsel %vm102_vm0, %v205_v24, 0.0 }
 0x1aa   :  { %v369_v0 = vmul.f32 0.5, %v368_v27  ;;  %252 = vadd.xlane.f32.xlu1 %v251_v14  ;;  %v475_v43 = vmul.f32 %v4903_v3, %v455_v48  ;;  %v5051_v55 = vpop.f32.mrf.mxu2  ;;  %v241_v27 = vpop.xlane.xlu0 %240 }
 0x1ab   :  { %v665_v31 = vpop.f32.mrf.mxu0  ;;  %v714_v32 = vpop.f32.mrf.mxu1  ;;  %v265_v30 = vmul.f32 %v241_v27, %v4682_v20 }
 0x1ac   :  { %v370_v33 = vsub.f32 1.5, %v369_v0  ;;  %v803_v34 = vpack.c.bf16 %v714_v32, %v665_v31  ;;  %v495_v54 = vadd.f32 %v4915_v11, %v475_v43  ;;  %v244_v43 = vpop.xlane.xlu1 %243 }
 0x1ae   :  { %v371_v38 = vmul.f32 %v4231_v16, %v370_v33  ;;  %v881_v42 = vunpack.c.l.b16 %v803_v34  ;;  %v1105_v28 = vunpack.c.h.b16 %v803_v34  ;;  %v281_v33 = vadd.f32 1e-05, %v265_v30 }
 0x1b0   :  { %v375_v44 = vsel %vm374_vm1, %v4231_v16, %v371_v38  ;;  %v5043_v45 = vpack.c.b16 %v881_v42, %v880_v41  ;;  %v5066_v15 = vpack.c.b16 %v1105_v28, %v1104_v37  ;;  %4232 = vrsqrt.f32 %v281_v33 }
 0x1b1   :  { %v454_v46 = vmul.f32 %v375_v44, %v4925_v19  ;;  %vm402_vm2 = vweird.f32 %v281_v33 }
 0x1b2   :  { %v5056_v5 = vpop.f32.mrf.mxu2 }
 0x1b3   :  { %v668_v49 = vpop.f32.mrf.mxu0  ;;  %v717_v51 = vpop.f32.mrf.mxu1  ;;  %v474_v53 = vmul.f32 %v4903_v3, %v454_v46  ;;  %v266_v46 = vmul.f32 %v244_v43, %v4682_v20 }
 0x1b4   :  { %v805_v58 = vpack.c.bf16 %v717_v51, %v668_v49 }
 0x1b5   :  { %v494_v61 = vadd.f32 %v4915_v11, %v474_v53  ;;  %v282_v51 = vadd.f32 1e-05, %v266_v46 }
 0x1b6   :  { %v882_v40 = vunpack.c.l.b16 %v805_v58  ;;  %v1106_v0 = vunpack.c.h.b16 %v805_v58  ;;  %v4233_v42 = vpop.eup %4232 }
 0x1b7   :  { %v506_v29 = vpack.c.bf16 %v495_v54, %v494_v61  ;;  %v397_v44 = vmul.f32 %v4233_v42, %v281_v33  ;;  %4234 = vrsqrt.f32 %v282_v51  ;;  %vm403_vm3 = vweird.f32 %v4233_v42 }
 0x1b8   :  { %vm404_vm4 = vmor %vm402_vm2, %vm403_vm3  ;;  %vm412_vm10 = vweird.f32 %v282_v51 }
 0x1b9   :  { %3814 = vmatmul.msk.bf16.gmra.mxu0 %vm102_vm0, %v506_v29  ;;  %3822 = vmatmul.msk.bf16.vlgmr.msra.gmra.mxu3 %vm102_vm0, %v506_v29  ;;  %v398_v49 = vmul.f32 %v4233_v42, %v397_v44 }
 0x1ba   :  { %3830 = vmatmul.msk.bf16.gmra.mxu2 %vm102_vm0, %v506_v29  ;;  %v766_v8 = vpop.f32.mrf.mxu2 }
 0x1bb   :  { %v670_v63 = vpop.f32.mrf.mxu0  ;;  %v719_v19 = vpop.f32.mrf.mxu1  ;;  %v806_v16 = vpack.c.bf16 %v766_v8, %v766_v8  ;;  %v399_v61 = vmul.f32 0.5, %v398_v49 }
 0x1bc   :  { %v807_v1 = vpack.c.bf16 %v719_v19, %v670_v63 }
 0x1bd   :  { %v1442_v24 = vunpack.c.l.b16 %v806_v16  ;;  %v400_v58 = vsub.f32 1.5, %v399_v61  ;;  %v5085_v19 = vpop.eup %4234 }
 0x1be   :  { %v883_v35 = vunpack.c.l.b16 %v807_v1  ;;  %v1107_v14 = vunpack.c.h.b16 %v807_v1  ;;  %vm413_vm11 = vweird.f32 %v5085_v19 }
 0x1bf   :  { %vm414_vm13 = vmor %vm412_vm10, %vm413_vm11 }
 0x1c0   :  { %v5054_v56 = vpack.c.b16 %v883_v35, %v882_v40  ;;  %v5075_v32 = vpack.c.b16 %v1107_v14, %v1106_v0  ;;  %v401_v35 = vmul.f32 %v4233_v42, %v400_v58 }
 0x1c2   :  { %v768_v13 = vpop.f32.mrf.mxu2 }
 0x1c3   :  { %v673_v4 = vpop.f32.mrf.mxu0  ;;  %v722_v50 = vpop.f32.mrf.mxu1  ;;  %v808_v52 = vpack.c.bf16 %v768_v13, %v768_v13 }
 0x1c4   :  { %v809_v6 = vpack.c.bf16 %v722_v50, %v673_v4  ;;  %v407_v50 = vmul.f32 %v5085_v19, %v282_v51 }
 0x1c5   :  { %v1443_v23 = vunpack.c.l.b16 %v808_v52 }
 0x1c6   :  { %v884_v62 = vunpack.c.l.b16 %v809_v6  ;;  %v1108_v10 = vunpack.c.h.b16 %v809_v6 }
 0x1c7   :  { %v5070_v26 = vpack.c.b16 %v1443_v23, %v1442_v24 }
 0x1ca   :  { %v771_v21 = vpop.f32.mrf.mxu2 }
 0x1cb   :  { %v675_v59 = vpop.f32.mrf.mxu0  ;;  %v724_v7 = vpop.f32.mrf.mxu1  ;;  %v810_v48 = vpack.c.bf16 %v771_v21, %v771_v21 }
 0x1cc   :  { %v811_v47 = vpack.c.bf16 %v724_v7, %v675_v59  ;;  %v405_v7 = vsel %vm404_vm4, %v4233_v42, %v401_v35 }
 0x1cd   :  { %v1444_v38 = vunpack.c.l.b16 %v810_v48  ;;  %v457_v13 = vmul.f32 %v405_v7, %v4972_v2 }
 0x1ce   :  { %v885_v17 = vunpack.c.l.b16 %v811_v47  ;;  %v1109_v25 = vunpack.c.h.b16 %v811_v47  ;;  %v408_v47 = vmul.f32 %v5085_v19, %v407_v50 }
 0x1cf   :  { %v477_v27 = vmul.f32 %v4903_v3, %v457_v13 }
 0x1d0   :  { %v5058_v9 = vpack.c.b16 %v885_v17, %v884_v62  ;;  %v5062_v12 = vpack.c.b16 %v1109_v25, %v1108_v10  ;;  %v409_v28 = vmul.f32 0.5, %v408_v47 }
 0x1d2   :  { %896 = vrot.lane.b32.xlu0 %v5058_v9, %s4594_s2  ;;  %v773_v60 = vpop.f32.mrf.mxu2  ;;  %v410_v14 = vsub.f32 1.5, %v409_v28 }
 0x1d3   :  { %v812_v31 = vpack.c.bf16 %v773_v60, %v773_v60 }
 0x1d4   :  { %v411_v42 = vmul.f32 %v5085_v19, %v410_v14 }
 0x1d5   :  { %v1445_v34 = vunpack.c.l.b16 %v812_v31 }
 0x1d7   :  { %v5079_v41 = vpack.c.b16 %v1445_v34, %v1444_v38  ;;  %v497_v38 = vadd.f32 %v4915_v11, %v477_v27 }
 0x1da   :  { %1120 = vrot.lane.b32.xlu0 %v5062_v12, %s4594_s2 }
 0x1e2   :  { %1116 = vrot.lane.b32.xlu0 %v5066_v15, %s4594_s2 }
 0x1ea   :  { %1454 = vrot.lane.b32.xlu0 %v5070_v26, %s4594_s2 }
 0x1f2   :  { %1255 = vrot.lane.b32.xlu0 %v5075_v32, %s4595_s17 }
 0x1fa   :  { %1593 = vrot.lane.b32.xlu0 %v5079_v41, %s4595_s17 }
 0x205   :  { %v238_v53 = vpop.xlane.xlu2 %237 }
 0x206   :  { %v264_v54 = vmul.f32 %v238_v53, %v4682_v20 }
 0x208   :  { %v280_v29 = vadd.f32 1e-05, %v264_v54  ;;  %v415_v54 = vsel %vm414_vm13, %v5085_v19, %v411_v42 }
 0x209   :  { %v458_v35 = vmul.f32 %v415_v54, %v4994_v39 }
 0x20a   :  { %4236 = vrsqrt.f32 %v280_v29  ;;  %vm392_vm5 = vweird.f32 %v280_v29 }
 0x20d   :  { %v247_v63 = vpop.xlane.xlu2 %246 }
 0x20e   :  { %v267_v1 = vmul.f32 %v247_v63, %v4682_v20 }
 0x210   :  { %v4237_v40 = vpop.eup %4236  ;;  %v283_v4 = vadd.f32 1e-05, %v267_v1 }
 0x211   :  { %v387_v6 = vmul.f32 %v4237_v40, %v280_v29  ;;  %vm393_vm6 = vweird.f32 %v4237_v40 }
 0x212   :  { %4238 = vrsqrt.f32 %v283_v4  ;;  %vm394_vm7 = vmor %vm392_vm5, %vm393_vm6  ;;  %vm422_vm8 = vweird.f32 %v283_v4  ;;  %vm900_vm5 = vcmask 261120  }
 0x213   :  { %v388_v59 = vmul.f32 %v4237_v40, %v387_v6 }
 0x215   :  { %v389_v62 = vmul.f32 0.5, %v388_v59 }
 0x216   :  { %v250_v8 = vpop.xlane.xlu0 %249 }
 0x217   :  { %v390_v17 = vsub.f32 1.5, %v389_v62  ;;  %v268_v10 = vmul.f32 %v250_v8, %v4682_v20 }
 0x218   :  { %v4239_v25 = vpop.eup %4238 }
 0x219   :  { %v391_v37 = vmul.f32 %v4237_v40, %v390_v17  ;;  %v417_v52 = vmul.f32 %v4239_v25, %v283_v4  ;;  %v5092_v16 = vadd.f32 1e-05, %v268_v10  ;;  %vm423_vm9 = vweird.f32 %v4239_v25 }
 0x21a   :  { %vm5100_vm12 = vmor %vm422_vm8, %vm423_vm9 }
 0x21b   :  { %v395_v21 = vsel %vm394_vm7, %v4237_v40, %v391_v37  ;;  %v418_v23 = vmul.f32 %v4239_v25, %v417_v52  ;;  %4240 = vrsqrt.f32 %v5092_v16  ;;  %vm432_vm1 = vweird.f32 %v5092_v16 }
 0x21c   :  { %v456_v24 = vmul.f32 %v395_v21, %v5004_v22  ;;  %vm954_vm7 = vcmask 523264  }
 0x21d   :  { %v419_v60 = vmul.f32 0.5, %v418_v23  ;;  %v253_v0 = vpop.xlane.xlu1 %252 }
 0x21e   :  { %v678_v30 = vpop.f32.mrf.mxu0  ;;  %v476_v2 = vmul.f32 %v4903_v3, %v456_v24  ;;  %v269_v48 = vmul.f32 %v253_v0, %v4682_v20  ;;  %v727_v33 = vpop.f32.mrf.mxu1 }
 0x21f   :  { %v420_v31 = vsub.f32 1.5, %v419_v60  ;;  %v813_v29 = vpack.c.bf16 %v727_v33, %v678_v30 }
 0x220   :  { %v496_v22 = vadd.f32 %v4915_v11, %v476_v2  ;;  %v285_v44 = vadd.f32 1e-05, %v269_v48 }
 0x221   :  { %v421_v43 = vmul.f32 %v4239_v25, %v420_v31  ;;  %v4241_v46 = vpop.eup %4240  ;;  %v886_v6 = vunpack.c.l.b16 %v813_v29  ;;  %v1110_v59 = vunpack.c.h.b16 %v813_v29 }
 0x222   :  { %v507_v49 = vpack.c.bf16 %v497_v38, %v496_v22  ;;  %v427_v53 = vmul.f32 %v4241_v46, %v5092_v16  ;;  %4242 = vrsqrt.f32 %v285_v44  ;;  %vm442_vm14 = vweird.f32 %v285_v44 }
 0x223   :  { %v425_v51 = vsel %vm5100_vm12, %v4239_v25, %v421_v43  ;;  %vm433_vm2 = vweird.f32 %v4241_v46 }
 0x224   :  { %3815 = vmatmul.msk.bf16.gmra.mxu0 %vm102_vm0, %v507_v49  ;;  %3823 = vmatmul.msk.bf16.gmra.mxu3 %vm102_vm0, %v507_v49  ;;  %v428_v61 = vmul.f32 %v4241_v46, %v427_v53  ;;  %v459_v63 = vmul.f32 %v425_v51, %v5011_v36  ;;  %v478_v36 = vmul.f32 %v4903_v3, %v458_v35  ;;  %vm434_vm4 = vmor %vm432_vm1, %vm433_vm2 }
 0x225   :  { %3831 = vmatmul.msk.bf16.gmra.mxu2 %vm102_vm0, %v507_v49  ;;  %v776_v28 = vpop.f32.mrf.mxu2  ;;  %v802_v51 = vpack.c.bf16 %v5051_v55, %v5051_v55 }
 0x226   :  { %v680_v58 = vpop.f32.mrf.mxu0  ;;  %v729_v1 = vpop.f32.mrf.mxu1  ;;  %v429_v50 = vmul.f32 0.5, %v428_v61  ;;  %v479_v19 = vmul.f32 %v4903_v3, %v459_v63  ;;  %v498_v52 = vadd.f32 %v4915_v11, %v478_v36  ;;  %v814_v34 = vpack.c.bf16 %v776_v28, %v776_v28 }
 0x227   :  { %v815_v40 = vpack.c.bf16 %v729_v1, %v680_v58  ;;  %v1440_v61 = vunpack.c.l.b16 %v802_v51 }
 0x228   :  { %v4243_v4 = vpop.eup %4242  ;;  %v430_v10 = vsub.f32 1.5, %v429_v50  ;;  %v499_v39 = vadd.f32 %v4915_v11, %v479_v19  ;;  %v1446_v42 = vunpack.c.l.b16 %v814_v34 }
 0x229   :  { %v437_v7 = vmul.f32 %v4243_v4, %v285_v44  ;;  %v887_v47 = vunpack.c.l.b16 %v815_v40  ;;  %v1111_v62 = vunpack.c.h.b16 %v815_v40  ;;  %vm443_vm15 = vweird.f32 %v4243_v4 }
 0x22a   :  { %v431_v21 = vmul.f32 %v4241_v46, %v430_v10  ;;  %vm444_vm3 = vmor %vm442_vm14, %vm443_vm15  ;;  %v508_v24 = vpack.c.bf16 %v499_v39, %v498_v52 }
 0x22b   :  { %v438_v17 = vmul.f32 %v4243_v4, %v437_v7  ;;  %v5117_v8 = vpack.c.b16 %v1111_v62, %v1110_v59  ;;  %v5119_v25 = vpack.c.b16 %v887_v47, %v886_v6 }
 0x22c   :  { %v435_v14 = vsel %vm434_vm4, %v4241_v46, %v431_v21 }
 0x22d   :  { %v439_v13 = vmul.f32 0.5, %v438_v17  ;;  %1122 = vrot.lane.b32.xlu1 %v5117_v8, %s4594_s2  ;;  %898 = vrot.lane.b32.xlu2 %v5119_v25, %s4594_s2  ;;  %v460_v60 = vmul.f32 %v435_v14, %v5026_v57  ;;  %v778_v0 = vpop.f32.mrf.mxu2 }
 0x22e   :  { %v816_v31 = vpack.c.bf16 %v778_v0, %v778_v0 }
 0x22f   :  { %v440_v37 = vsub.f32 1.5, %v439_v13  ;;  %v480_v48 = vmul.f32 %v4903_v3, %v460_v60 }
 0x230   :  { %v1447_v57 = vunpack.c.l.b16 %v816_v31 }
 0x231   :  { %v441_v23 = vmul.f32 %v4243_v4, %v440_v37  ;;  %v500_v38 = vadd.f32 %v4915_v11, %v480_v48 }
 0x232   :  { %v5152_v44 = vpack.c.b16 %v1447_v57, %v1446_v42 }
 0x233   :  { %v445_v27 = vsel %vm444_vm3, %v4243_v4, %v441_v23 }
 0x234   :  { %3816 = vmatmul.msk.bf16.gmra.mxu0 %vm102_vm0, %v508_v24  ;;  %3824 = vmatmul.msk.bf16.gmra.mxu3 %vm102_vm0, %v508_v24  ;;  %v461_v16 = vmul.f32 %v445_v27, %v5036_v18 }
 0x235   :  { %3832 = vmatmul.msk.bf16.gmra.mxu2 %vm102_vm0, %v508_v24  ;;  %1118 = vrot.lane.b32.xlu1 %v5075_v32, %s4594_s2 }
 0x236   :  { %894 = vrot.lane.b32.xlu2 %v5054_v56, %s4594_s2  ;;  %v481_v30 = vmul.f32 %v4903_v3, %v461_v16  ;;  %v683_v2 = vpop.f32.mrf.mxu0  ;;  %v804_v3 = vpack.c.bf16 %v5056_v5, %v5056_v5 }
 0x238   :  { %v501_v18 = vadd.f32 %v4915_v11, %v481_v30  ;;  %v1441_v11 = vunpack.c.l.b16 %v804_v3 }
 0x23a   :  { %v509_v43 = vpack.c.bf16 %v501_v18, %v500_v38  ;;  %v5167_v58 = vpack.c.b16 %v1441_v11, %v1440_v61 }
 0x23c   :  { %v732_v33 = vpop.f32.mrf.mxu3 }
 0x23d   :  { %v5140_v22 = vpack.c.bf16 %v732_v33, %v683_v2  ;;  %1456 = vrot.lane.b32.xlu1 %v5079_v41, %s4594_s2 }
 0x23e   :  { %892 = vrot.lane.b32.xlu2 %v5043_v45, %s4594_s2  ;;  %v685_v46 = vpop.f32.mrf.mxu0 }
 0x23f   :  { %v1731_v5 = vunpack.c.l.b16 %v5140_v22 }
 0x244   :  { %3817 = vmatmul.msk.bf16.gmra.mxu0 %vm102_vm0, %v509_v43  ;;  %3825 = vmatmul.msk.bf16.gmra.mxu3 %vm102_vm0, %v509_v43  ;;  %v734_v49 = vpop.f32.mrf.mxu3  ;;  %v897_v1 = vpop.permute.xlu0 %896 }
 0x245   :  { %3833 = vmatmul.msk.bf16.gmra.mxu2 %vm102_vm0, %v509_v43  ;;  %v5157_v53 = vpack.c.bf16 %v734_v49, %v685_v46  ;;  %1037 = vrot.lane.b32.xlu1 %v5119_v25, %s4595_s17  ;;  %v920_v35 = vsel %vm900_vm5, %v897_v1, 0 }
 0x246   :  { %1458 = vrot.lane.b32.xlu2 %v5152_v44, %s4594_s2 }
 0x247   :  { %v1732_v54 = vunpack.c.l.b16 %v5157_v53 }
 0x249   :  { %v5165_v29 = vpack.c.b16 %v1732_v54, %v1731_v5 }
 0x24c   :  { %v1121_v17 = vpop.permute.xlu0 %1120 }
 0x24d   :  { %1035 = vrot.lane.b32.xlu1 %v5058_v9, %s4595_s17  ;;  %v1143_v28 = vsel %vm900_vm5, %v1121_v17, 0  ;;  %v833_v17 = vlaneseq }
 0x24e   :  { %1452 = vrot.lane.b32.xlu2 %v5167_v58, %s4594_s2 }
 0x254   :  { %v1117_v37 = vpop.permute.xlu0 %1116 }
 0x255   :  { %1033 = vrot.lane.b32.xlu1 %v5054_v56, %s4595_s17  ;;  %v1137_v48 = vsel %vm900_vm5, %v1117_v37, 0 }
 0x256   :  { %1257 = vrot.lane.b32.xlu2 %v5062_v12, %s4595_s17 }
 0x25c   :  { %v1455_v0 = vpop.permute.xlu0 %1454 }
 0x25d   :  { %1031 = vrot.lane.b32.xlu1 %v5043_v45, %s4595_s17  ;;  %v1476_v33 = vsel %vm900_vm5, %v1455_v0, 0 }
 0x25e   :  { %1253 = vrot.lane.b32.xlu2 %v5066_v15, %s4595_s17 }
 0x265   :  { %1259 = vrot.lane.b32.xlu1 %v5117_v8, %s4595_s17 }
 0x266   :  { %1591 = vrot.lane.b32.xlu2 %v5070_v26, %s4595_s17 }
 0x26d   :  { %1589 = vrot.lane.b32.xlu1 %v5167_v58, %s4595_s17 }
 0x275   :  { %1595 = vrot.lane.b32.xlu1 %v5152_v44, %s4595_s17 }
 0x287   :  { %v899_v55 = vpop.permute.xlu2 %898 }
 0x288   :  { %v923_v63 = vsel %vm900_vm5, %v899_v55, 0 }
 0x289   :  { %929 = vmatpush.bf16.xpose.msrb.mxu3 %v923_v63 }
 0x290   :  { %v895_v40 = vpop.permute.xlu2 %894 }
 0x291   :  { %930 = vmatpush.bf16.xpose.msrb.mxu3 %v920_v35  ;;  %v917_v50 = vsel %vm900_vm5, %v895_v40, 0 }
 0x298   :  { %v893_v4 = vpop.permute.xlu2 %892 }
 0x299   :  { %931 = vmatpush.bf16.xpose.msrb.mxu3 %v917_v50  ;;  %v914_v47 = vsel %vm900_vm5, %v893_v4, 0 }
 0x29f   :  { %v1123_v6 = vpop.permute.xlu1 %1122 }
 0x2a0   :  { %v1459_v59 = vpop.permute.xlu2 %1458  ;;  %v1146_v62 = vsel %vm900_vm5, %v1123_v6, 0 }
 0x2a1   :  { %v688_v7 = vpop.f32.mrf.mxu0  ;;  %v1482_v19 = vsel %vm900_vm5, %v1459_v59, 0  ;;  %932 = vmatpush.bf16.xpose.msrb.mxu3 %v914_v47  ;;  %1152 = vmatpush.bf16.xpose.msrb.mxu2 %v1146_v62 }
 0x2a2   :  { %1488 = vmatpush.bf16.xpose.msrb.mxu0 %v1482_v19 }
 0x2a7   :  { %v737_v36 = vpop.f32.mrf.mxu3  ;;  %v1119_v10 = vpop.permute.xlu1 %1118 }
 0x2a8   :  { %v5195_v13 = vpack.c.bf16 %v737_v36, %v688_v7  ;;  %3834 = vmatmul.msk.bf16.vlgmr.msrb.gmra.mxu3 %vm900_vm5, %v5043_v45  ;;  %v1140_v27 = vsel %vm900_vm5, %v1119_v10, 0  ;;  %v1453_v18 = vpop.permute.xlu2 %1452  ;;  %v5257_v36 = vshrl.u32 %v833_v17, 7  ;;  %v5259_v10 = vand.u32 127, %v833_v17 }
 0x2a9   :  { %v690_v39 = vpop.f32.mrf.mxu0  ;;  %1153 = vmatpush.bf16.xpose.msrb.mxu2 %v1143_v28  ;;  %v1473_v3 = vsel %vm900_vm5, %v1453_v18, 0 }
 0x2aa   :  { %v1733_v16 = vunpack.c.l.b16 %v5195_v13  ;;  %vm844_vm6 = vcmp.le.s32.totalorder %v5259_v10, %v5257_v36  ;;  %v835_v28 = vadd.s32 8, %v5257_v36 }
 0x2ac   :  { %vm845_vm8 = vcmp.le.s32.totalorder %v5259_v10, %v835_v28 }
 0x2af   :  { %v739_v52 = vpop.f32.mrf.mxu3  ;;  %v1457_v21 = vpop.permute.xlu1 %1456 }
 0x2b0   :  { %v5200_v23 = vpack.c.bf16 %v739_v52, %v690_v39  ;;  %v1479_v14 = vsel %vm900_vm5, %v1457_v21, 0  ;;  %v1258_v50 = vpop.permute.xlu2 %1257  ;;  %v4596_v39 = vmov -1e+30  }
 0x2b1   :  { %v693_v24 = vpop.f32.mrf.mxu0  ;;  %1154 = vmatpush.bf16.xpose.msrb.mxu2 %v1140_v27  ;;  %1489 = vmatpush.bf16.xpose.msrb.mxu0 %v1479_v14  ;;  %v5278_v27 = vsel %vm845_vm8, 0.0, %v4596_v39 }
 0x2b2   :  { %v1734_v60 = vunpack.c.l.b16 %v5200_v23 }
 0x2b4   :  { %v5206_v45 = vpack.c.b16 %v1734_v60, %v1733_v16 }
 0x2b7   :  { %v742_v30 = vpop.f32.mrf.mxu3  ;;  %v1038_v2 = vpop.permute.xlu1 %1037 }
 0x2b8   :  { %v5208_v31 = vpack.c.bf16 %v742_v30, %v693_v24  ;;  %3835 = vmatmul.msk.bf16.gmra.mxu3 %vm900_vm5, %v5054_v56  ;;  %v1254_v59 = vpop.permute.xlu2 %1253 }
 0x2b9   :  { %1059 = vmatpush.bf16.msra.mxu3 %v1038_v2  ;;  %1155 = vmatpush.bf16.xpose.msrb.mxu2 %v1137_v48  ;;  %v695_v34 = vpop.f32.mrf.mxu0 }
 0x2ba   :  { %1490 = vmatpush.bf16.xpose.msrb.mxu0 %v1476_v33  ;;  %v1735_v43 = vunpack.c.l.b16 %v5208_v31 }
 0x2bf   :  { %v744_v57 = vpop.f32.mrf.mxu3  ;;  %v1036_v38 = vpop.permute.xlu1 %1035 }
 0x2c0   :  { %v5214_v42 = vpack.c.bf16 %v744_v57, %v695_v34  ;;  %1060 = vmatpush.bf16.msra.mxu3 %v1036_v38  ;;  %3842 = vmatmul.msk.bf16.vlgmr.msrb.gmra.mxu2 %vm900_vm5, %v5066_v15  ;;  %v1592_v47 = vpop.permute.xlu2 %1591  ;;  %v836_v57 = vadd.s32 16, %v5257_v36 }
 0x2c1   :  { %v698_v49 = vpop.f32.mrf.mxu0 }
 0x2c2   :  { %v1736_v56 = vunpack.c.l.b16 %v5214_v42  ;;  %1491 = vmatpush.bf16.xpose.msrb.mxu0 %v1473_v3  ;;  %vm846_vm9 = vcmp.le.s32.totalorder %v5259_v10, %v836_v57 }
 0x2c4   :  { %v5221_v46 = vpack.c.b16 %v1736_v56, %v1735_v43 }
 0x2c7   :  { %v747_v51 = vpop.f32.mrf.mxu3  ;;  %v1034_v11 = vpop.permute.xlu1 %1033 }
 0x2c8   :  { %3836 = vmatmul.msk.bf16.gmra.mxu3 %vm900_vm5, %v5058_v9  ;;  %v829_v15 = vpack.c.bf16 %v747_v51, %v698_v49 }
 0x2c9   :  { %1061 = vmatpush.bf16.msra.mxu3 %v1034_v11  ;;  %3874 = vmatmul.msk.bf16.vlgmr.msrb.gmra.mxu0 %vm900_vm5, %v5167_v58  ;;  %v700_v5 = vpop.f32.mrf.mxu0 }
 0x2ca   :  { %v1737_v63 = vunpack.c.l.b16 %v829_v15  ;;  %v1959_v1 = vunpack.c.h.b16 %v829_v15  ;;  %v5310_v15 = vsel %vm846_vm9, 0.0, %v4596_v39 }
 0x2cf   :  { %v749_v54 = vpop.f32.mrf.mxu3  ;;  %v1032_v61 = vpop.permute.xlu1 %1031 }
 0x2d0   :  { %v831_v55 = vpack.c.bf16 %v749_v54, %v700_v5  ;;  %1062 = vmatpush.bf16.msra.mxu3 %v1032_v61  ;;  %3843 = vmatmul.msk.bf16.gmra.mxu2 %vm900_vm5, %v5075_v32  ;;  %v1256_v32 = vpop.permute.xlu0 %1255  ;;  %v837_v54 = vadd.s32 24, %v5257_v36 }
 0x2d2   :  { %v1738_v40 = vunpack.c.l.b16 %v831_v55  ;;  %v1960_v35 = vunpack.c.h.b16 %v831_v55  ;;  %vm847_vm10 = vcmp.le.s32.totalorder %v5259_v10, %v837_v54  ;;  %v1953_v54 = vunpack.c.h.b16 %v5140_v22 }
 0x2d4   :  { %v5229_v4 = vpack.c.b16 %v1960_v35, %v1959_v1  ;;  %v5231_v9 = vpack.c.b16 %v1738_v40, %v1737_v63  ;;  %v5325_v35 = vsel %vm847_vm10, 0.0, %v4596_v39 }
 0x2d6   :  { %1971 = vrot.lane.b32.xlu1 %v5229_v4, %s4594_s2 }
 0x2d7   :  { %v1260_v58 = vpop.permute.xlu1 %1259 }
 0x2d8   :  { %3837 = vmatmul.msk.bf16.gmra.mxu3 %vm900_vm5, %v5119_v25  ;;  %1281 = vmatpush.bf16.msrb.mxu1 %v1260_v58  ;;  %v1594_v25 = vpop.permute.xlu0 %1593 }
 0x2d9   :  { %3875 = vmatmul.msk.bf16.gmra.mxu0 %vm900_vm5, %v5070_v26  ;;  %v5245_v26 = vpop.f32.mrf.mxu2 }
 0x2dc   :  { %1282 = vmatpush.bf16.msrb.mxu1 %v1258_v50 }
 0x2df   :  { %v1590_v6 = vpop.permute.xlu1 %1589 }
 0x2e0   :  { %3844 = vmatmul.msk.bf16.gmra.mxu2 %vm900_vm5, %v5062_v12  ;;  %1283 = vmatpush.bf16.msrb.mxu1 %v1256_v32 }
 0x2e1   :  { %v5249_v12 = vpop.f32.mrf.mxu2 }
 0x2e4   :  { %1284 = vmatpush.bf16.msrb.mxu1 %v1254_v59 }
 0x2e7   :  { %v1596_v7 = vpop.permute.xlu1 %1595 }
 0x2e8   :  { %1617 = vmatpush.bf16.msra.mxu1 %v1596_v7 }
 0x2e9   :  { %3876 = vmatmul.msk.bf16.gmra.mxu0 %vm900_vm5, %v5079_v41  ;;  %v5251_v62 = vpop.f32.mrf.mxu2 }
 0x2ec   :  { %1618 = vmatpush.bf16.msra.mxu1 %v1594_v25 }
 0x2f0   :  { %3845 = vmatmul.msk.bf16.gmra.mxu2 %vm900_vm5, %v5117_v8  ;;  %1619 = vmatpush.bf16.msra.mxu1 %v1592_v47  ;;  %v838_v47 = vadd.s32 32, %v5257_v36 }
 0x2f1   :  { %v5253_v19 = vpop.f32.mrf.mxu2 }
 0x2f2   :  { %vm848_vm11 = vcmp.le.s32.totalorder %v5259_v10, %v838_v47 }
 0x2f4   :  { %1620 = vmatpush.bf16.msra.mxu1 %v1590_v6 }
 0x2f9   :  { %3877 = vmatmul.msk.bf16.gmra.mxu0 %vm900_vm5, %v5152_v44  ;;  %v5255_v41 = vpop.f32.mrf.mxu2  ;;  %v5266_v44 = vsel %vm844_vm6, 0.0, %v4596_v39 }
 0x301   :  { %v5263_v8 = vpop.f32.mrf.mxu2 }
 0x309   :  { %v5275_v24 = vpop.f32.mrf.mxu2 }
 0x311   :  { %v5285_v0 = vpop.f32.mrf.mxu2 }
 0x32b   :  { %v934_v37 = vpop.f32.mrf.mxu3 }
 0x32c   :  { %v5270_v52 = vadd.f32 %v934_v37, %v5266_v44 }
 0x32e   :  { %v955_v21 = vsel %vm954_vm7, %v5270_v52, -inf }
 0x32f   :  { %956 = vmax.xlane.f32.xlu0 %v955_v21 }
 0x333   :  { %v936_v14 = vpop.f32.mrf.mxu3 }
 0x334   :  { %v5281_v16 = vadd.f32 %v936_v14, %v5278_v27 }
 0x336   :  { %v958_v60 = vsel %vm954_vm7, %v5281_v16, -inf }
 0x337   :  { %959 = vmax.xlane.f32.xlu2 %v958_v60  ;;  %v839_v60 = vadd.s32 40, %v5257_v36 }
 0x339   :  { %vm849_vm12 = vcmp.le.s32.totalorder %v5259_v10, %v839_v60 }
 0x33b   :  { %v939_v49 = vpop.f32.mrf.mxu3 }
 0x33c   :  { %v5314_v61 = vadd.f32 %v939_v49, %v5310_v15  ;;  %v5365_v49 = vsel %vm849_vm12, 0.0, %v4596_v39 }
 0x33e   :  { %v961_v40 = vsel %vm954_vm7, %v5314_v61, -inf }
 0x343   :  { %v1157_v30 = vpop.f32.mrf.mxu2  ;;  %v941_v58 = vpop.f32.mrf.mxu3 }
 0x344   :  { %v5288_v2 = vadd.f32 %v1157_v30, %v5266_v44  ;;  %v5342_v28 = vadd.f32 %v941_v58, %v5325_v35  ;;  %v5349_v30 = vsel %vm848_vm11, 0.0, %v4596_v39 }
 0x346   :  { %v1493_v48 = vpop.f32.mrf.mxu0  ;;  %v1177_v33 = vsel %vm954_vm7, %v5288_v2, -inf }
 0x347   :  { %v5293_v34 = vadd.f32 %v1493_v48, %v5266_v44  ;;  %1178 = vmax.xlane.f32.xlu1 %v1177_v33  ;;  %v964_v48 = vsel %vm954_vm7, %v5342_v28, -inf }
 0x349   :  { %v1513_v18 = vsel %vm954_vm7, %v5293_v34, -inf }
 0x34a   :  { %1514 = vmax.xlane.f32.xlu0 %v1513_v18  ;;  %v1956_v18 = vunpack.c.h.b16 %v5200_v23 }
 0x34b   :  { %v1159_v38 = vpop.f32.mrf.mxu2  ;;  %v944_v37 = vpop.f32.mrf.mxu3 }
 0x34c   :  { %v5299_v43 = vadd.f32 %v1159_v38, %v5278_v27  ;;  %v5359_v57 = vadd.f32 %v944_v37, %v5349_v30  ;;  %v1955_v38 = vunpack.c.h.b16 %v5195_v13  ;;  %v1954_v13 = vunpack.c.h.b16 %v5157_v53 }
 0x34e   :  { %v1495_v56 = vpop.f32.mrf.mxu0  ;;  %v1180_v11 = vsel %vm954_vm7, %v5299_v43, -inf  ;;  %v967_v23 = vsel %vm954_vm7, %v5359_v57, -inf  ;;  %v5381_v58 = vpack.c.b16 %v1954_v13, %v1953_v54 }
 0x34f   :  { %v5303_v3 = vadd.f32 %v1495_v56, %v5278_v27 }
 0x351   :  { %v1516_v51 = vsel %vm954_vm7, %v5303_v3, -inf }
 0x352   :  { %1517 = vmax.xlane.f32.xlu2 %v1516_v51  ;;  %1181 = vmax.xlane.f32.xlu0 %v1180_v11  ;;  %v5367_v11 = vpack.c.b16 %v1956_v18, %v1955_v38 }
 0x353   :  { %v1162_v5 = vpop.f32.mrf.mxu2  ;;  %v946_v51 = vpop.f32.mrf.mxu3 }
 0x354   :  { %v5317_v55 = vadd.f32 %v1162_v5, %v5310_v15  ;;  %v5372_v5 = vadd.f32 %v946_v51, %v5365_v49 }
 0x356   :  { %v1498_v63 = vpop.f32.mrf.mxu0  ;;  %v1183_v1 = vsel %vm954_vm7, %v5317_v55, -inf }
 0x357   :  { %v5331_v6 = vadd.f32 %v1498_v63, %v5310_v15  ;;  %v970_v63 = vsel %vm954_vm7, %v5372_v5, -inf }
 0x359   :  { %v1519_v25 = vsel %vm954_vm7, %v5331_v6, -inf }
 0x35a   :  { %1184 = vmax.xlane.f32.xlu2 %v1183_v1  ;;  %962 = vmax.xlane.f32.xlu0 %v961_v40  ;;  %v840_v40 = vadd.s32 48, %v5257_v36 }
 0x35b   :  { %v1164_v50 = vpop.f32.mrf.mxu2 }
 0x35c   :  { %v5328_v32 = vadd.f32 %v1164_v50, %v5325_v35  ;;  %vm850_vm13 = vcmp.le.s32.totalorder %v5259_v10, %v840_v40 }
 0x35d   :  { %v5392_v53 = vsel %vm850_vm13, 0.0, %v4596_v39 }
 0x35e   :  { %v1186_v59 = vsel %vm954_vm7, %v5328_v32, -inf  ;;  %v1500_v7 = vpop.f32.mrf.mxu0 }
 0x35f   :  { %1187 = vmax.xlane.f32.xlu1 %v1186_v59  ;;  %v5339_v17 = vadd.f32 %v1500_v7, %v5325_v35  ;;  %v949_v59 = vpop.f32.mrf.mxu3  ;;  %v1958_v7 = vunpack.c.h.b16 %v5214_v42 }
 0x360   :  { %v5397_v47 = vadd.f32 %v949_v59, %v5392_v53 }
 0x361   :  { %v1522_v21 = vsel %vm954_vm7, %v5339_v17, -inf }
 0x362   :  { %1520 = vmax.xlane.f32.xlu0 %v1519_v25  ;;  %v1957_v25 = vunpack.c.h.b16 %v5208_v31 }
 0x363   :  { %v1167_v14 = vpop.f32.mrf.mxu2 }
 0x364   :  { %v5354_v33 = vadd.f32 %v1167_v14, %v5349_v30  ;;  %v5399_v37 = vpack.c.b16 %v1958_v7, %v1957_v25 }
 0x366   :  { %v1189_v56 = vsel %vm954_vm7, %v5354_v33, -inf  ;;  %v1503_v31 = vpop.f32.mrf.mxu0 }
 0x367   :  { %1523 = vmax.xlane.f32.xlu1 %v1522_v21  ;;  %v973_v21 = vsel %vm954_vm7, %v5397_v47, -inf  ;;  %v5412_v18 = vadd.f32 %v1503_v31, %v5349_v30 }
 0x36a   :  { %965 = vmax.xlane.f32.xlu0 %v964_v48  ;;  %v841_v48 = vadd.s32 56, %v5257_v36 }
 0x36b   :  { %v1169_v1 = vpop.f32.mrf.mxu2 }
 0x36c   :  { %v5384_v50 = vadd.f32 %v1169_v1, %v5365_v49  ;;  %vm851_vm14 = vcmp.le.s32.totalorder %v5259_v10, %v841_v48 }
 0x36d   :  { %v5418_v51 = vsel %vm851_vm14, 0.0, %v4596_v39 }
 0x36e   :  { %v1192_v22 = vsel %vm954_vm7, %v5384_v50, -inf  ;;  %v1505_v38 = vpop.f32.mrf.mxu0 }
 0x36f   :  { %1190 = vmax.xlane.f32.xlu1 %v1189_v56  ;;  %v1525_v56 = vsel %vm954_vm7, %v5412_v18, -inf  ;;  %v5431_v39 = vadd.f32 %v1505_v38, %v5365_v49  ;;  %v1972_v38 = vpop.permute.xlu1 %1971 }
 0x371   :  { %v1528_v25 = vsel %vm954_vm7, %v5431_v39, -inf }
 0x372   :  { %1967 = vrot.lane.b32.xlu2 %v5367_v11, %s4594_s2  ;;  %968 = vmax.xlane.f32.xlu0 %v967_v23  ;;  %v951_v23 = vpop.f32.mrf.mxu3 }
 0x373   :  { %v1172_v14 = vpop.f32.mrf.mxu2  ;;  %v5421_v54 = vadd.f32 %v951_v23, %v5418_v51 }
 0x374   :  { %v5406_v60 = vadd.f32 %v1172_v14, %v5392_v53 }
 0x375   :  { %v976_v40 = vsel %vm954_vm7, %v5421_v54, -inf }
 0x376   :  { %v1195_v42 = vsel %vm954_vm7, %v5406_v60, -inf }
 0x377   :  { %971 = vmax.xlane.f32.xlu1 %v970_v63  ;;  %v5426_v63 = vpop.f32.mrf.mxu0 }
 0x37a   :  { %1965 = vrot.lane.b32.xlu2 %v5381_v58, %s4594_s2 }
 0x37f   :  { %1193 = vmax.xlane.f32.xlu1 %v1192_v22  ;;  %v1174_v22 = vpop.f32.mrf.mxu2  ;;  %v1510_v14 = vpop.f32.mrf.mxu0 }
 0x386   :  { %1969 = vrot.lane.b32.xlu0 %v5399_v37, %s4594_s2 }
 0x387   :  { %974 = vmax.xlane.f32.xlu1 %v973_v21 }
 0x38f   :  { %1196 = vmax.xlane.f32.xlu1 %v1195_v42 }
 0x3a2   :  { %v957_v13 = vpop.xlane.xlu0 %956 }
 0x3a3   :  { %1526 = vmax.xlane.f32.xlu2 %v1525_v56  ;;  %v979_v36 = vsub.f32 %v5270_v52, %v957_v13  ;;  %v5435_v52 = vadd.f32 %v1174_v22, %v5418_v51  ;;  %v832_v56 = vpack.c.bf16 %v5285_v0, %v5285_v0  ;;  %v830_v13 = vpack.c.bf16 %v5275_v24, %v5275_v24 }
 0x3a5   :  { %v987_v10 = vmul.f32 1.442695, %v979_v36  ;;  %v1198_v21 = vsel %vm954_vm7, %v5435_v52, -inf }
 0x3a7   :  { %4244 = vpow2.f32 %v987_v10  ;;  %v2272_v10 = vunpack.c.l.b16 %v832_v56 }
 0x3a8   :  { %1749 = vrot.lane.b32.xlu1 %v5231_v9, %s4594_s2 }
 0x3aa   :  { %v960_v1 = vpop.xlane.xlu2 %959 }
 0x3ab   :  { %v980_v59 = vsub.f32 %v5281_v16, %v960_v1  ;;  %977 = vmax.xlane.f32.xlu2 %v976_v40  ;;  %v5444_v16 = vadd.f32 %v1510_v14, %v5418_v51  ;;  %v2271_v40 = vunpack.c.l.b16 %v830_v13 }
 0x3ad   :  { %v989_v7 = vmul.f32 1.442695, %v980_v59  ;;  %v4245_v42 = vpop.eup %4244  ;;  %v1534_v23 = vsel %vm954_vm7, %v5444_v16, -inf  ;;  %v5457_v59 = vpack.c.b16 %v2272_v10, %v2271_v40 }
 0x3ae   :  { %v1003_v10 = vsel %vm954_vm7, %v4245_v42, 0.0 }
 0x3af   :  { %4246 = vpow2.f32 %v989_v7 }
 0x3b0   :  { %1529 = vmax.xlane.f32.xlu0 %v1528_v25 }
 0x3b3   :  { %1199 = vmax.xlane.f32.xlu2 %v1198_v21 }
 0x3b5   :  { %v5441_v31 = vpop.eup %4246 }
 0x3b6   :  { %v1027_v48 = vpack.c.bf16 %v5441_v31, %v4245_v42 }
 0x3b8   :  { %3838 = vmatmul.msk.bf16.vlgmr.msra.gmra.mxu3 %vm954_vm7, %v1027_v48 }
 0x3ba   :  { %v1179_v1 = vpop.xlane.xlu1 %1178 }
 0x3bb   :  { %1535 = vmax.xlane.f32.xlu2 %v1534_v23  ;;  %v1201_v22 = vsub.f32 %v5288_v2, %v1179_v1 }
 0x3bd   :  { %v5454_v36 = vpop.xlane.xlu0 %1514  ;;  %v1209_v7 = vmul.f32 1.442695, %v1201_v22 }
 0x3bf   :  { %4248 = vpow2.f32 %v1209_v7 }
 0x3c4   :  { %2283 = vrot.lane.b32.xlu0 %v5457_v59, %s4594_s2 }
 0x3c5   :  { %v1182_v0 = vpop.xlane.xlu0 %1181  ;;  %v5461_v25 = vpop.xlane.xlu2 %1517 }
 0x3c6   :  { %v1202_v21 = vsub.f32 %v5299_v43, %v1182_v0  ;;  %v5465_v56 = vpop.eup %4248 }
 0x3c8   :  { %v1211_v14 = vmul.f32 1.442695, %v1202_v21 }
 0x3ca   :  { %4250 = vpow2.f32 %v1211_v14 }
 0x3cd   :  { %v963_v24 = vpop.xlane.xlu0 %962  ;;  %v1185_v2 = vpop.xlane.xlu2 %1184 }
 0x3ce   :  { %v981_v48 = vsub.f32 %v5314_v61, %v963_v24  ;;  %v1203_v43 = vsub.f32 %v5317_v55, %v1185_v2  ;;  %v1995_v61 = vsel %vm900_vm5, %v1972_v38, 0 }
 0x3d0   :  { %v991_v23 = vmul.f32 1.442695, %v981_v48  ;;  %v5467_v13 = vpop.eup %4250  ;;  %v1213_v21 = vmul.f32 1.442695, %v1203_v43  ;;  %v5491_v43 = vadd.f32 %v5426_v63, %v5392_v53 }
 0x3d1   :  { %v1249_v40 = vpack.c.bf16 %v5467_v13, %v5465_v56 }
 0x3d2   :  { %v1188_v1 = vpop.xlane.xlu1 %1187  ;;  %1004 = vadd.xlane.f32.xlu1 %v1003_v10  ;;  %4252 = vpow2.f32 %v991_v23 }
 0x3d3   :  { %v1204_v22 = vsub.f32 %v5328_v32, %v1188_v1  ;;  %3846 = vmatmul.msk.bf16.vlgmr.msrb.gmra.mxu1 %vm954_vm7, %v1249_v40 }
 0x3d4   :  { %2001 = vmatpush.bf16.xpose.msrb.mxu1 %v1995_v61 }
 0x3d5   :  { %v1215_v0 = vmul.f32 1.442695, %v1204_v22  ;;  %v5476_v7 = vpop.xlane.xlu0 %1520 }
 0x3d7   :  { %4254 = vpow2.f32 %v1215_v0 }
 0x3d8   :  { %v4253_v42 = vpop.eup %4252  ;;  %4256 = vpow2.f32 %v1213_v21 }
 0x3d9   :  { %v1009_v14 = vsel %vm954_vm7, %v4253_v42, 0.0 }
 0x3da   :  { %v5479_v24 = vpop.xlane.xlu1 %1523  ;;  %1010 = vadd.xlane.f32.xlu2 %v1009_v14 }
 0x3dd   :  { %v966_v55 = vpop.xlane.xlu0 %965  ;;  %v5482_v48 = vpop.eup %4254 }
 0x3de   :  { %v982_v32 = vsub.f32 %v5342_v28, %v966_v55  ;;  %v5484_v2 = vpop.eup %4256  ;;  %v1531_v55 = vsel %vm954_vm7, %v5491_v43, -inf }
 0x3df   :  { %v1250_v10 = vpack.c.bf16 %v5482_v48, %v5484_v2 }
 0x3e0   :  { %v993_v38 = vmul.f32 1.442695, %v982_v32 }
 0x3e2   :  { %4258 = vpow2.f32 %v993_v38  ;;  %v1191_v23 = vpop.xlane.xlu1 %1190 }
 0x3e3   :  { %3847 = vmatmul.msk.bf16.gmra.mxu1 %vm954_vm7, %v1250_v10  ;;  %v1205_v32 = vsub.f32 %v5354_v33, %v1191_v23  ;;  %v1006_v10 = vsel %vm954_vm7, %v5441_v31, 0.0 }
 0x3e5   :  { %v969_v1 = vpop.xlane.xlu0 %968  ;;  %v1217_v63 = vmul.f32 1.442695, %v1205_v32 }
 0x3e6   :  { %v983_v61 = vsub.f32 %v5359_v57, %v969_v1 }
 0x3e8   :  { %v4259_v40 = vpop.eup %4258  ;;  %v995_v38 = vmul.f32 1.442695, %v983_v61  ;;  %v818_v61 = vpack.c.bf16 %v5245_v26, %v5245_v26 }
 0x3e9   :  { %v1012_v28 = vsel %vm954_vm7, %v4259_v40, 0.0  ;;  %v1028_v22 = vpack.c.bf16 %v4259_v40, %v4253_v42  ;;  %v4141_v40 = vld [vmem:[%s6658_s4 + $0x8] sm:$0xff] }
 0x3ea   :  { %1013 = vadd.xlane.f32.xlu1 %v1012_v28  ;;  %v972_v0 = vpop.xlane.xlu1 %971  ;;  %v820_v28 = vpack.c.bf16 %v5249_v12, %v5249_v12  ;;  %1409 = vmatpush.bf16.msrb.mxu3 %v4141_v40  ;;  %v4140_v12 = vld [vmem:[%s6658_s4] sm:$0xff] }
 0x3eb   :  { %v984_v21 = vsub.f32 %v5372_v5, %v972_v0  ;;  %3839 = vmatmul.msk.bf16.gmra.mxu3 %vm954_vm7, %v1028_v22  ;;  %v822_v0 = vpack.c.bf16 %v5251_v62, %v5251_v62 }
 0x3ed   :  { %v997_v14 = vmul.f32 1.442695, %v984_v21  ;;  %v1968_v21 = vpop.permute.xlu2 %1967 }
 0x3ee   :  { %1532 = vmax.xlane.f32.xlu0 %v1531_v55  ;;  %v2266_v55 = vunpack.c.l.b16 %v820_v28  ;;  %1410 = vmatpush.bf16.msrb.mxu3 %v4140_v12  ;;  %v826_v28 = vpack.c.bf16 %v5255_v41, %v5255_v41 }
 0x3ef   :  { %4260 = vpow2.f32 %v997_v14 }
 0x3f0   :  { %4262 = vpow2.f32 %v995_v38  ;;  %v2265_v38 = vunpack.c.l.b16 %v818_v61 }
 0x3f1   :  { %4264 = vpow2.f32 %v1217_v63  ;;  %v2267_v63 = vunpack.c.l.b16 %v822_v0 }
 0x3f2   :  { %v1194_v42 = vpop.xlane.xlu1 %1193  ;;  %1747 = vrot.lane.b32.xlu2 %v5221_v46, %s4594_s2 }
 0x3f3   :  { %v1206_v57 = vsub.f32 %v5384_v50, %v1194_v42  ;;  %v824_v50 = vpack.c.bf16 %v5253_v19, %v5253_v19  ;;  %v1989_v42 = vsel %vm900_vm5, %v1968_v21, 0 }
 0x3f5   :  { %v1219_v5 = vmul.f32 1.442695, %v1206_v57  ;;  %v5505_v1 = vpop.eup %4260  ;;  %v2268_v32 = vunpack.c.l.b16 %v824_v50  ;;  %v5535_v57 = vpack.c.b16 %v2266_v55, %v2265_v38 }
 0x3f6   :  { %1007 = vadd.xlane.f32.xlu0 %v1006_v10  ;;  %v4263_v33 = vpop.eup %4262  ;;  %v1966_v10 = vpop.permute.xlu2 %1965 }
 0x3f7   :  { %4266 = vpow2.f32 %v1219_v5  ;;  %v1029_v31 = vpack.c.bf16 %v5505_v1, %v4263_v33  ;;  %v5526_v19 = vpop.eup %4264  ;;  %v1015_v26 = vsel %vm954_vm7, %v4263_v33, 0.0  ;;  %v5537_v5 = vpack.c.b16 %v2268_v32, %v2267_v63 }
 0x3f8   :  { %v1970_v23 = vpop.permute.xlu0 %1969  ;;  %v828_v33 = vpack.c.bf16 %v5263_v8, %v5263_v8  ;;  %v1986_v40 = vsel %vm900_vm5, %v1966_v10, 0 }
 0x3f9   :  { %v1992_v22 = vsel %vm900_vm5, %v1970_v23, 0 }
 0x3fa   :  { %2002 = vmatpush.bf16.xpose.msrb.mxu1 %v1992_v22  ;;  %1745 = vrot.lane.b32.xlu2 %v5206_v45, %s4594_s2  ;;  %v975_v23 = vpop.xlane.xlu1 %974  ;;  %v2270_v50 = vunpack.c.l.b16 %v828_v33  ;;  %v2269_v22 = vunpack.c.l.b16 %v826_v28 }
 0x3fb   :  { %3840 = vmatmul.msk.bf16.gmra.mxu3 %vm954_vm7, %v1029_v31  ;;  %v985_v12 = vsub.f32 %v5397_v47, %v975_v23 }
 0x3fc   :  { %v5548_v31 = vpack.c.b16 %v2270_v50, %v2269_v22  ;;  %v1537_v22 = vsub.f32 %v5293_v34, %v5454_v36  ;;  %v1237_v34 = vsel %vm954_vm7, %v5526_v19, 0.0 }
 0x3fd   :  { %v5528_v14 = vpop.eup %4266  ;;  %v999_v55 = vmul.f32 1.442695, %v985_v12 }
 0x3fe   :  { %1016 = vadd.xlane.f32.xlu0 %v1015_v26  ;;  %v1251_v62 = vpack.c.bf16 %v5528_v14, %v5526_v19 }
 0x3ff   :  { %4268 = vpow2.f32 %v999_v55  ;;  %v1540_v55 = vsub.f32 %v5339_v17, %v5479_v24 }
 0x400   :  { %3848 = vmatmul.msk.bf16.gmra.mxu1 %vm954_vm7, %v1251_v62 }
 0x402   :  { %2003 = vmatpush.bf16.xpose.msrb.mxu1 %v1989_v42  ;;  %2277 = vrot.lane.b32.xlu2 %v5535_v57, %s4594_s2  ;;  %v1197_v61 = vpop.xlane.xlu1 %1196 }
 0x403   :  { %2279 = vrot.lane.b32.xlu1 %v5537_v5, %s4594_s2  ;;  %v1207_v62 = vsub.f32 %v5406_v60, %v1197_v61 }
 0x405   :  { %v1221_v38 = vmul.f32 1.442695, %v1207_v62  ;;  %v4269_v10 = vpop.eup %4268  ;;  %v1551_v62 = vmul.f32 1.442695, %v1540_v55 }
 0x40a   :  { %2004 = vmatpush.bf16.xpose.msrb.mxu1 %v1986_v40  ;;  %v1021_v40 = vsel %vm954_vm7, %v4269_v10, 0.0 }
 0x412   :  { %2281 = vrot.lane.b32.xlu0 %v5548_v31, %s4594_s2 }
 0x416   :  { %v5552_v0 = vpop.xlane.xlu2 %1526 }
 0x41a   :  { %v1750_v8 = vpop.permute.xlu1 %1749 }
 0x41b   :  { %v1773_v21 = vsel %vm900_vm5, %v1750_v8, 0  ;;  %v1545_v8 = vmul.f32 1.442695, %v1537_v22 }
 0x41c   :  { %1779 = vmatpush.bf16.xpose.msra.mxu3 %v1773_v21 }
 0x41e   :  { %v978_v32 = vpop.xlane.xlu2 %977 }
 0x41f   :  { %v986_v41 = vsub.f32 %v5421_v54, %v978_v32  ;;  %v1018_v54 = vsel %vm954_vm7, %v5505_v1, 0.0  ;;  %v1228_v1 = vsel %vm954_vm7, %v5467_v13, 0.0 }
 0x421   :  { %v1001_v26 = vmul.f32 1.442695, %v986_v41  ;;  %v1539_v41 = vsub.f32 %v5331_v6, %v5476_v7  ;;  %v1541_v6 = vsub.f32 %v5412_v18, %v5552_v0  ;;  %v1240_v7 = vsel %vm954_vm7, %v5528_v14, 0.0 }
 0x423   :  { %4270 = vpow2.f32 %v1001_v26  ;;  %v1530_v21 = vpop.xlane.xlu0 %1529  ;;  %v1234_v26 = vsel %vm954_vm7, %v5482_v48, 0.0  ;;  %v1549_v17 = vmul.f32 1.442695, %v1539_v41 }
 0x424   :  { %4272 = vpow2.f32 %v1221_v38 }
 0x426   :  { %v1200_v63 = vpop.xlane.xlu2 %1199 }
 0x427   :  { %v1208_v42 = vsub.f32 %v5435_v52, %v1200_v63  ;;  %v1538_v52 = vsub.f32 %v5303_v3, %v5461_v25  ;;  %v1225_v3 = vsel %vm954_vm7, %v5465_v56, 0.0 }
 0x429   :  { %v4271_v33 = vpop.eup %4270  ;;  %v1223_v47 = vmul.f32 1.442695, %v1208_v42  ;;  %v1547_v12 = vmul.f32 1.442695, %v1538_v52  ;;  %v1553_v42 = vmul.f32 1.442695, %v1541_v6 }
 0x42a   :  { %v1030_v23 = vpack.c.bf16 %v4271_v33, %v4269_v10  ;;  %v4273_v60 = vpop.eup %4272  ;;  %v1024_v61 = vsel %vm954_vm7, %v4271_v33, 0.0  ;;  %v1542_v33 = vsub.f32 %v5431_v39, %v1530_v21 }
 0x42b   :  { %4274 = vpow2.f32 %v1223_v47  ;;  %1022 = vadd.xlane.f32.xlu2 %v1021_v40  ;;  %v1243_v19 = vsel %vm954_vm7, %v4273_v60, 0.0 }
 0x42c   :  { %3841 = vmatmul.msk.bf16.gmra.mxu3 %vm954_vm7, %v1030_v23  ;;  %4276 = vpow2.f32 %v1547_v12  ;;  %v1555_v0 = vmul.f32 1.442695, %v1542_v33 }
 0x42d   :  { %1019 = vadd.xlane.f32.xlu1 %v1018_v54  ;;  %4278 = vpow2.f32 %v1545_v8 }
 0x42e   :  { %v1536_v38 = vpop.xlane.xlu2 %1535  ;;  %4280 = vpow2.f32 %v1551_v62 }
 0x42f   :  { %4282 = vpow2.f32 %v1549_v17  ;;  %v1544_v21 = vsub.f32 %v5444_v16, %v1536_v38  ;;  %v1231_v17 = vsel %vm954_vm7, %v5484_v2, 0.0 }
 0x430   :  { %4284 = vpow2.f32 %v1553_v42 }
 0x431   :  { %v5563_v28 = vpop.eup %4274  ;;  %4286 = vpow2.f32 %v1555_v0 }
 0x432   :  { %v1252_v50 = vpack.c.bf16 %v5563_v28, %v4273_v60  ;;  %v4277_v36 = vpop.eup %4276 }
 0x433   :  { %1025 = vadd.xlane.f32.xlu2 %v1024_v61  ;;  %v4279_v25 = vpop.eup %4278  ;;  %v1564_v18 = vsel %vm954_vm7, %v4277_v36, 0.0 }
 0x434   :  { %3849 = vmatmul.msk.bf16.gmra.mxu1 %vm954_vm7, %v1252_v50  ;;  %v1585_v32 = vpack.c.bf16 %v4277_v36, %v4279_v25  ;;  %v1561_v24 = vsel %vm954_vm7, %v4279_v25, 0.0  ;;  %v4281_v63 = vpop.eup %4280  ;;  %v1559_v36 = vmul.f32 1.442695, %v1544_v21 }
 0x435   :  { %1229 = vadd.xlane.f32.xlu1 %v1228_v1  ;;  %v4283_v10 = vpop.eup %4282  ;;  %v1570_v60 = vsel %vm954_vm7, %v4281_v63, 0.0 }
 0x436   :  { %v2284_v13 = vpop.permute.xlu0 %2283  ;;  %v1586_v47 = vpack.c.bf16 %v4281_v63, %v4283_v10  ;;  %v1567_v14 = vsel %vm954_vm7, %v4283_v10, 0.0  ;;  %v4285_v54 = vpop.eup %4284 }
 0x437   :  { %v2307_v56 = vsel %vm900_vm5, %v2284_v13, 0  ;;  %v1573_v39 = vsel %vm954_vm7, %v4285_v54, 0.0  ;;  %v4287_v50 = vpop.eup %4286 }
 0x438   :  { %v1587_v8 = vpack.c.bf16 %v4287_v50, %v4285_v54  ;;  %v1576_v2 = vsel %vm954_vm7, %v4287_v50, 0.0 }
 0x43b   :  { %v1064_v61 = vpop.f32.mrf.mxu3 }
 0x43c   :  { %1226 = vadd.xlane.f32.xlu0 %v1225_v3 }
 0x43d   :  { %1238 = vadd.xlane.f32.xlu1 %v1237_v34 }
 0x443   :  { %v1066_v55 = vpop.f32.mrf.mxu3 }
 0x444   :  { %3878 = vmatmul.msk.bf16.vlgmr.msra.gmra.mxu1 %vm954_vm7, %v1585_v32  ;;  %1235 = vadd.xlane.f32.xlu0 %v1234_v26 }
 0x445   :  { %2313 = vmatpush.bf16.xpose.msra.mxu1 %v2307_v56  ;;  %1244 = vadd.xlane.f32.xlu1 %v1243_v19  ;;  %v1005_v34 = vpop.xlane.xlu1 %1004 }
 0x44b   :  { %1743 = vrot.lane.b32.xlu2 %v5165_v29, %s4594_s2 }
 0x44c   :  { %1241 = vadd.xlane.f32.xlu0 %v1240_v7  ;;  %v1246_v7 = vsel %vm954_vm7, %v5563_v28, 0.0 }
 0x44d   :  { %1562 = vadd.xlane.f32.xlu1 %v1561_v24  ;;  %v1011_v48 = vpop.xlane.xlu2 %1010 }
 0x450   :  { %v5617_v24 = vpop.f32.mrf.mxu1 }
 0x454   :  { %3879 = vmatmul.msk.bf16.gmra.mxu1 %vm954_vm7, %v1586_v47  ;;  %1565 = vadd.xlane.f32.xlu0 %v1564_v18 }
 0x455   :  { %1568 = vadd.xlane.f32.xlu1 %v1567_v14  ;;  %v1748_v23 = vpop.permute.xlu2 %1747 }
 0x456   :  { %v1770_v40 = vsel %vm900_vm5, %v1748_v23, 0 }
 0x457   :  { %1780 = vmatpush.bf16.xpose.msra.mxu3 %v1770_v40 }
 0x458   :  { %v5622_v18 = vpop.f32.mrf.mxu1 }
 0x45c   :  { %1571 = vadd.xlane.f32.xlu0 %v1570_v60 }
 0x45d   :  { %1574 = vadd.xlane.f32.xlu1 %v1573_v39  ;;  %v1746_v52 = vpop.permute.xlu2 %1745  ;;  %v1014_v6 = vpop.xlane.xlu1 %1013  ;;  %v4143_v39 = vld [vmem:[%s6658_s4 + $0x18] sm:$0xff] }
 0x45e   :  { %v1767_v22 = vsel %vm900_vm5, %v1746_v52, 0  ;;  %1356 = vmatpush.bf16.msra.mxu2 %v4143_v39 }
 0x45f   :  { %1781 = vmatpush.bf16.xpose.msra.mxu3 %v1767_v22  ;;  %v4142_v22 = vld [vmem:[%s6658_s4 + $0x10] sm:$0xff] }
 0x460   :  { %v5632_v40 = vpop.f32.mrf.mxu1 }
 0x461   :  { %v1533_v1 = vpop.xlane.xlu0 %1532 }
 0x462   :  { %v1543_v12 = vsub.f32 %v5491_v43, %v1533_v1  ;;  %1357 = vmatpush.bf16.msra.mxu2 %v4142_v22 }
 0x464   :  { %v1557_v3 = vmul.f32 1.442695, %v1543_v12  ;;  %3880 = vmatmul.msk.bf16.gmra.mxu1 %vm954_vm7, %v1587_v8 }
 0x465   :  { %v2278_v60 = vpop.permute.xlu2 %2277 }
 0x466   :  { %4288 = vpow2.f32 %v1557_v3  ;;  %v2298_v52 = vsel %vm900_vm5, %v2278_v60, 0 }
 0x467   :  { %4290 = vrcp.f32 %v1005_v34 }
 0x468   :  { %v5645_v50 = vpop.f32.mrf.mxu1 }
 0x469   :  { %v1008_v25 = vpop.xlane.xlu0 %1007 }
 0x46a   :  { %4292 = vrcp.f32 %v1008_v25 }
 0x46b   :  { %4294 = vpow2.f32 %v1559_v36 }
 0x46c   :  { %v4289_v13 = vpop.eup %4288  ;;  %4296 = vrcp.f32 %v1014_v6 }
 0x46d   :  { %v1579_v32 = vsel %vm954_vm7, %v4289_v13, 0.0  ;;  %v4291_v41 = vpop.eup %4290  ;;  %4298 = vrcp.f32 %v1011_v48 }
 0x46e   :  { %1580 = vadd.xlane.f32.xlu0 %v1579_v32  ;;  %v1092_v16 = vmul.f32 %v4291_v41, %v1064_v61  ;;  %v1069_v19 = vpop.f32.mrf.mxu3 }
 0x470   :  { %v4293_v43 = vpop.eup %4292 }
 0x471   :  { %v5606_v26 = vpop.eup %4294  ;;  %v1093_v56 = vmul.f32 %v4293_v43, %v1066_v55  ;;  %v1017_v63 = vpop.xlane.xlu0 %1016 }
 0x472   :  { %v1588_v62 = vpack.c.bf16 %v5606_v26, %v4289_v13  ;;  %v4297_v10 = vpop.eup %4296  ;;  %4300 = vrcp.f32 %v1017_v63  ;;  %v1582_v41 = vsel %vm954_vm7, %v5606_v26, 0.0 }
 0x473   :  { %v1100_v38 = vpack.c.bf16 %v1093_v56, %v1092_v16  ;;  %v4299_v47 = vpop.eup %4298 }
 0x474   :  { %3881 = vmatmul.msk.bf16.gmra.mxu1 %vm954_vm7, %v1588_v62  ;;  %1232 = vadd.xlane.f32.xlu2 %v1231_v17  ;;  %v1094_v28 = vmul.f32 %v4299_v47, %v1069_v19 }
 0x475   :  { %3870 = vmatmul.msk.bf16.vlgmr.msrb.gmra.mxu3 %vm900_vm5, %v1100_v38  ;;  %v2280_v23 = vpop.permute.xlu1 %2279 }
 0x476   :  { %2104 = vrot.lane.b32.xlu1 %v5367_v11, %s4595_s17  ;;  %1247 = vadd.xlane.f32.xlu0 %v1246_v7  ;;  %v1071_v42 = vpop.f32.mrf.mxu3  ;;  %v2301_v54 = vsel %vm900_vm5, %v2280_v23, 0 }
 0x477   :  { %v1095_v33 = vmul.f32 %v4297_v10, %v1071_v42 }
 0x478   :  { %v4301_v8 = vpop.eup %4300 }
 0x479   :  { %v1101_v14 = vpack.c.bf16 %v1095_v33, %v1094_v28 }
 0x47c   :  { %1577 = vadd.xlane.f32.xlu2 %v1576_v2 }
 0x47e   :  { %2418 = vrot.lane.b32.xlu1 %v5548_v31, %s4595_s17  ;;  %v1074_v61 = vpop.f32.mrf.mxu3 }
 0x47f   :  { %v1096_v36 = vmul.f32 %v4301_v8, %v1074_v61 }
 0x484   :  { %3902 = vmatmul.msk.bf16.vlgmr.msrb.gmra.mxu1 %vm900_vm5, %v5381_v58  ;;  %v2282_v0 = vpop.permute.xlu0 %2281 }
 0x485   :  { %v2304_v48 = vsel %vm900_vm5, %v2282_v0, 0  ;;  %3871 = vmatmul.msk.bf16.gmra.mxu3 %vm900_vm5, %v1101_v14 }
 0x486   :  { %2414 = vrot.lane.b32.xlu1 %v5535_v57, %s4595_s17  ;;  %2314 = vmatpush.bf16.xpose.msra.mxu1 %v2304_v48  ;;  %v1076_v3 = vpop.f32.mrf.mxu3 }
 0x48a   :  { %2106 = vrot.lane.b32.xlu0 %v5399_v37, %s4595_s17 }
 0x48e   :  { %2315 = vmatpush.bf16.xpose.msra.mxu1 %v2301_v54 }
 0x492   :  { %2416 = vrot.lane.b32.xlu0 %v5537_v5, %s4595_s17 }
 0x494   :  { %3903 = vmatmul.msk.bf16.gmra.mxu1 %vm900_vm5, %v5367_v11  ;;  %2108 = vrot.lane.b32.xlu2 %v5229_v4, %s4595_s17  ;;  %v1296_v11 = vpop.f32.mrf.mxu1 }
 0x496   :  { %2316 = vmatpush.bf16.xpose.msra.mxu1 %v2298_v52 }
 0x49c   :  { %2102 = vrot.lane.b32.xlu2 %v5381_v58, %s4595_s17  ;;  %v1298_v13 = vpop.f32.mrf.mxu1 }
 0x49e   :  { %v1023_v1 = vpop.xlane.xlu2 %1022 }
 0x4a0   :  { %v1020_v12 = vpop.xlane.xlu1 %1019 }
 0x4a1   :  { %4302 = vrcp.f32 %v1020_v12 }
 0x4a2   :  { %4304 = vrcp.f32 %v1023_v1 }
 0x4a4   :  { %3904 = vmatmul.msk.bf16.gmra.mxu1 %vm900_vm5, %v5399_v37  ;;  %2420 = vrot.lane.b32.xlu2 %v5457_v59, %s4595_s17 }
 0x4a6   :  { %v1026_v34 = vpop.xlane.xlu2 %1025 }
 0x4a7   :  { %v4303_v21 = vpop.eup %4302 }
 0x4a8   :  { %v1097_v25 = vmul.f32 %v4303_v21, %v1076_v3  ;;  %v1230_v55 = vpop.xlane.xlu1 %1229  ;;  %v4305_v62 = vpop.eup %4304 }
 0x4a9   :  { %4306 = vrcp.f32 %v1230_v55 }
 0x4aa   :  { %v1102_v58 = vpack.c.bf16 %v1097_v25, %v1096_v36  ;;  %4308 = vrcp.f32 %v1026_v34 }
 0x4ac   :  { %3872 = vmatmul.msk.bf16.gmra.mxu3 %vm900_vm5, %v1102_v58  ;;  %1886 = vrot.lane.b32.xlu2 %v5231_v9, %s4595_s17 }
 0x4ae   :  { %v1744_v37 = vpop.permute.xlu2 %1743 }
 0x4af   :  { %v1079_v32 = vpop.f32.mrf.mxu3  ;;  %v1764_v43 = vsel %vm900_vm5, %v1744_v37, 0  ;;  %v1227_v16 = vpop.xlane.xlu0 %1226 }
 0x4b0   :  { %1583 = vadd.xlane.f32.xlu1 %v1582_v41  ;;  %v1239_v56 = vpop.xlane.xlu1 %1238  ;;  %4310 = vrcp.f32 %v1227_v16  ;;  %1782 = vmatpush.bf16.xpose.msra.mxu3 %v1764_v43  ;;  %v4307_v38 = vpop.eup %4306  ;;  %v1098_v63 = vmul.f32 %v4305_v62, %v1079_v32 }
 0x4b1   :  { %v5662_v19 = vpop.f32.mrf.mxu1  ;;  %v4309_v17 = vpop.eup %4308  ;;  %v1315_v7 = vmul.f32 %v4307_v38, %v5622_v18  ;;  %4312 = vrcp.f32 %v1239_v56 }
 0x4b4   :  { %3905 = vmatmul.msk.bf16.gmra.mxu1 %vm900_vm5, %v5229_v4 }
 0x4b6   :  { %v4311_v6 = vpop.eup %4310 }
 0x4b7   :  { %v1081_v26 = vpop.f32.mrf.mxu3  ;;  %v1314_v42 = vmul.f32 %v4311_v6, %v5617_v24  ;;  %v1236_v10 = vpop.xlane.xlu0 %1235 }
 0x4b8   :  { %2193 = vmatpush.bf16.msrb.mxu3 %v4143_v39  ;;  %v1099_v2 = vmul.f32 %v4309_v17, %v1081_v26  ;;  %v1245_v14 = vpop.xlane.xlu1 %1244  ;;  %v4313_v24 = vpop.eup %4312 }
 0x4b9   :  { %v5668_v33 = vpop.f32.mrf.mxu1  ;;  %v1322_v47 = vpack.c.bf16 %v1315_v7, %v1314_v42  ;;  %v5678_v23 = vmul.f32 %v4313_v24, %v1296_v11  ;;  %v4144_v11 = vld [vmem:[%s6658_s4 + $0x20] sm:$0xff] }
 0x4ba   :  { %v1103_v28 = vpack.c.bf16 %v1099_v2, %v1098_v63 }
 0x4bb   :  { %3858 = vmatmul.msk.bf16.vlgmr.msra.gmra.mxu2 %vm900_vm5, %v1322_v47 }
 0x4bc   :  { %2194 = vmatpush.bf16.msrb.mxu3 %v4142_v22 }
 0x4bd   :  { %3873 = vmatmul.msk.bf16.gmra.mxu3 %vm900_vm5, %v1103_v28 }
 0x4bf   :  { %v1242_v4 = vpop.xlane.xlu0 %1241 }
 0x4c0   :  { %4314 = vrcp.f32 %v1242_v4  ;;  %v5674_v18 = vpop.xlane.xlu1 %1562 }
 0x4c1   :  { %v5672_v0 = vpop.f32.mrf.mxu1 }
 0x4c4   :  { %3918 = vmatmul.msk.bf16.vlgmr.msra.gmra.mxu1 %vm900_vm5, %v5535_v57  ;;  %v4145_v57 = vld [vmem:[%s6658_s4 + $0x28] sm:$0xff] }
 0x4c5   :  { %1692 = vmatpush.bf16.msrb.mxu2 %v4145_v57 }
 0x4c6   :  { %v4315_v48 = vpop.eup %4314 }
 0x4c7   :  { %v5680_v54 = vmul.f32 %v4315_v48, %v1298_v13  ;;  %v5682_v60 = vpop.xlane.xlu0 %1565 }
 0x4c8   :  { %v1569_v22 = vpop.xlane.xlu1 %1568 }
 0x4c9   :  { %v5684_v39 = vpop.f32.mrf.mxu1  ;;  %v1324_v52 = vpack.c.bf16 %v5680_v54, %v5678_v23  ;;  %4316 = vrcp.f32 %v1569_v22  ;;  %1693 = vmatpush.bf16.msrb.mxu2 %v4144_v11 }
 0x4cd   :  { %3894 = vmatmul.msk.bf16.vlgmr.msra.gmra.mxu3 %vm900_vm5, %v5165_v29 }
 0x4ce   :  { %2505 = vmatpush.bf16.msra.mxu3 %v4145_v57 }
 0x4cf   :  { %v1572_v61 = vpop.xlane.xlu0 %1571  ;;  %v4317_v12 = vpop.eup %4316 }
 0x4d0   :  { %4318 = vrcp.f32 %v1572_v61  ;;  %v1575_v8 = vpop.xlane.xlu1 %1574 }
 0x4d1   :  { %v1627_v1 = vpop.f32.mrf.mxu1  ;;  %4320 = vrcp.f32 %v1575_v8 }
 0x4d2   :  { %2506 = vmatpush.bf16.msra.mxu3 %v4144_v11  ;;  %v5698_v34 = vmul.f32 %v4317_v12, %v1627_v1  ;;  %4322 = vrcp.f32 %v1236_v10 }
 0x4d3   :  { %4324 = vrcp.f32 %v1245_v14 }
 0x4d4   :  { %3919 = vmatmul.msk.bf16.gmra.mxu1 %vm900_vm5, %v5537_v5 }
 0x4d6   :  { %v4319_v21 = vpop.eup %4318 }
 0x4d7   :  { %v4321_v25 = vpop.eup %4320 }
 0x4d8   :  { %v4323_v43 = vpop.eup %4322 }
 0x4d9   :  { %v1629_v3 = vpop.f32.mrf.mxu1  ;;  %v4325_v16 = vpop.eup %4324  ;;  %v1317_v38 = vmul.f32 %v4323_v43, %v5645_v50 }
 0x4da   :  { %v5700_v36 = vmul.f32 %v4319_v21, %v1629_v3  ;;  %v1320_v26 = vmul.f32 %v4325_v16, %v5662_v19 }
 0x4dc   :  { %v1659_v5 = vpack.c.bf16 %v5700_v36, %v5698_v34 }
 0x4dd   :  { %3895 = vmatmul.msk.bf16.gmra.mxu3 %vm900_vm5, %v5206_v45 }
 0x4e1   :  { %v1632_v55 = vpop.f32.mrf.mxu1  ;;  %v1581_v13 = vpop.xlane.xlu0 %1580 }
 0x4e2   :  { %v5706_v58 = vmul.f32 %v4321_v25, %v1632_v55 }
 0x4e4   :  { %3920 = vmatmul.msk.bf16.gmra.mxu1 %vm900_vm5, %v5548_v31 }
 0x4e7   :  { %v1233_v37 = vpop.xlane.xlu2 %1232 }
 0x4e8   :  { %4326 = vrcp.f32 %v1233_v37  ;;  %v2105_v14 = vpop.permute.xlu1 %2104 }
 0x4e9   :  { %v1634_v32 = vpop.f32.mrf.mxu1  ;;  %v1248_v41 = vpop.xlane.xlu0 %1247 }
 0x4ea   :  { %4328 = vrcp.f32 %v1248_v41 }
 0x4eb   :  { %4330 = vrcp.f32 %v1581_v13 }
 0x4ed   :  { %3896 = vmatmul.msk.bf16.gmra.mxu3 %vm900_vm5, %v5221_v46 }
 0x4ee   :  { %v4327_v56 = vpop.eup %4326 }
 0x4ef   :  { %v1316_v17 = vmul.f32 %v4327_v56, %v5632_v40  ;;  %v1578_v31 = vpop.xlane.xlu2 %1577 }
 0x4f0   :  { %v4329_v62 = vpop.eup %4328  ;;  %4332 = vrcp.f32 %v1578_v31  ;;  %v2419_v16 = vpop.permute.xlu1 %2418 }
 0x4f1   :  { %v4331_v6 = vpop.eup %4330  ;;  %v1321_v7 = vmul.f32 %v4329_v62, %v5668_v33  ;;  %v1637_v63 = vpop.f32.mrf.mxu1  ;;  %v1323_v2 = vpack.c.bf16 %v1317_v38, %v1316_v17  ;;  %4334 = vrcp.f32 %v5682_v60 }
 0x4f2   :  { %v5716_v42 = vmul.f32 %v4331_v6, %v1637_v63  ;;  %4336 = vrcp.f32 %v5674_v18 }
 0x4f3   :  { %v1325_v10 = vpack.c.bf16 %v1321_v7, %v1320_v26  ;;  %3859 = vmatmul.msk.bf16.gmra.mxu2 %vm900_vm5, %v1323_v2 }
 0x4f4   :  { %3921 = vmatmul.msk.bf16.gmra.mxu1 %vm900_vm5, %v5457_v59 }
 0x4f6   :  { %v4333_v50 = vpop.eup %4332 }
 0x4f7   :  { %v5721_v47 = vmul.f32 %v4333_v50, %v1634_v32  ;;  %v2109_v40 = vpop.permute.xlu2 %2108  ;;  %v4335_v3 = vpop.eup %4334 }
 0x4f8   :  { %2130 = vmatpush.bf16.msra.mxu2 %v2109_v40  ;;  %v1412_v22 = vpop.f32.mrf.mxu3  ;;  %v4337_v55 = vpop.eup %4336  ;;  %v1651_v37 = vmul.f32 %v4335_v3, %v5684_v39 }
 0x4f9   :  { %v5723_v28 = vpop.f32.mrf.mxu1  ;;  %v1660_v19 = vpack.c.bf16 %v5721_v47, %v5706_v58  ;;  %v1650_v32 = vmul.f32 %v4337_v55, %v5672_v0  ;;  %v2415_v31 = vpop.permute.xlu1 %2414 }
 0x4fb   :  { %v1658_v41 = vpack.c.bf16 %v1651_v37, %v1650_v32 }
 0x4fc   :  { %v2107_v33 = vpop.permute.xlu0 %2106 }
 0x4fd   :  { %3897 = vmatmul.msk.bf16.gmra.mxu3 %vm900_vm5, %v5231_v9  ;;  %2131 = vmatpush.bf16.msra.mxu2 %v2107_v33 }
 0x4ff   :  { %v2103_v4 = vpop.permute.xlu2 %2102 }
 0x501   :  { %v2006_v24 = vpop.f32.mrf.mxu1  ;;  %2132 = vmatpush.bf16.msra.mxu2 %v2105_v14 }
 0x502   :  { %v5730_v59 = vadd.f32 %v2006_v24, %v5266_v44 }
 0x503   :  { %3860 = vmatmul.msk.bf16.gmra.mxu2 %vm900_vm5, %v1324_v52  ;;  %v5746_v52 = vpop.f32.mrf.mxu3 }
 0x504   :  { %v2026_v48 = vsel %vm954_vm7, %v5730_v59, -inf  ;;  %v2417_v0 = vpop.permute.xlu0 %2416 }
 0x505   :  { %2027 = vmax.xlane.f32.xlu0 %v2026_v48  ;;  %2133 = vmatpush.bf16.msra.mxu2 %v2103_v4 }
 0x507   :  { %v2421_v9 = vpop.permute.xlu2 %2420 }
 0x509   :  { %v2008_v61 = vpop.f32.mrf.mxu1 }
 0x50a   :  { %v5739_v1 = vadd.f32 %v2008_v61, %v5278_v27 }
 0x50b   :  { %v5758_v13 = vpop.f32.mrf.mxu3 }
 0x50c   :  { %v2029_v57 = vsel %vm954_vm7, %v5739_v1, -inf }
 0x50d   :  { %2030 = vmax.xlane.f32.xlu1 %v2029_v57 }
 0x50f   :  { %v1887_v11 = vpop.permute.xlu2 %1886 }
 0x510   :  { %1908 = vmatpush.bf16.msra.mxu0 %v1887_v11 }
 0x511   :  { %v2011_v23 = vpop.f32.mrf.mxu1 }
 0x512   :  { %v5744_v54 = vadd.f32 %v2011_v23, %v5310_v15 }
 0x513   :  { %3861 = vmatmul.msk.bf16.gmra.mxu2 %vm900_vm5, %v1325_v10  ;;  %v5768_v56 = vpop.f32.mrf.mxu3 }
 0x514   :  { %v2032_v12 = vsel %vm954_vm7, %v5744_v54, -inf }
 0x515   :  { %2033 = vmax.xlane.f32.xlu0 %v2032_v12 }
 0x519   :  { %v2013_v8 = vpop.f32.mrf.mxu1 }
 0x51a   :  { %v5754_v21 = vadd.f32 %v2013_v8, %v5325_v35 }
 0x51c   :  { %v2035_v25 = vsel %vm954_vm7, %v5754_v21, -inf }
 0x51d   :  { %2036 = vmax.xlane.f32.xlu2 %v2035_v25 }
 0x521   :  { %v2016_v60 = vpop.f32.mrf.mxu1 }
 0x522   :  { %v5763_v18 = vadd.f32 %v2016_v60, %v5349_v30 }
 0x523   :  { %3890 = vmatmul.msk.bf16.vlgmr.msrb.gmra.mxu2 %vm900_vm5, %v1658_v41  ;;  %v1584_v33 = vpop.xlane.xlu1 %1583 }
 0x524   :  { %v2038_v43 = vsel %vm954_vm7, %v5763_v18, -inf  ;;  %2442 = vmatpush.bf16.msrb.mxu2 %v2421_v9  ;;  %4338 = vrcp.f32 %v1584_v33 }
 0x525   :  { %2039 = vmax.xlane.f32.xlu1 %v2038_v43 }
 0x528   :  { %2443 = vmatpush.bf16.msrb.mxu2 %v2419_v16 }
 0x529   :  { %v2018_v62 = vpop.f32.mrf.mxu1 }
 0x52a   :  { %v5771_v39 = vadd.f32 %v2018_v62, %v5365_v49 }
 0x52c   :  { %v2041_v38 = vsel %vm954_vm7, %v5771_v39, -inf  ;;  %2444 = vmatpush.bf16.msrb.mxu2 %v2417_v0 }
 0x52d   :  { %2042 = vmax.xlane.f32.xlu0 %v2041_v38 }
 0x52f   :  { %v5775_v17 = vpop.f32.mrf.mxu3 }
 0x530   :  { %2445 = vmatpush.bf16.msrb.mxu2 %v2415_v31 }
 0x531   :  { %v2021_v6 = vpop.f32.mrf.mxu1 }
 0x532   :  { %v5778_v26 = vadd.f32 %v2021_v6, %v5392_v53 }
 0x533   :  { %3891 = vmatmul.msk.bf16.gmra.mxu2 %vm900_vm5, %v1659_v5 }
 0x534   :  { %v2044_v7 = vsel %vm954_vm7, %v5778_v26, -inf }
 0x535   :  { %2045 = vmax.xlane.f32.xlu2 %v2044_v7 }
 0x537   :  { %v5786_v63 = vpop.f32.mrf.mxu3 }
 0x539   :  { %v2023_v2 = vpop.f32.mrf.mxu1 }
 0x53a   :  { %v5789_v10 = vadd.f32 %v2023_v2, %v5418_v51 }
 0x53c   :  { %v2047_v50 = vsel %vm954_vm7, %v5789_v10, -inf }
 0x53d   :  { %2048 = vmax.xlane.f32.xlu0 %v2047_v50 }
 0x53e   :  { %1884 = vrot.lane.b32.xlu1 %v5221_v46, %s4595_s17  ;;  %v1359_v34 = vpop.f32.mrf.mxu2  ;;  %v4339_v46 = vpop.eup %4338 }
 0x53f   :  { %v5797_v5 = vadd.f32 %v1412_v22, %v1359_v34  ;;  %v1657_v9 = vmul.f32 %v4339_v46, %v5723_v28 }
 0x540   :  { %v5795_v36 = vpop.f32.mrf.mxu3 }
 0x541   :  { %v2318_v40 = vpop.f32.mrf.mxu1 }
 0x543   :  { %3892 = vmatmul.msk.bf16.gmra.mxu2 %vm900_vm5, %v1660_v19  ;;  %v1661_v19 = vpack.c.bf16 %v1657_v9, %v5716_v42  ;;  %v5829_v42 = vadd.f32 %v2318_v40, %v5266_v44 }
 0x545   :  { %v2338_v3 = vsel %vm954_vm7, %v5829_v42, -inf }
 0x546   :  { %v5836_v37 = vpop.f32.mrf.mxu2 }
 0x548   :  { %v5803_v14 = vpop.f32.mrf.mxu3 }
 0x549   :  { %v2320_v4 = vpop.f32.mrf.mxu1 }
 0x54a   :  { %v5806_v24 = vadd.f32 %v2320_v4, %v5278_v27 }
 0x54c   :  { %v2341_v48 = vsel %vm954_vm7, %v5806_v24, -inf }
 0x54d   :  { %2342 = vmax.xlane.f32.xlu0 %v2341_v48 }
 0x550   :  { %v1784_v22 = vpop.f32.mrf.mxu3 }
 0x551   :  { %v5812_v61 = vadd.f32 %v1784_v22, %v5266_v44  ;;  %v2323_v58 = vpop.f32.mrf.mxu1 }
 0x553   :  { %v1804_v47 = vsel %vm954_vm7, %v5812_v61, -inf  ;;  %3893 = vmatmul.msk.bf16.gmra.mxu2 %vm900_vm5, %v1661_v19 }
 0x554   :  { %1805 = vmax.xlane.f32.xlu2 %v1804_v47 }
 0x558   :  { %v1786_v57 = vpop.f32.mrf.mxu3 }
 0x559   :  { %v5819_v11 = vadd.f32 %v1786_v57, %v5278_v27  ;;  %v2325_v23 = vpop.f32.mrf.mxu1  ;;  %v5834_v27 = vadd.f32 %v2323_v58, %v5310_v15 }
 0x55a   :  { %v5822_v28 = vadd.f32 %v2325_v23, %v5325_v35 }
 0x55b   :  { %v1807_v12 = vsel %vm954_vm7, %v5819_v11, -inf  ;;  %v2344_v32 = vsel %vm954_vm7, %v5834_v27, -inf }
 0x55c   :  { %1808 = vmax.xlane.f32.xlu0 %v1807_v12  ;;  %v2347_v8 = vsel %vm954_vm7, %v5822_v28, -inf }
 0x55d   :  { %2348 = vmax.xlane.f32.xlu2 %v2347_v8 }
 0x560   :  { %v1789_v55 = vpop.f32.mrf.mxu3 }
 0x561   :  { %v2328_v25 = vpop.f32.mrf.mxu1  ;;  %v5843_v44 = vadd.f32 %v1789_v55, %v5310_v15 }
 0x563   :  { %v1810_v43 = vsel %vm954_vm7, %v5843_v44, -inf }
 0x568   :  { %2339 = vmax.xlane.f32.xlu1 %v2338_v3  ;;  %v1791_v16 = vpop.f32.mrf.mxu3 }
 0x569   :  { %v2330_v60 = vpop.f32.mrf.mxu1  ;;  %v5881_v8 = vadd.f32 %v1791_v16, %v5325_v35 }
 0x570   :  { %1882 = vrot.lane.b32.xlu0 %v5206_v45, %s4595_s17  ;;  %2345 = vmax.xlane.f32.xlu1 %v2344_v32  ;;  %v5852_v45 = vadd.f32 %v2328_v25, %v5349_v30  ;;  %v1794_v2 = vpop.f32.mrf.mxu3  ;;  %v5890_v32 = vadd.f32 %v2330_v60, %v5365_v49 }
 0x571   :  { %v5868_v48 = vadd.f32 %v1794_v2, %v5349_v30 }
 0x572   :  { %v2350_v15 = vsel %vm954_vm7, %v5852_v45, -inf }
 0x573   :  { %v1816_v47 = vsel %vm954_vm7, %v5868_v48, -inf }
 0x575   :  { %1880 = vrot.lane.b32.xlu2 %v5165_v29, %s4595_s17  ;;  %v2333_v29 = vpop.f32.mrf.mxu1 }
 0x576   :  { %v5847_v41 = vpop.f32.mrf.mxu2  ;;  %v5861_v50 = vadd.f32 %v2333_v29, %v5392_v53 }
 0x578   :  { %1811 = vmax.xlane.f32.xlu1 %v1810_v43  ;;  %v2028_v62 = vpop.xlane.xlu0 %2027 }
 0x579   :  { %v2050_v0 = vsub.f32 %v5730_v59, %v2028_v62  ;;  %v2356_v59 = vsel %vm954_vm7, %v5861_v50, -inf }
 0x57b   :  { %v2058_v31 = vmul.f32 1.442695, %v2050_v0 }
 0x57d   :  { %4340 = vpow2.f32 %v2058_v31  ;;  %v2335_v55 = vpop.f32.mrf.mxu1  ;;  %v2353_v31 = vsel %vm954_vm7, %v5890_v32, -inf }
 0x57e   :  { %v5855_v38 = vpop.f32.mrf.mxu2  ;;  %v5893_v62 = vadd.f32 %v2335_v55, %v5418_v51 }
 0x580   :  { %v2031_v6 = vpop.xlane.xlu1 %2030  ;;  %2351 = vmax.xlane.f32.xlu1 %v2350_v15  ;;  %v2359_v60 = vsel %vm954_vm7, %v5893_v62, -inf }
 0x581   :  { %v2051_v7 = vsub.f32 %v5739_v1, %v2031_v6  ;;  %v1796_v1 = vpop.f32.mrf.mxu3 }
 0x582   :  { %v5878_v12 = vadd.f32 %v1796_v1, %v5365_v49 }
 0x583   :  { %v2060_v34 = vmul.f32 1.442695, %v2051_v7  ;;  %v4341_v4 = vpop.eup %4340 }
 0x584   :  { %v1819_v25 = vsel %vm954_vm7, %v5878_v12, -inf }
 0x585   :  { %4342 = vpow2.f32 %v2060_v34 }
 0x586   :  { %v5863_v40 = vpop.f32.mrf.mxu2 }
 0x588   :  { %2357 = vmax.xlane.f32.xlu1 %v2356_v59  ;;  %v2034_v33 = vpop.xlane.xlu0 %2033 }
 0x589   :  { %v2052_v22 = vsub.f32 %v5744_v54, %v2034_v33  ;;  %v1799_v54 = vpop.f32.mrf.mxu3 }
 0x58a   :  { %v5896_v0 = vadd.f32 %v1799_v54, %v5392_v53 }
 0x58b   :  { %v4343_v46 = vpop.eup %4342  ;;  %v2062_v19 = vmul.f32 1.442695, %v2052_v22 }
 0x58c   :  { %v2098_v9 = vpack.c.bf16 %v4343_v46, %v4341_v4  ;;  %v1822_v53 = vsel %vm954_vm7, %v5896_v0, -inf  ;;  %v2077_v33 = vsel %vm954_vm7, %v4343_v46, 0.0 }
 0x58d   :  { %4344 = vpow2.f32 %v2062_v19 }
 0x58e   :  { %3906 = vmatmul.msk.bf16.vlgmr.msra.gmra.mxu2 %vm954_vm7, %v2098_v9  ;;  %v5872_v58 = vpop.f32.mrf.mxu2 }
 0x590   :  { %v2037_v57 = vpop.xlane.xlu2 %2036  ;;  %1817 = vmax.xlane.f32.xlu1 %v1816_v47 }
 0x591   :  { %v2053_v23 = vsub.f32 %v5754_v21, %v2037_v57  ;;  %v1813_v21 = vsel %vm954_vm7, %v5881_v8, -inf  ;;  %v1801_v6 = vpop.f32.mrf.mxu3 }
 0x592   :  { %v5910_v34 = vadd.f32 %v1801_v6, %v5418_v51 }
 0x593   :  { %v2064_v30 = vmul.f32 1.442695, %v2053_v23  ;;  %v4345_v35 = vpop.eup %4344 }
 0x594   :  { %v1825_v9 = vsel %vm954_vm7, %v5910_v34, -inf }
 0x595   :  { %4346 = vpow2.f32 %v2064_v30 }
 0x596   :  { %v5883_v3 = vpop.f32.mrf.mxu2 }
 0x598   :  { %1820 = vmax.xlane.f32.xlu1 %v1819_v25  ;;  %v2040_v43 = vpop.xlane.xlu1 %2039 }
 0x599   :  { %v2054_v15 = vsub.f32 %v5763_v18, %v2040_v43 }
 0x59a   :  { %1814 = vmax.xlane.f32.xlu0 %v1813_v21 }
 0x59b   :  { %v4347_v16 = vpop.eup %4346  ;;  %v2066_v7 = vmul.f32 1.442695, %v2054_v15  ;;  %v1418_v15 = vadd.f32 %v5758_v13, %v5847_v41 }
 0x59c   :  { %v2099_v29 = vpack.c.bf16 %v4347_v16, %v4345_v35 }
 0x59d   :  { %4348 = vpow2.f32 %v2066_v7 }
 0x59e   :  { %2354 = vmax.xlane.f32.xlu2 %v2353_v31  ;;  %3907 = vmatmul.msk.bf16.gmra.mxu2 %vm954_vm7, %v2099_v29  ;;  %v5902_v49 = vpop.f32.mrf.mxu2 }
 0x5a0   :  { %2360 = vmax.xlane.f32.xlu1 %v2359_v60  ;;  %v2043_v2 = vpop.xlane.xlu0 %2042 }
 0x5a1   :  { %v2055_v18 = vsub.f32 %v5771_v39, %v2043_v2  ;;  %v2074_v39 = vsel %vm954_vm7, %v4341_v4, 0.0 }
 0x5a2   :  { %1823 = vmax.xlane.f32.xlu0 %v1822_v53 }
 0x5a3   :  { %v2068_v59 = vmul.f32 1.442695, %v2055_v18  ;;  %v4349_v19 = vpop.eup %4348 }
 0x5a4   :  { %v2086_v46 = vsel %vm954_vm7, %v4349_v19, 0.0 }
 0x5a5   :  { %4350 = vpow2.f32 %v2068_v59 }
 0x5a6   :  { %2078 = vadd.xlane.f32.xlu2 %v2077_v33  ;;  %v1695_v1 = vpop.f32.mrf.mxu2 }
 0x5a7   :  { %v5916_v22 = vadd.f32 %v1695_v1, %v5797_v5  ;;  %v2080_v5 = vsel %vm954_vm7, %v4345_v35, 0.0 }
 0x5a8   :  { %v2046_v47 = vpop.xlane.xlu2 %2045  ;;  %1826 = vmax.xlane.f32.xlu1 %v1825_v9 }
 0x5a9   :  { %v2056_v51 = vsub.f32 %v5778_v26, %v2046_v47  ;;  %v2083_v26 = vsel %vm954_vm7, %v4347_v16, 0.0 }
 0x5aa   :  { %2075 = vadd.xlane.f32.xlu0 %v2074_v39 }
 0x5ab   :  { %v4351_v57 = vpop.eup %4350  ;;  %v2070_v23 = vmul.f32 1.442695, %v2056_v51 }
 0x5ac   :  { %v2100_v30 = vpack.c.bf16 %v4351_v57, %v4349_v19  ;;  %v2089_v31 = vsel %vm954_vm7, %v4351_v57, 0.0 }
 0x5ad   :  { %4352 = vpow2.f32 %v2070_v23 }
 0x5ae   :  { %2087 = vadd.xlane.f32.xlu2 %v2086_v46  ;;  %3908 = vmatmul.msk.bf16.gmra.mxu2 %vm954_vm7, %v2100_v30  ;;  %v5922_v54 = vpop.f32.mrf.mxu2 }
 0x5b0   :  { %v1885_v25 = vpop.permute.xlu1 %1884  ;;  %2081 = vadd.xlane.f32.xlu1 %v2080_v5  ;;  %v2049_v4 = vpop.xlane.xlu0 %2048 }
 0x5b1   :  { %v2057_v55 = vsub.f32 %v5789_v10, %v2049_v4  ;;  %1909 = vmatpush.bf16.msra.mxu0 %v1885_v25 }
 0x5b2   :  { %2084 = vadd.xlane.f32.xlu0 %v2083_v26 }
 0x5b3   :  { %v2072_v21 = vmul.f32 1.442695, %v2057_v55  ;;  %v4353_v43 = vpop.eup %4352 }
 0x5b4   :  { %v2092_v35 = vsel %vm954_vm7, %v4353_v43, 0.0 }
 0x5b5   :  { %4354 = vpow2.f32 %v2072_v21 }
 0x5b6   :  { %v1700_v29 = vpop.f32.mrf.mxu2 }
 0x5b7   :  { %v5930_v60 = vadd.f32 %v1700_v29, %v1418_v15 }
 0x5b8   :  { %2090 = vadd.xlane.f32.xlu1 %v2089_v31  ;;  %v4468_v31 = vld [vmem:[%s6658_s4 + $0x8] sm:$0xff] }
 0x5ba   :  { %2093 = vadd.xlane.f32.xlu0 %v2092_v35 }
 0x5bb   :  { %v4355_v16 = vpop.eup %4354 }
 0x5bc   :  { %v2095_v10 = vsel %vm954_vm7, %v4355_v16, 0.0  ;;  %v2101_v6 = vpack.c.bf16 %v4355_v16, %v4353_v43  ;;  %v4469_v16 = vld [vmem:[%s6658_s4] sm:$0xff] }
 0x5bd   :  { %2096 = vadd.xlane.f32.xlu2 %v2095_v10 }
 0x5be   :  { %3909 = vmatmul.msk.bf16.gmra.mxu2 %vm954_vm7, %v2101_v6 }
 0x5c0   :  { %v2343_v7 = vpop.xlane.xlu0 %2342 }
 0x5c1   :  { %v2363_v2 = vsub.f32 %v5806_v24, %v2343_v7 }
 0x5c3   :  { %v2372_v13 = vmul.f32 1.442695, %v2363_v2 }
 0x5c5   :  { %4356 = vpow2.f32 %v2372_v13 }
 0x5c7   :  { %v1806_v41 = vpop.xlane.xlu2 %1805 }
 0x5c8   :  { %v1828_v53 = vsub.f32 %v5812_v61, %v1806_v41 }
 0x5ca   :  { %v1836_v18 = vmul.f32 1.442695, %v1828_v53 }
 0x5cb   :  { %v4357_v59 = vpop.eup %4356 }
 0x5cc   :  { %4358 = vpow2.f32 %v1836_v18  ;;  %v2389_v33 = vsel %vm954_vm7, %v4357_v59, 0.0 }
 0x5cd   :  { %2390 = vadd.xlane.f32.xlu0 %v2389_v33 }
 0x5cf   :  { %v1809_v51 = vpop.xlane.xlu0 %1808 }
 0x5d0   :  { %v2349_v1 = vpop.xlane.xlu2 %2348  ;;  %v1829_v24 = vsub.f32 %v5819_v11, %v1809_v51 }
 0x5d1   :  { %v2365_v47 = vsub.f32 %v5822_v28, %v2349_v1  ;;  %v5943_v28 = vpop.f32.mrf.mxu2 }
 0x5d2   :  { %v4359_v9 = vpop.eup %4358  ;;  %v1838_v57 = vmul.f32 1.442695, %v1829_v24 }
 0x5d3   :  { %v1852_v39 = vsel %vm954_vm7, %v4359_v9, 0.0  ;;  %v2376_v19 = vmul.f32 1.442695, %v2365_v47 }
 0x5d4   :  { %1853 = vadd.xlane.f32.xlu2 %v1852_v39 }
 0x5d5   :  { %4360 = vpow2.f32 %v2376_v19 }
 0x5d6   :  { %4362 = vpow2.f32 %v1838_v57 }
 0x5d8   :  { %v1881_v11 = vpop.permute.xlu2 %1880 }
 0x5db   :  { %v4361_v61 = vpop.eup %4360  ;;  %v2340_v23 = vpop.xlane.xlu1 %2339 }
 0x5dc   :  { %v2362_v30 = vsub.f32 %v5829_v42, %v2340_v23  ;;  %v2395_v46 = vsel %vm954_vm7, %v4361_v61, 0.0  ;;  %v4363_v26 = vpop.eup %4362 }
 0x5dd   :  { %2396 = vadd.xlane.f32.xlu2 %v2395_v46  ;;  %v1876_v15 = vpack.c.bf16 %v4363_v26, %v4359_v9  ;;  %v1855_v13 = vsel %vm954_vm7, %v4363_v26, 0.0 }
 0x5de   :  { %v2370_v5 = vmul.f32 1.442695, %v2362_v30 }
 0x5e0   :  { %4364 = vpow2.f32 %v2370_v5 }
 0x5e2   :  { %v1883_v25 = vpop.permute.xlu0 %1882 }
 0x5e3   :  { %1910 = vmatpush.bf16.msra.mxu0 %v1883_v25  ;;  %v2346_v4 = vpop.xlane.xlu1 %2345 }
 0x5e4   :  { %v2364_v55 = vsub.f32 %v5834_v27, %v2346_v4  ;;  %v5952_v27 = vpop.f32.mrf.mxu2 }
 0x5e6   :  { %v4365_v21 = vpop.eup %4364  ;;  %v2374_v43 = vmul.f32 1.442695, %v2364_v55 }
 0x5e7   :  { %1911 = vmatpush.bf16.msra.mxu0 %v1881_v11  ;;  %v2410_v42 = vpack.c.bf16 %v4357_v59, %v4365_v21  ;;  %v2386_v29 = vsel %vm954_vm7, %v4365_v21, 0.0 }
 0x5e8   :  { %4366 = vpow2.f32 %v2374_v43  ;;  %2387 = vadd.xlane.f32.xlu1 %v2386_v29 }
 0x5e9   :  { %3922 = vmatmul.msk.bf16.vlgmr.msrb.gmra.mxu2 %vm954_vm7, %v2410_v42 }
 0x5ea   :  { %3898 = vmatmul.msk.bf16.vlgmr.msra.gmra.mxu0 %vm954_vm7, %v1876_v15 }
 0x5eb   :  { %2234 = vmatpush.bf16.msrb.mxu0 %v4468_v31  ;;  %v1812_v35 = vpop.xlane.xlu1 %1811 }
 0x5ec   :  { %v1830_v10 = vsub.f32 %v5843_v44, %v1812_v35  ;;  %v5961_v18 = vpop.f32.mrf.mxu2 }
 0x5ee   :  { %v4367_v6 = vpop.eup %4366  ;;  %v1840_v7 = vmul.f32 1.442695, %v1830_v10 }
 0x5ef   :  { %2235 = vmatpush.bf16.msrb.mxu0 %v4469_v16  ;;  %v2392_v2 = vsel %vm954_vm7, %v4367_v6, 0.0  ;;  %v2411_v9 = vpack.c.bf16 %v4361_v61, %v4367_v6  ;;  %v1415_v16 = vadd.f32 %v5746_v52, %v5836_v37 }
 0x5f0   :  { %4368 = vpow2.f32 %v1840_v7  ;;  %2393 = vadd.xlane.f32.xlu0 %v2392_v2  ;;  %1856 = vadd.xlane.f32.xlu1 %v1855_v13 }
 0x5f3   :  { %v2352_v41 = vpop.xlane.xlu1 %2351 }
 0x5f4   :  { %v2366_v53 = vsub.f32 %v5852_v45, %v2352_v41  ;;  %v5965_v39 = vpop.f32.mrf.mxu2 }
 0x5f6   :  { %v4369_v59 = vpop.eup %4368  ;;  %v2378_v33 = vmul.f32 1.442695, %v2366_v53 }
 0x5f7   :  { %v1858_v1 = vsel %vm954_vm7, %v4369_v59, 0.0 }
 0x5f8   :  { %4370 = vpow2.f32 %v2378_v33  ;;  %1859 = vadd.xlane.f32.xlu1 %v1858_v1  ;;  %v4470_v33 = vld [vmem:[#allocation2 + $0x8] sm:$0xff] }
 0x5f9   :  { %3923 = vmatmul.msk.bf16.gmra.mxu2 %vm954_vm7, %v2411_v9 }
 0x5fb   :  { %v2358_v44 = vpop.xlane.xlu1 %2357 }
 0x5fc   :  { %v5968_v45 = vpop.f32.mrf.mxu2  ;;  %v2368_v21 = vsub.f32 %v5861_v50, %v2358_v44 }
 0x5fe   :  { %v4371_v47 = vpop.eup %4370 }
 0x5ff   :  { %v2398_v51 = vsel %vm954_vm7, %v4371_v47, 0.0 }
 0x600   :  { %2399 = vadd.xlane.f32.xlu2 %v2398_v51  ;;  %v5997_v51 = vld [vmem:[%s6659_s5] ss:$0 sm:$0xff]  ;;  %s3724_s5 = sshll.u32 %s6666_s12, 4  ;;  %s3725_s5 = int_to_ptr.hbm [resolvable:$true] %s3724_s5 }
 0x603   :  { %v1818_v19 = vpop.xlane.xlu1 %1817 }
 0x604   :  { %v1832_v46 = vsub.f32 %v5868_v48, %v1818_v19 }
 0x606   :  { %v1844_v55 = vmul.f32 1.442695, %v1832_v46 }
 0x60b   :  { %v1821_v24 = vpop.xlane.xlu1 %1820 }
 0x60c   :  { %v1833_v57 = vsub.f32 %v5878_v12, %v1821_v24  ;;  %v1423_v24 = vadd.f32 %v5775_v17, %v5863_v40  ;;  %v4472_v40 = vld [vmem:[#allocation2 + $0x20] sm:$0xff] }
 0x60d   :  { %v1815_v23 = vpop.xlane.xlu0 %1814 }
 0x60e   :  { %v1831_v61 = vsub.f32 %v5881_v8, %v1815_v23  ;;  %v1846_v30 = vmul.f32 1.442695, %v1833_v57 }
 0x610   :  { %v1842_v5 = vmul.f32 1.442695, %v1831_v61  ;;  %4372 = vpow2.f32 %v1846_v30  ;;  %v1719_v61 = vadd.f32 %v5952_v27, %v1423_v24 }
 0x611   :  { %v2355_v25 = vpop.xlane.xlu2 %2354  ;;  %v2135_v4 = vpop.f32.mrf.mxu2 }
 0x612   :  { %4374 = vpow2.f32 %v1842_v5  ;;  %v2367_v26 = vsub.f32 %v5890_v32, %v2355_v25  ;;  %v2382_v32 = vmul.f32 1.442695, %v2368_v21  ;;  %v4471_v21 = vld [vmem:[#allocation2] sm:$0xff] }
 0x613   :  { %v2361_v11 = vpop.xlane.xlu1 %2360 }
 0x614   :  { %v2380_v43 = vmul.f32 1.442695, %v2367_v26  ;;  %v2369_v48 = vsub.f32 %v5893_v62, %v2361_v11  ;;  %v1716_v62 = vadd.f32 %v5922_v54, %v1415_v16 }
 0x615   :  { %v1824_v15 = vpop.xlane.xlu0 %1823 }
 0x616   :  { %v1834_v12 = vsub.f32 %v5896_v0, %v1824_v15  ;;  %v5976_v42 = vpop.eup %4372  ;;  %4376 = vpow2.f32 %v2380_v43  ;;  %v2384_v6 = vmul.f32 1.442695, %v2369_v48  ;;  %v2537_v1 = vadd.f32 %v4470_v33, %v1716_v62 }
 0x617   :  { %4378 = vpow2.f32 %v1844_v55  ;;  %v1867_v31 = vsel %vm954_vm7, %v5976_v42, 0.0  ;;  %v2536_v43 = vadd.f32 %v4471_v21, %v5916_v22  ;;  %v2540_v15 = vadd.f32 %v4472_v40, %v1719_v61 }
 0x618   :  { %v4375_v8 = vpop.eup %4374  ;;  %v1848_v29 = vmul.f32 1.442695, %v1834_v12  ;;  %1868 = vadd.xlane.f32.xlu2 %v1867_v31  ;;  %v6002_v23 = vadd.f32 %v5997_v51, %v2537_v1  ;;  %v1420_v22 = vadd.f32 %v5768_v56, %v5855_v38  ;;  %v1425_v56 = vadd.f32 %v5786_v63, %v5872_v58  ;;  %v4474_v38 = vld [vmem:[#allocation2 + $0x18] sm:$0xff] }
 0x619   :  { %v1861_v35 = vsel %vm954_vm7, %v4375_v8, 0.0  ;;  %v1877_v50 = vpack.c.bf16 %v4375_v8, %v4369_v59  ;;  %v2079_v0 = vpop.xlane.xlu2 %2078  ;;  %v2137_v10 = vpop.f32.mrf.mxu2  ;;  %v6016_v48 = vadd.f32 %v5997_v51, %v2536_v43  ;;  %v6020_v31 = vadd.f32 %v5997_v51, %v2540_v15 }
 0x61a   :  { %4380 = vpow2.f32 %v1848_v29  ;;  %1862 = vadd.xlane.f32.xlu0 %v1861_v35  ;;  %v2575_v17 = vsel %vm102_vm0, %v6002_v23, 0.0  ;;  %v1718_v29 = vadd.f32 %v5943_v28, %v1420_v22 }
 0x61b   :  { %3899 = vmatmul.msk.bf16.gmra.mxu0 %vm954_vm7, %v1877_v50  ;;  %4382 = vrcp.f32 %v2079_v0  ;;  %v1827_v7 = vpop.xlane.xlu1 %1826  ;;  %v2572_v28 = vsel %vm102_vm0, %v6016_v48, 0.0  ;;  %v2584_v62 = vsel %vm102_vm0, %v6020_v31, 0.0 }
 0x61c   :  { %v4377_v2 = vpop.eup %4376  ;;  %4384 = vpow2.f32 %v2382_v32  ;;  %v1835_v13 = vsub.f32 %v5910_v34, %v1827_v7  ;;  %v4473_v32 = vld [vmem:[#allocation2 + $0x10] sm:$0xff] }
 0x61d   :  { %v2076_v41 = vpop.xlane.xlu0 %2075  ;;  %v4379_v53 = vpop.eup %4378  ;;  %v2401_v52 = vsel %vm954_vm7, %v4377_v2, 0.0  ;;  %v2412_v37 = vpack.c.bf16 %v4377_v2, %v4371_v47 }
 0x61e   :  { %4386 = vrcp.f32 %v2076_v41  ;;  %2402 = vadd.xlane.f32.xlu1 %v2401_v52  ;;  %v1850_v54 = vmul.f32 1.442695, %v1835_v13  ;;  %v1864_v9 = vsel %vm954_vm7, %v4379_v53, 0.0  ;;  %v4475_v13 = vld [vmem:[#allocation2 + $0x28] sm:$0xff] }
 0x61f   :  { %4388 = vpow2.f32 %v2384_v6  ;;  %3924 = vmatmul.msk.bf16.gmra.mxu2 %vm954_vm7, %v2412_v37  ;;  %v1720_v6 = vadd.f32 %v5961_v18, %v1425_v56  ;;  %v1428_v37 = vadd.f32 %v5795_v36, %v5883_v3  ;;  %v4476_v36 = vld [vmem:[#allocation2 + $0x30] sm:$0xff] }
 0x620   :  { %v5988_v59 = vpop.eup %4380  ;;  %4390 = vpow2.f32 %v1850_v54 }
 0x621   :  { %v1870_v34 = vsel %vm954_vm7, %v5988_v59, 0.0  ;;  %v4383_v44 = vpop.eup %4382  ;;  %v2140_v47 = vpop.f32.mrf.mxu2  ;;  %v2541_v41 = vadd.f32 %v4475_v13, %v1720_v6 }
 0x622   :  { %1865 = vadd.xlane.f32.xlu0 %v1864_v9  ;;  %1871 = vadd.xlane.f32.xlu2 %v1870_v34  ;;  %v4385_v19 = vpop.eup %4384  ;;  %v2164_v30 = vmul.f32 %v4383_v44, %v2137_v10  ;;  %v2539_v10 = vadd.f32 %v4474_v38, %v1718_v29  ;;  %v1721_v9 = vadd.f32 %v5965_v39, %v1428_v37  ;;  %v2088_v34 = vpop.xlane.xlu2 %2087 }
 0x623   :  { %v2082_v25 = vpop.xlane.xlu1 %2081  ;;  %v2404_v26 = vsel %vm954_vm7, %v4385_v19, 0.0  ;;  %v6047_v54 = vadd.f32 %v5997_v51, %v2541_v41 }
 0x624   :  { %v4387_v57 = vpop.eup %4386  ;;  %4392 = vrcp.f32 %v2082_v25  ;;  %v6036_v58 = vadd.f32 %v5997_v51, %v2539_v10  ;;  %v2542_v3 = vadd.f32 %v4476_v36, %v1721_v9 }
 0x625   :  { %v2163_v46 = vmul.f32 %v4387_v57, %v2135_v4  ;;  %v4389_v5 = vpop.eup %4388  ;;  %v2085_v11 = vpop.xlane.xlu0 %2084  ;;  %v1878_v4 = vpack.c.bf16 %v5976_v42, %v4379_v53  ;;  %v2538_v42 = vadd.f32 %v4473_v32, %v5930_v60 }
 0x626   :  { %2405 = vadd.xlane.f32.xlu1 %v2404_v26  ;;  %v2407_v27 = vsel %vm954_vm7, %v4389_v5, 0.0  ;;  %4394 = vrcp.f32 %v2085_v11  ;;  %v4391_v8 = vpop.eup %4390  ;;  %v2413_v50 = vpack.c.bf16 %v4389_v5, %v4385_v19  ;;  %v2581_v18 = vsel %vm102_vm0, %v6036_v58, 0.0 }
 0x627   :  { %v2171_v55 = vpack.c.bf16 %v2164_v30, %v2163_v46  ;;  %v1873_v35 = vsel %vm954_vm7, %v4391_v8, 0.0  ;;  %v6032_v60 = vadd.f32 %v5997_v51, %v2538_v42  ;;  %v1879_v1 = vpack.c.bf16 %v4391_v8, %v5988_v59 }
 0x628   :  { %v6054_v59 = vadd.f32 %v5997_v51, %v2542_v3 }
 0x629   :  { %3910 = vmatmul.msk.bf16.vlgmr.msrb.gmra.mxu3 %vm900_vm5, %v2171_v55  ;;  %v2142_v12 = vpop.f32.mrf.mxu2  ;;  %v2578_v53 = vsel %vm102_vm0, %v6032_v60, 0.0 }
 0x62a   :  { %2408 = vadd.xlane.f32.xlu0 %v2407_v27  ;;  %2576 = vadd.xlane.f32.xlu2 %v2575_v17  ;;  %v4393_v16 = vpop.eup %4392  ;;  %v2590_v30 = vsel %vm102_vm0, %v6054_v59, 0.0 }
 0x62b   :  { %3900 = vmatmul.msk.bf16.gmra.mxu0 %vm954_vm7, %v1878_v4  ;;  %v2165_v2 = vmul.f32 %v4393_v16, %v2140_v47  ;;  %v2091_v33 = vpop.xlane.xlu1 %2090  ;;  %v2587_v47 = vsel %vm102_vm0, %v6047_v54, 0.0 }
 0x62c   :  { %v4395_v0 = vpop.eup %4394  ;;  %4396 = vrcp.f32 %v2091_v33 }
 0x62d   :  { %v2166_v63 = vmul.f32 %v4395_v0, %v2142_v12  ;;  %4398 = vrcp.f32 %v2088_v34  ;;  %v2094_v25 = vpop.xlane.xlu0 %2093 }
 0x62e   :  { %1874 = vadd.xlane.f32.xlu1 %v1873_v35 }
 0x62f   :  { %3925 = vmatmul.msk.bf16.gmra.mxu2 %vm954_vm7, %v2413_v50  ;;  %v2172_v52 = vpack.c.bf16 %v2166_v63, %v2165_v2 }
 0x630   :  { %v2097_v5 = vpop.xlane.xlu2 %2096 }
 0x631   :  { %v2145_v7 = vpop.f32.mrf.mxu2  ;;  %4400 = vrcp.f32 %v2097_v5 }
 0x632   :  { %2573 = vadd.xlane.f32.xlu0 %v2572_v28  ;;  %2585 = vadd.xlane.f32.xlu2 %v2584_v62  ;;  %v4397_v19 = vpop.eup %4396  ;;  %4402 = vrcp.f32 %v2094_v25 }
 0x633   :  { %v4399_v57 = vpop.eup %4398 }
 0x634   :  { %v2167_v39 = vmul.f32 %v4399_v57, %v2145_v7 }
 0x636   :  { %2579 = vadd.xlane.f32.xlu1 %v2578_v53 }
 0x637   :  { %v4401_v55 = vpop.eup %4400 }
 0x638   :  { %v4403_v21 = vpop.eup %4402 }
 0x639   :  { %3911 = vmatmul.msk.bf16.gmra.mxu3 %vm900_vm5, %v2172_v52  ;;  %v2147_v44 = vpop.f32.mrf.mxu2 }
 0x63a   :  { %2582 = vadd.xlane.f32.xlu0 %v2581_v18  ;;  %v2168_v24 = vmul.f32 %v4397_v19, %v2147_v44 }
 0x63b   :  { %3901 = vmatmul.msk.bf16.gmra.mxu0 %vm954_vm7, %v1879_v1 }
 0x63c   :  { %v2173_v46 = vpack.c.bf16 %v2168_v24, %v2167_v39 }
 0x63e   :  { %2588 = vadd.xlane.f32.xlu1 %v2587_v47 }
 0x640   :  { %v2391_v12 = vpop.xlane.xlu0 %2390 }
 0x641   :  { %v2150_v61 = vpop.f32.mrf.mxu2 }
 0x642   :  { %v2169_v43 = vmul.f32 %v4403_v21, %v2150_v61 }
 0x646   :  { %2591 = vadd.xlane.f32.xlu1 %v2590_v30 }
 0x647   :  { %v1854_v15 = vpop.xlane.xlu2 %1853 }
 0x648   :  { %4404 = vrcp.f32 %v1854_v15 }
 0x649   :  { %3912 = vmatmul.msk.bf16.gmra.mxu3 %vm900_vm5, %v2173_v46  ;;  %v2152_v26 = vpop.f32.mrf.mxu2 }
 0x64a   :  { %v2170_v11 = vmul.f32 %v4401_v55, %v2152_v26 }
 0x64c   :  { %v2174_v17 = vpack.c.bf16 %v2170_v11, %v2169_v43 }
 0x64e   :  { %v4405_v22 = vpop.eup %4404 }
 0x650   :  { %v2397_v62 = vpop.xlane.xlu2 %2396 }
 0x659   :  { %3913 = vmatmul.msk.bf16.gmra.mxu3 %vm900_vm5, %v2174_v17  ;;  %v1430_v17 = vadd.f32 %v5803_v14, %v5902_v49  ;;  %v4477_v14 = vld [vmem:[#allocation2 + $0x38] sm:$0xff] }
 0x65b   :  { %v2388_v40 = vpop.xlane.xlu1 %2387  ;;  %v1722_v15 = vadd.f32 %v5968_v45, %v1430_v17 }
 0x65d   :  { %v2543_v49 = vadd.f32 %v4477_v14, %v1722_v15 }
 0x663   :  { %v1857_v27 = vpop.xlane.xlu1 %1856  ;;  %v2394_v6 = vpop.xlane.xlu0 %2393 }
 0x664   :  { %4406 = vrcp.f32 %v1857_v27 }
 0x665   :  { %4408 = vrcp.f32 %v2391_v12 }
 0x666   :  { %4410 = vrcp.f32 %v2388_v40 }
 0x667   :  { %v1913_v4 = vpop.f32.mrf.mxu0  ;;  %4412 = vrcp.f32 %v2397_v62 }
 0x668   :  { %v1941_v42 = vmul.f32 %v4405_v22, %v1913_v4  ;;  %4414 = vrcp.f32 %v2394_v6 }
 0x66a   :  { %v4407_v29 = vpop.eup %4406 }
 0x66b   :  { %v4409_v16 = vpop.eup %4408  ;;  %v1860_v33 = vpop.xlane.xlu1 %1859 }
 0x66c   :  { %v2447_v8 = vpop.f32.mrf.mxu2  ;;  %v4411_v0 = vpop.eup %4410  ;;  %4416 = vrcp.f32 %v1860_v33 }
 0x66d   :  { %v2475_v38 = vmul.f32 %v4411_v0, %v2447_v8  ;;  %v4413_v2 = vpop.eup %4412 }
 0x66e   :  { %v4415_v13 = vpop.eup %4414 }
 0x66f   :  { %v1915_v32 = vpop.f32.mrf.mxu0 }
 0x670   :  { %v1942_v35 = vmul.f32 %v4407_v29, %v1915_v32 }
 0x672   :  { %v1949_v50 = vpack.c.bf16 %v1942_v35, %v1941_v42  ;;  %v4417_v57 = vpop.eup %4416 }
 0x673   :  { %v2400_v63 = vpop.xlane.xlu2 %2399 }
 0x674   :  { %3914 = vmatmul.msk.bf16.vlgmr.msrb.gmra.mxu0 %vm900_vm5, %v1949_v50  ;;  %v2449_v56 = vpop.f32.mrf.mxu2 }
 0x675   :  { %v2476_v10 = vmul.f32 %v4409_v16, %v2449_v56 }
 0x677   :  { %v2483_v28 = vpack.c.bf16 %v2476_v10, %v2475_v38 }
 0x679   :  { %3926 = vmatmul.msk.bf16.vlgmr.msra.gmra.mxu3 %vm900_vm5, %v2483_v28 }
 0x67c   :  { %v2452_v7 = vpop.f32.mrf.mxu2 }
 0x67d   :  { %v2477_v53 = vmul.f32 %v4415_v13, %v2452_v7 }
 0x684   :  { %v2454_v41 = vpop.f32.mrf.mxu2 }
 0x685   :  { %v2478_v52 = vmul.f32 %v4413_v2, %v2454_v41  ;;  %v6091_v2 = vadd.f32 %v5997_v51, %v2543_v49 }
 0x687   :  { %v2484_v37 = vpack.c.bf16 %v2478_v52, %v2477_v53 }
 0x689   :  { %3927 = vmatmul.msk.bf16.gmra.mxu3 %vm900_vm5, %v2484_v37 }
 0x68b   :  { %v1869_v18 = vpop.xlane.xlu2 %1868 }
 0x68d   :  { %v1863_v1 = vpop.xlane.xlu0 %1862 }
 0x68e   :  { %4418 = vrcp.f32 %v1863_v1 }
 0x68f   :  { %4420 = vrcp.f32 %v2400_v63 }
 0x691   :  { %v2403_v9 = vpop.xlane.xlu1 %2402 }
 0x692   :  { %4422 = vrcp.f32 %v2403_v9  ;;  %v2593_v9 = vsel %vm102_vm0, %v6091_v2, 0.0 }
 0x693   :  { %4424 = vrcp.f32 %v1869_v18 }
 0x694   :  { %v4419_v39 = vpop.eup %4418 }
 0x695   :  { %v6063_v34 = vpop.xlane.xlu2 %1871  ;;  %v1866_v44 = vpop.xlane.xlu0 %1865 }
 0x696   :  { %v4421_v12 = vpop.eup %4420  ;;  %4426 = vrcp.f32 %v1866_v44 }
 0x698   :  { %v1918_v36 = vpop.f32.mrf.mxu0  ;;  %v4423_v29 = vpop.eup %4422 }
 0x699   :  { %v2406_v3 = vpop.xlane.xlu1 %2405  ;;  %v1943_v46 = vmul.f32 %v4417_v57, %v1918_v36  ;;  %v4425_v28 = vpop.eup %4424 }
 0x69a   :  { %4428 = vrcp.f32 %v2406_v3 }
 0x69c   :  { %v4427_v7 = vpop.eup %4426 }
 0x69d   :  { %v2577_v47 = vpop.xlane.xlu2 %2576  ;;  %v2409_v19 = vpop.xlane.xlu0 %2408 }
 0x69e   :  { %v2621_v24 = vmul.f32 %v2577_v47, %v4682_v20  ;;  %4430 = vrcp.f32 %v2409_v19 }
 0x69f   :  { %4432 = vrcp.f32 %v6063_v34 }
 0x6a0   :  { %v6067_v61 = vsub.f32 %v6002_v23, %v2621_v24  ;;  %v1920_v30 = vpop.f32.mrf.mxu0  ;;  %v4429_v57 = vpop.eup %4428 }
 0x6a1   :  { %v1944_v5 = vmul.f32 %v4419_v39, %v1920_v30  ;;  %v1875_v25 = vpop.xlane.xlu1 %1874 }
 0x6a2   :  { %v2653_v26 = vmul.f32 %v6067_v61, %v6067_v61  ;;  %v2457_v11 = vpop.f32.mrf.mxu2  ;;  %4434 = vrcp.f32 %v1875_v25 }
 0x6a3   :  { %v1950_v55 = vpack.c.bf16 %v1944_v5, %v1943_v46  ;;  %v2479_v35 = vmul.f32 %v4421_v12, %v2457_v11 }
 0x6a4   :  { %v2671_v21 = vsel %vm102_vm0, %v2653_v26, 0.0  ;;  %v4431_v39 = vpop.eup %4430 }
 0x6a5   :  { %2672 = vadd.xlane.f32.xlu2 %v2671_v21  ;;  %3915 = vmatmul.msk.bf16.gmra.mxu0 %vm900_vm5, %v1950_v55  ;;  %v2574_v43 = vpop.xlane.xlu0 %2573  ;;  %v2586_v56 = vpop.xlane.xlu2 %2585 }
 0x6a6   :  { %v2620_v40 = vmul.f32 %v2574_v43, %v4682_v20  ;;  %v2624_v41 = vmul.f32 %v2586_v56, %v4682_v20  ;;  %v4433_v55 = vpop.eup %4432 }
 0x6a8   :  { %v6078_v27 = vsub.f32 %v6016_v48, %v2620_v40  ;;  %v1923_v4 = vpop.f32.mrf.mxu0  ;;  %v6105_v36 = vsub.f32 %v6020_v31, %v2624_v41  ;;  %v4435_v11 = vpop.eup %4434  ;;  %v4162_v41 = vld [vmem:[%s6662_s8 + $0x80] sm:$0xf0] }
 0x6a9   :  { %v2580_v8 = vpop.xlane.xlu1 %2579  ;;  %v1945_v53 = vmul.f32 %v4427_v7, %v1923_v4 }
 0x6aa   :  { %v2652_v22 = vmul.f32 %v6078_v27, %v6078_v27  ;;  %v2622_v32 = vmul.f32 %v2580_v8, %v4682_v20  ;;  %v2459_v42 = vpop.f32.mrf.mxu2  ;;  %v2656_v3 = vmul.f32 %v6105_v36, %v6105_v36 }
 0x6ab   :  { %v2480_v50 = vmul.f32 %v4423_v29, %v2459_v42 }
 0x6ac   :  { %v2668_v45 = vsel %vm102_vm0, %v2652_v22, 0.0  ;;  %v6085_v16 = vsub.f32 %v6032_v60, %v2622_v32  ;;  %v2196_v62 = vpop.f32.mrf.mxu3  ;;  %v2680_v5 = vsel %vm102_vm0, %v2656_v3, 0.0 }
 0x6ad   :  { %2669 = vadd.xlane.f32.xlu0 %v2668_v45  ;;  %v2583_v0 = vpop.xlane.xlu0 %2582  ;;  %v2485_v38 = vpack.c.bf16 %v2480_v50, %v2479_v35  ;;  %v4478_v35 = vld [vmem:[#allocation2 + $0x40] sm:$0xff] }
 0x6ae   :  { %v2623_v10 = vmul.f32 %v2583_v0, %v4682_v20  ;;  %v2654_v6 = vmul.f32 %v6085_v16, %v6085_v16 }
 0x6af   :  { %3928 = vmatmul.msk.bf16.gmra.mxu3 %vm900_vm5, %v2485_v38 }
 0x6b0   :  { %v6094_v63 = vsub.f32 %v6036_v58, %v2623_v10  ;;  %v1925_v13 = vpop.f32.mrf.mxu0  ;;  %v2674_v37 = vsel %vm102_vm0, %v2654_v6, 0.0 }
 0x6b1   :  { %v1946_v52 = vmul.f32 %v4425_v28, %v1925_v13  ;;  %2675 = vadd.xlane.f32.xlu2 %v2674_v37  ;;  %v2589_v29 = vpop.xlane.xlu1 %2588  ;;  %v3992_v13 = vld [vmem:[%s6662_s8 + $0x78] sm:$0xf] }
 0x6b2   :  { %v2655_v33 = vmul.f32 %v6094_v63, %v6094_v63  ;;  %v2462_v1 = vpop.f32.mrf.mxu2  ;;  %v2625_v49 = vmul.f32 %v2589_v29, %v4682_v20  ;;  %v4156_v29 = vld [vmem:[%s6662_s8 + $0x50] sm:$0xf0] }
 0x6b3   :  { %v1951_v18 = vpack.c.bf16 %v1946_v52, %v1945_v53  ;;  %v2481_v46 = vmul.f32 %v4429_v57, %v2462_v1  ;;  %v4161_v53 = vld [vmem:[%s6662_s8 + $0x7c] sm:$0xf]  ;;  %v4479_v52 = vld [vmem:[#allocation2 + $0x48] sm:$0xff] }
 0x6b4   :  { %v2677_v44 = vsel %vm102_vm0, %v2655_v33, 0.0  ;;  %v2198_v24 = vpop.f32.mrf.mxu3  ;;  %v6131_v38 = vsub.f32 %v6047_v54, %v2625_v49  ;;  %v3994_v1 = vld [vmem:[%s6662_s8 + $0x84] sm:$0xf0]  ;;  %v3976_v49 = vld [vmem:[%s6662_s8 + $0x50] sm:$0xf] }
 0x6b5   :  { %3916 = vmatmul.msk.bf16.gmra.mxu0 %vm900_vm5, %v1951_v18  ;;  %2594 = vadd.xlane.f32.xlu0 %v2593_v9  ;;  %v3993_v18 = vor.u32 %v4162_v41, %v3992_v13  ;;  %v4000_v9 = vld [vmem:[%s6662_s8 + $0x80] sm:$0xf]  ;;  %v3964_v13 = vld [vmem:[%s6662_s8 + $0x38] sm:$0xf]  ;;  %v4154_v41 = vld [vmem:[%s6662_s8 + $0x40] sm:$0xf0] }
 0x6b6   :  { %2678 = vadd.xlane.f32.xlu1 %v2677_v44  ;;  %v2657_v33 = vmul.f32 %v6131_v38, %v6131_v38  ;;  %v4163_v44 = vld [vmem:[%s6662_s8 + $0x88] sm:$0xf0] }
 0x6b7   :  { %3126 = vmatpush.bf16.msra.mxu0 %v3993_v18  ;;  %v4149_v18 = vld [vmem:[%s6662_s8 + $0x1c] sm:$0xf] }
 0x6b8   :  { %v1928_v47 = vpop.f32.mrf.mxu0 }
 0x6b9   :  { %v1947_v34 = vmul.f32 %v4433_v55, %v1928_v47  ;;  %v2592_v56 = vpop.xlane.xlu1 %2591  ;;  %v3997_v47 = vor.u32 %v4161_v53, %v3994_v1  ;;  %v3982_v55 = vld [vmem:[%s6662_s8 + $0x6c] sm:$0xf0] }
 0x6ba   :  { %v2464_v30 = vpop.f32.mrf.mxu2 }
 0x6bb   :  { %v2482_v19 = vmul.f32 %v4431_v39, %v2464_v30  ;;  %3175 = vmatpush.bf16.msrb.mxu1 %v3997_v47  ;;  %v3980_v39 = vld [vmem:[%s6662_s8 + $0x60] sm:$0xf]  ;;  %v4159_v30 = vld [vmem:[%s6662_s8 + $0x68] sm:$0xf0] }
 0x6bc   :  { %v6113_v17 = vpop.f32.mrf.mxu3  ;;  %v3952_v47 = vld [vmem:[%s6662_s8 + $0x20] sm:$0xf] }
 0x6bd   :  { %v2486_v26 = vpack.c.bf16 %v2482_v19, %v2481_v46  ;;  %v4158_v46 = vld [vmem:[%s6662_s8 + $0x64] sm:$0xf] }
 0x6be   :  { %2681 = vadd.xlane.f32.xlu1 %v2680_v5  ;;  %v2683_v5 = vsel %vm102_vm0, %v2657_v33, 0.0  ;;  %v4150_v33 = vld [vmem:[%s6662_s8 + $0x20] sm:$0xf0] }
 0x6bf   :  { %3929 = vmatmul.msk.bf16.gmra.mxu3 %vm900_vm5, %v2486_v26  ;;  %v3981_v26 = vor.u32 %v4159_v30, %v3980_v39 }
 0x6c0   :  { %v1930_v21 = vpop.f32.mrf.mxu0 }
 0x6c1   :  { %v1948_v43 = vmul.f32 %v4435_v11, %v1930_v21  ;;  %v3988_v11 = vld [vmem:[%s6662_s8 + $0x68] sm:$0xf]  ;;  %v3985_v21 = vor.u32 %v4158_v46, %v3982_v55  ;;  %3127 = vmatpush.bf16.msra.mxu0 %v3981_v26  ;;  %v4147_v26 = vld [vmem:[%s6662_s8 + $0x8] sm:$0xf0] }
 0x6c3   :  { %v1952_v40 = vpack.c.bf16 %v1948_v43, %v1947_v34  ;;  %v4160_v34 = vld [vmem:[%s6662_s8 + $0x70] sm:$0xf0]  ;;  %3176 = vmatpush.bf16.msrb.mxu1 %v3985_v21  ;;  %v3934_v21 = vld [vmem:[%s6662_s8 + $0xc] sm:$0xf0] }
 0x6c4   :  { %v6116_v25 = vpop.f32.mrf.mxu3 }
 0x6c5   :  { %3917 = vmatmul.msk.bf16.gmra.mxu0 %vm900_vm5, %v1952_v40  ;;  %v3989_v40 = vor.u32 %v4160_v34, %v3988_v11  ;;  %v4146_v11 = vld [vmem:[%s6662_s8 + $0x4] sm:$0xf]  ;;  %v3940_v34 = vld [vmem:[%s6662_s8 + $0x8] sm:$0xf] }
 0x6cc   :  { %v6118_v15 = vpop.f32.mrf.mxu3 }
 0x6d4   :  { %v6120_v4 = vpop.f32.mrf.mxu3 }
 0x6dc   :  { %v6122_v12 = vpop.f32.mrf.mxu3 }
 0x6e4   :  { %v6124_v8 = vpop.f32.mrf.mxu3 }
 0x6f1   :  { %v2237_v22 = vpop.f32.mrf.mxu0 }
 0x6f2   :  { %v2238_v32 = vadd.f32 %v2237_v22, %v2196_v62  ;;  %v2626_v62 = vmul.f32 %v2592_v56, %v4682_v20  ;;  %v3968_v22 = vld [vmem:[%s6662_s8 + $0x48] sm:$0xf] }
 0x6f4   :  { %v6157_v3 = vsub.f32 %v6054_v59, %v2626_v62 }
 0x6f6   :  { %v2658_v43 = vmul.f32 %v6157_v3, %v6157_v3 }
 0x6f8   :  { %v2686_v56 = vsel %vm102_vm0, %v2658_v43, 0.0  ;;  %v3937_v43 = vor.u32 %v4146_v11, %v3934_v21  ;;  %v4481_v21 = vld [vmem:[#allocation2 + $0x58] sm:$0xff] }
 0x6f9   :  { %v2239_v45 = vpop.f32.mrf.mxu0 }
 0x6fa   :  { %v2240_v10 = vadd.f32 %v2239_v45, %v2198_v24  ;;  %v4001_v24 = vor.u32 %v4163_v44, %v4000_v9  ;;  %v3946_v44 = vld [vmem:[%s6662_s8 + $0x24] sm:$0xf0] }
 0x6fb   :  { %v3949_v30 = vor.u32 %v4149_v18, %v3946_v44 }
 0x6fc   :  { %v2508_v42 = vpop.f32.mrf.mxu3  ;;  %3224 = vmatpush.bf16.msra.mxu2 %v4001_v24  ;;  %v4151_v24 = vld [vmem:[%s6662_s8 + $0x28] sm:$0xf0] }
 0x6fd   :  { %v2528_v14 = vadd.f32 %v2508_v42, %v2238_v32  ;;  %v4155_v32 = vld [vmem:[%s6662_s8 + $0x4c] sm:$0xf]  ;;  %v3969_v42 = vor.u32 %v4156_v29, %v3968_v22  ;;  %v3953_v46 = vor.u32 %v4151_v24, %v3952_v47 }
 0x6ff   :  { %v2544_v50 = vadd.f32 %v4478_v35, %v2528_v14  ;;  %v3970_v14 = vld [vmem:[%s6662_s8 + $0x54] sm:$0xf0]  ;;  %v4157_v35 = vld [vmem:[%s6662_s8 + $0x58] sm:$0xf0]  ;;  %3128 = vmatpush.bf16.msra.mxu0 %v3969_v42 }
 0x700   :  { %3225 = vmatpush.bf16.msra.mxu2 %v3989_v40  ;;  %v3977_v45 = vor.u32 %v4157_v35, %v3976_v49  ;;  %v4148_v40 = vld [vmem:[%s6662_s8 + $0x10] sm:$0xf0] }
 0x701   :  { %v6128_v0 = vadd.f32 %v5997_v51, %v2544_v50  ;;  %v3973_v50 = vor.u32 %v4155_v32, %v3970_v14  ;;  %v3941_v22 = vor.u32 %v4148_v40, %v3940_v34 }
 0x703   :  { %v2596_v28 = vsel %vm102_vm0, %v6128_v0, 0.0  ;;  %3177 = vmatpush.bf16.msrb.mxu1 %v3973_v50 }
 0x704   :  { %v2510_v6 = vpop.f32.mrf.mxu3  ;;  %2597 = vadd.xlane.f32.xlu0 %v2596_v28  ;;  %v4153_v28 = vld [vmem:[%s6662_s8 + $0x38] sm:$0xf0]  ;;  %3226 = vmatpush.bf16.msra.mxu2 %v3977_v45 }
 0x705   :  { %v2529_v7 = vadd.f32 %v2510_v6, %v2240_v10  ;;  %v3956_v10 = vld [vmem:[%s6662_s8 + $0x30] sm:$0xf]  ;;  %v4152_v6 = vld [vmem:[%s6662_s8 + $0x34] sm:$0xf] }
 0x706   :  { %v3957_v62 = vor.u32 %v4153_v28, %v3956_v10 }
 0x707   :  { %v2545_v37 = vadd.f32 %v4479_v52, %v2529_v7  ;;  %v3958_v7 = vld [vmem:[%s6662_s8 + $0x3c] sm:$0xf0]  ;;  %v3965_v52 = vor.u32 %v4154_v41, %v3964_v13 }
 0x708   :  { %v3961_v53 = vor.u32 %v4152_v6, %v3958_v7  ;;  %3129 = vmatpush.bf16.msra.mxu0 %v3957_v62  ;;  %v4480_v62 = vld [vmem:[#allocation2 + $0x50] sm:$0xff] }
 0x709   :  { %v6160_v57 = vadd.f32 %v5997_v51, %v2545_v37  ;;  %v3944_v37 = vld [vmem:[%s6662_s8 + $0x18] sm:$0xf]  ;;  %3227 = vmatpush.bf16.msra.mxu2 %v3965_v52 }
 0x70a   :  { %3178 = vmatpush.bf16.msrb.mxu1 %v3961_v53  ;;  %v3945_v9 = vor.u32 %v4150_v33, %v3944_v37 }
 0x70b   :  { %v2599_v19 = vsel %vm102_vm0, %v6160_v57, 0.0 }
 0x70c   :  { %2600 = vadd.xlane.f32.xlu2 %v2599_v19  ;;  %2684 = vadd.xlane.f32.xlu0 %v2683_v5  ;;  %v3932_v5 = vld [vmem:[%s6662_s8] sm:$0xf]  ;;  %v2513_v32 = vpop.f32.mrf.mxu3 }
 0x70d   :  { %3130 = vmatpush.bf16.msra.mxu0 %v3945_v9  ;;  %3228 = vmatpush.bf16.msra.mxu2 %v3953_v46  ;;  %v3933_v55 = vor.u32 %v4147_v26, %v3932_v5 }
 0x70e   :  { %3179 = vmatpush.bf16.msrb.mxu1 %v3949_v30 }
 0x711   :  { %3131 = vmatpush.bf16.msra.mxu0 %v3933_v55  ;;  %3229 = vmatpush.bf16.msra.mxu2 %v3941_v22 }
 0x712   :  { %3180 = vmatpush.bf16.msrb.mxu1 %v3937_v43 }
 0x714   :  { %2687 = vadd.xlane.f32.xlu0 %v2686_v56  ;;  %v2515_v44 = vpop.f32.mrf.mxu3 }
 0x718   :  { %v2673_v1 = vpop.xlane.xlu2 %2672 }
 0x719   :  { %v2717_v39 = vmul.f32 %v2673_v1, %v4682_v20 }
 0x71b   :  { %v2733_v19 = vadd.f32 1e-05, %v2717_v39 }
 0x71d   :  { %4436 = vrsqrt.f32 %v2733_v19  ;;  %vm2764_vm1 = vweird.f32 %v2733_v19 }
 0x720   :  { %v2670_v29 = vpop.xlane.xlu0 %2669 }
 0x721   :  { %v2716_v42 = vmul.f32 %v2670_v29, %v4682_v20 }
 0x722   :  { %v2242_v14 = vpop.f32.mrf.mxu0 }
 0x723   :  { %v4437_v49 = vpop.eup %4436  ;;  %v2732_v35 = vadd.f32 1e-05, %v2716_v42  ;;  %v2243_v50 = vadd.f32 %v2242_v14, %v6113_v17 }
 0x724   :  { %v2759_v45 = vmul.f32 %v4437_v49, %v2733_v19  ;;  %v2676_v10 = vpop.xlane.xlu2 %2675  ;;  %vm2765_vm15 = vweird.f32 %v4437_v49  ;;  %v6288_v19 = vld [vmem:[%s6660_s6] ss:$0 sm:$0xff] }
 0x725   :  { %4438 = vrsqrt.f32 %v2732_v35  ;;  %v2530_v56 = vadd.f32 %v2513_v32, %v2243_v50  ;;  %v2718_v6 = vmul.f32 %v2676_v10, %v4682_v20  ;;  %vm2766_vm2 = vmor %vm2764_vm1, %vm2765_vm15  ;;  %vm2754_vm4 = vweird.f32 %v2732_v35 }
 0x726   :  { %v2760_v28 = vmul.f32 %v4437_v49, %v2759_v45 }
 0x727   :  { %v2546_v7 = vadd.f32 %v4480_v62, %v2530_v56  ;;  %v6262_v41 = vadd.f32 1e-05, %v2718_v6 }
 0x728   :  { %v2761_v13 = vmul.f32 0.5, %v2760_v28  ;;  %v2595_v53 = vpop.xlane.xlu0 %2594 }
 0x729   :  { %v2679_v52 = vpop.xlane.xlu1 %2678  ;;  %v2627_v37 = vmul.f32 %v2595_v53, %v4682_v20  ;;  %v6266_v33 = vadd.f32 %v5997_v51, %v2546_v7  ;;  %4440 = vrsqrt.f32 %v6262_v41  ;;  %vm2774_vm9 = vweird.f32 %v6262_v41 }
 0x72a   :  { %v2762_v17 = vsub.f32 1.5, %v2761_v13  ;;  %v2719_v18 = vmul.f32 %v2679_v52, %v4682_v20  ;;  %v2244_v1 = vpop.f32.mrf.mxu0  ;;  %v6299_v13 = vld [vmem:[%s6661_s7] ss:$0 sm:$0xff] }
 0x72b   :  { %v4439_v9 = vpop.eup %4438  ;;  %v6271_v47 = vsub.f32 %v6091_v2, %v2627_v37  ;;  %v2245_v24 = vadd.f32 %v2244_v1, %v6116_v25  ;;  %v2602_v39 = vsel %vm102_vm0, %v6266_v33, 0.0 }
 0x72c   :  { %v2763_v30 = vmul.f32 %v4437_v49, %v2762_v17  ;;  %v2749_v46 = vmul.f32 %v4439_v9, %v2732_v35  ;;  %v2735_v5 = vadd.f32 1e-05, %v2719_v18  ;;  %2603 = vadd.xlane.f32.xlu2 %v2602_v39  ;;  %vm2755_vm3 = vweird.f32 %v4439_v9  ;;  %v4482_v17 = vld [vmem:[#allocation2 + $0x60] sm:$0xff] }
 0x72d   :  { %v2531_v26 = vadd.f32 %v2515_v44, %v2245_v24  ;;  %v2659_v43 = vmul.f32 %v6271_v47, %v6271_v47  ;;  %vm2756_vm5 = vmor %vm2754_vm4, %vm2755_vm3 }
 0x72e   :  { %v2750_v55 = vmul.f32 %v4439_v9, %v2749_v46  ;;  %4442 = vrsqrt.f32 %v2735_v5  ;;  %v2767_v11 = vsel %vm2766_vm2, %v4437_v49, %v2763_v30  ;;  %vm2784_vm8 = vweird.f32 %v2735_v5 }
 0x72f   :  { %v2547_v34 = vadd.f32 %v4481_v21, %v2531_v26  ;;  %v6278_v40 = vpop.eup %4440  ;;  %v2909_v32 = vmul.f32 %v2767_v11, %v6067_v61  ;;  %v2689_v10 = vsel %vm102_vm0, %v2659_v43, 0.0 }
 0x730   :  { %v2751_v25 = vmul.f32 0.5, %v2750_v55  ;;  %v2769_v22 = vmul.f32 %v6278_v40, %v6262_v41  ;;  %vm2775_vm7 = vweird.f32 %v6278_v40 }
 0x731   :  { %v6283_v29 = vadd.f32 %v5997_v51, %v2547_v34  ;;  %vm2776_vm11 = vmor %vm2774_vm9, %vm2775_vm7 }
 0x732   :  { %v2752_v42 = vsub.f32 1.5, %v2751_v25  ;;  %v2247_v14 = vpop.f32.mrf.mxu0  ;;  %v2770_v49 = vmul.f32 %v6278_v40, %v2769_v22  ;;  %v2518_v45 = vpop.f32.mrf.mxu3  ;;  %v4483_v22 = vld [vmem:[#allocation2 + $0x68] sm:$0xff] }
 0x733   :  { %v2248_v50 = vadd.f32 %v2247_v14, %v6118_v15  ;;  %v2605_v56 = vsel %vm102_vm0, %v6283_v29, 0.0  ;;  %v2929_v15 = vmul.f32 %v6288_v19, %v2909_v32 }
 0x734   :  { %v4443_v28 = vpop.eup %4442  ;;  %v2753_v6 = vmul.f32 %v4439_v9, %v2752_v42  ;;  %2606 = vadd.xlane.f32.xlu1 %v2605_v56  ;;  %2690 = vadd.xlane.f32.xlu2 %v2689_v10  ;;  %v2771_v61 = vmul.f32 0.5, %v2770_v49  ;;  %v4484_v10 = vld [vmem:[#allocation2 + $0x70] sm:$0xff] }
 0x735   :  { %v2779_v62 = vmul.f32 %v4443_v28, %v2735_v5  ;;  %v2532_v7 = vadd.f32 %v2518_v45, %v2248_v50  ;;  %v2949_v39 = vadd.f32 %v6299_v13, %v2929_v15  ;;  %vm2785_vm6 = vweird.f32 %v4443_v28 }
 0x736   :  { %v2757_v53 = vsel %vm2756_vm5, %v4439_v9, %v2753_v6  ;;  %v2772_v35 = vsub.f32 1.5, %v2771_v61  ;;  %vm2786_vm10 = vmor %vm2784_vm8, %vm2785_vm6 }
 0x737   :  { %v2908_v52 = vmul.f32 %v2757_v53, %v6078_v27  ;;  %v2780_v37 = vmul.f32 %v4443_v28, %v2779_v62  ;;  %v2548_v18 = vadd.f32 %v4482_v17, %v2532_v7  ;;  %v2682_v7 = vpop.xlane.xlu1 %2681 }
 0x738   :  { %v2773_v55 = vmul.f32 %v6278_v40, %v2772_v35  ;;  %v2720_v15 = vmul.f32 %v2682_v7, %v4682_v20  ;;  %v4169_v7 = vld [vmem:[%s6664_s10 + $0x28] sm:$0xff] }
 0x739   :  { %v2928_v1 = vmul.f32 %v6288_v19, %v2908_v52  ;;  %v2781_v44 = vmul.f32 0.5, %v2780_v37  ;;  %v6305_v24 = vadd.f32 %v5997_v51, %v2548_v18 }
 0x73a   :  { %v2249_v30 = vpop.f32.mrf.mxu0  ;;  %v2520_v27 = vpop.f32.mrf.mxu3  ;;  %v2736_v53 = vadd.f32 1e-05, %v2720_v15 }
 0x73b   :  { %v2948_v46 = vadd.f32 %v6299_v13, %v2928_v1  ;;  %v2782_v26 = vsub.f32 1.5, %v2781_v44  ;;  %v2250_v9 = vadd.f32 %v2249_v30, %v6120_v4  ;;  %v2608_v11 = vsel %vm102_vm0, %v6305_v24, 0.0 }
 0x73c   :  { %2609 = vadd.xlane.f32.xlu1 %v2608_v11  ;;  %v2777_v4 = vsel %vm2776_vm11, %v6278_v40, %v2773_v55  ;;  %4444 = vrsqrt.f32 %v2736_v53  ;;  %vm2794_vm13 = vweird.f32 %v2736_v53 }
 0x73d   :  { %v2964_v21 = vpack.c.bf16 %v2949_v39, %v2948_v46  ;;  %v2783_v34 = vmul.f32 %v4443_v28, %v2782_v26  ;;  %v2533_v43 = vadd.f32 %v2520_v27, %v2250_v9  ;;  %v2910_v14 = vmul.f32 %v2777_v4, %v6085_v16  ;;  %v4485_v26 = vld [vmem:[#allocation2 + $0x78] sm:$0xff] }
 0x73f   :  { %v2787_v25 = vsel %vm2786_vm10, %v4443_v28, %v2783_v34  ;;  %4002 = vmatmul.msk.bf16.vlgmr.msra.gmra.mxu0 %vm102_vm0, %v2964_v21  ;;  %4010 = vmatmul.msk.bf16.vlgmr.msrb.gmra.mxu1 %vm102_vm0, %v2964_v21  ;;  %v2549_v32 = vadd.f32 %v4483_v22, %v2533_v43 }
 0x740   :  { %4018 = vmatmul.msk.bf16.vlgmr.msra.gmra.mxu2 %vm102_vm0, %v2964_v21  ;;  %v2911_v42 = vmul.f32 %v2787_v25, %v6094_v63  ;;  %v2930_v63 = vmul.f32 %v6288_v19, %v2910_v14 }
 0x741   :  { %v6321_v5 = vadd.f32 %v5997_v51, %v2549_v32 }
 0x742   :  { %v2252_v41 = vpop.f32.mrf.mxu0  ;;  %v2523_v50 = vpop.f32.mrf.mxu3  ;;  %v2931_v40 = vmul.f32 %v6288_v19, %v2911_v42 }
 0x743   :  { %v2253_v49 = vadd.f32 %v2252_v41, %v6122_v12  ;;  %v2611_v45 = vsel %vm102_vm0, %v6321_v5, 0.0  ;;  %v2950_v12 = vadd.f32 %v6299_v13, %v2930_v63  ;;  %v4445_v35 = vpop.eup %4444  ;;  %v4170_v63 = vld [vmem:[%s6664_s10 + $0x30] sm:$0xff] }
 0x744   :  { %2612 = vadd.xlane.f32.xlu0 %v2611_v45  ;;  %v2951_v61 = vadd.f32 %v6299_v13, %v2931_v40  ;;  %v2789_v30 = vmul.f32 %v4445_v35, %v2736_v53  ;;  %vm2795_vm12 = vweird.f32 %v4445_v35  ;;  %v4171_v45 = vld [vmem:[%s6664_s10 + $0x38] sm:$0xff] }
 0x745   :  { %v2534_v56 = vadd.f32 %v2523_v50, %v2253_v49  ;;  %3539 = vmatpush.bf16.msrb.mxu3 %v4171_v45  ;;  %vm2796_vm14 = vmor %vm2794_vm13, %vm2795_vm12 }
 0x746   :  { %v2965_v62 = vpack.c.bf16 %v2951_v61, %v2950_v12  ;;  %v2790_v55 = vmul.f32 %v4445_v35, %v2789_v30 }
 0x747   :  { %v2550_v28 = vadd.f32 %v4484_v10, %v2534_v56 }
 0x748   :  { %v2791_v22 = vmul.f32 0.5, %v2790_v55 }
 0x749   :  { %v6330_v6 = vadd.f32 %v5997_v51, %v2550_v28  ;;  %3540 = vmatpush.bf16.msrb.mxu3 %v4170_v63 }
 0x74a   :  { %v2254_v52 = vpop.f32.mrf.mxu0  ;;  %v2525_v17 = vpop.f32.mrf.mxu3  ;;  %v2792_v14 = vsub.f32 1.5, %v2791_v22 }
 0x74b   :  { %v2614_v16 = vsel %vm102_vm0, %v6330_v6, 0.0  ;;  %v2255_v37 = vadd.f32 %v2254_v52, %v6124_v8 }
 0x74c   :  { %2615 = vadd.xlane.f32.xlu0 %v2614_v16 }
 0x74d   :  { %v2535_v44 = vadd.f32 %v2525_v17, %v2255_v37  ;;  %3541 = vmatpush.bf16.msrb.mxu3 %v4169_v7  ;;  %v4168_v17 = vld [vmem:[%s6664_s10 + $0x20] sm:$0xff] }
 0x74f   :  { %4003 = vmatmul.msk.bf16.gmra.mxu0 %vm102_vm0, %v2965_v62  ;;  %4011 = vmatmul.msk.bf16.gmra.mxu1 %vm102_vm0, %v2965_v62  ;;  %v2551_v9 = vadd.f32 %v4485_v26, %v2535_v44  ;;  %v4166_v26 = vld [vmem:[%s6664_s10 + $0x10] sm:$0xff] }
 0x750   :  { %4019 = vmatmul.msk.bf16.gmra.mxu2 %vm102_vm0, %v2965_v62 }
 0x751   :  { %v6351_v43 = vadd.f32 %v5997_v51, %v2551_v9  ;;  %v2793_v51 = vmul.f32 %v4445_v35, %v2792_v14  ;;  %3542 = vmatpush.bf16.msrb.mxu3 %v4168_v17 }
 0x753   :  { %v2617_v41 = vsel %vm102_vm0, %v6351_v43, 0.0  ;;  %v2797_v10 = vsel %vm2796_vm14, %v4445_v35, %v2793_v51 }
 0x754   :  { %v2912_v12 = vmul.f32 %v2797_v10, %v6105_v36 }
 0x756   :  { %v2932_v37 = vmul.f32 %v6288_v19, %v2912_v12 }
 0x777   :  { %v2598_v18 = vpop.xlane.xlu0 %2597 }
 0x778   :  { %v2628_v1 = vmul.f32 %v2598_v18, %v4682_v20  ;;  %v2952_v18 = vadd.f32 %v6299_v13, %v2932_v37 }
 0x77a   :  { %v6343_v39 = vsub.f32 %v6128_v0, %v2628_v1  ;;  %v4167_v1 = vld [vmem:[%s6664_s10 + $0x18] sm:$0xff] }
 0x77b   :  { %3543 = vmatpush.bf16.msrb.mxu3 %v4167_v1 }
 0x77c   :  { %v2660_v46 = vmul.f32 %v6343_v39, %v6343_v39 }
 0x77e   :  { %v2692_v27 = vsel %vm102_vm0, %v2660_v46, 0.0 }
 0x77f   :  { %v2601_v11 = vpop.xlane.xlu2 %2600  ;;  %2693 = vadd.xlane.f32.xlu2 %v2692_v27  ;;  %v2685_v8 = vpop.xlane.xlu0 %2684  ;;  %3544 = vmatpush.bf16.msrb.mxu3 %v4166_v26 }
 0x780   :  { %v2629_v21 = vmul.f32 %v2601_v11, %v4682_v20  ;;  %v2721_v34 = vmul.f32 %v2685_v8, %v4682_v20  ;;  %v4165_v11 = vld [vmem:[%s6664_s10 + $0x8] sm:$0xff] }
 0x782   :  { %v6354_v25 = vsub.f32 %v6160_v57, %v2629_v21  ;;  %v2737_v4 = vadd.f32 1e-05, %v2721_v34 }
 0x783   :  { %3545 = vmatpush.bf16.msrb.mxu3 %v4165_v11 }
 0x784   :  { %4446 = vrsqrt.f32 %v2737_v4  ;;  %v2661_v32 = vmul.f32 %v6354_v25, %v6354_v25  ;;  %vm2804_vm1 = vweird.f32 %v2737_v4 }
 0x786   :  { %v2695_v42 = vsel %vm102_vm0, %v2661_v32, 0.0 }
 0x787   :  { %2696 = vadd.xlane.f32.xlu1 %v2695_v42  ;;  %2618 = vadd.xlane.f32.xlu2 %v2617_v41  ;;  %v2688_v40 = vpop.xlane.xlu0 %2687  ;;  %v4164_v42 = vld [vmem:[%s6664_s10] sm:$0xff] }
 0x788   :  { %v2722_v16 = vmul.f32 %v2688_v40, %v4682_v20  ;;  %3546 = vmatpush.bf16.msrb.mxu3 %v4164_v42 }
 0x78a   :  { %v4447_v49 = vpop.eup %4446  ;;  %v2738_v53 = vadd.f32 1e-05, %v2722_v16 }
 0x78b   :  { %v2799_v50 = vmul.f32 %v4447_v49, %v2737_v4  ;;  %vm2805_vm15 = vweird.f32 %v4447_v49 }
 0x78c   :  { %vm2806_vm2 = vmor %vm2804_vm1, %vm2805_vm15  ;;  %4448 = vrsqrt.f32 %v2738_v53  ;;  %vm2814_vm4 = vweird.f32 %v2738_v53 }
 0x78d   :  { %v2800_v56 = vmul.f32 %v4447_v49, %v2799_v50 }
 0x78f   :  { %v2801_v28 = vmul.f32 0.5, %v2800_v56 }
 0x791   :  { %v2802_v61 = vsub.f32 1.5, %v2801_v28 }
 0x792   :  { %v4449_v30 = vpop.eup %4448 }
 0x793   :  { %v2803_v62 = vmul.f32 %v4447_v49, %v2802_v61  ;;  %v2809_v27 = vmul.f32 %v4449_v30, %v2738_v53  ;;  %vm2815_vm3 = vweird.f32 %v4449_v30 }
 0x794   :  { %vm2816_vm5 = vmor %vm2814_vm4, %vm2815_vm3 }
 0x795   :  { %v2807_v15 = vsel %vm2806_vm2, %v4447_v49, %v2803_v62  ;;  %v2810_v21 = vmul.f32 %v4449_v30, %v2809_v27 }
 0x796   :  { %v2913_v52 = vmul.f32 %v2807_v15, %v6131_v38 }
 0x797   :  { %v2811_v49 = vmul.f32 0.5, %v2810_v21 }
 0x798   :  { %v2933_v36 = vmul.f32 %v6288_v19, %v2913_v52 }
 0x799   :  { %v2812_v45 = vsub.f32 1.5, %v2811_v49 }
 0x79a   :  { %v2953_v35 = vadd.f32 %v6299_v13, %v2933_v36 }
 0x79b   :  { %v2813_v28 = vmul.f32 %v4449_v30, %v2812_v45 }
 0x79c   :  { %v2966_v44 = vpack.c.bf16 %v2953_v35, %v2952_v18  ;;  %v6422_v35 = vld [vmem:[#allocation5] sm:$0x7] }
 0x79d   :  { %v2817_v62 = vsel %vm2816_vm5, %v4449_v30, %v2813_v28  ;;  %v6429_v26 = vperm.slane %v6422_v35, 0 }
 0x79e   :  { %4004 = vmatmul.msk.bf16.gmra.mxu0 %vm102_vm0, %v2966_v44  ;;  %4012 = vmatmul.msk.bf16.gmra.mxu1 %vm102_vm0, %v2966_v44  ;;  %v2914_v36 = vmul.f32 %v2817_v62, %v6157_v3 }
 0x79f   :  { %v2604_v38 = vpop.xlane.xlu2 %2603  ;;  %4020 = vmatmul.msk.bf16.gmra.mxu2 %vm102_vm0, %v2966_v44 }
 0x7a0   :  { %v2630_v46 = vmul.f32 %v2604_v38, %v4682_v20 }
 0x7a2   :  { %v6391_v9 = vsub.f32 %v6266_v33, %v2630_v46  ;;  %v2934_v46 = vmul.f32 %v6288_v19, %v2914_v36 }
 0x7a4   :  { %v2662_v55 = vmul.f32 %v6391_v9, %v6391_v9 }
 0x7a6   :  { %v2698_v8 = vsel %vm102_vm0, %v2662_v55, 0.0 }
 0x7a7   :  { %2699 = vadd.xlane.f32.xlu1 %v2698_v8  ;;  %v2607_v34 = vpop.xlane.xlu1 %2606  ;;  %v2691_v4 = vpop.xlane.xlu2 %2690  ;;  %v2954_v8 = vadd.f32 %v6299_v13, %v2934_v46 }
 0x7a8   :  { %v2631_v22 = vmul.f32 %v2607_v34, %v4682_v20  ;;  %v2723_v32 = vmul.f32 %v2691_v4, %v4682_v20 }
 0x7aa   :  { %v6405_v41 = vsub.f32 %v6283_v29, %v2631_v22  ;;  %v2739_v14 = vadd.f32 1e-05, %v2723_v32 }
 0x7ac   :  { %4450 = vrsqrt.f32 %v2739_v14  ;;  %v2663_v51 = vmul.f32 %v6405_v41, %v6405_v41  ;;  %vm2824_vm7 = vweird.f32 %v2739_v14 }
 0x7ae   :  { %v2701_v50 = vsel %vm102_vm0, %v2663_v51, 0.0 }
 0x7af   :  { %2702 = vadd.xlane.f32.xlu0 %v2701_v50  ;;  %v2610_v56 = vpop.xlane.xlu1 %2609 }
 0x7b0   :  { %v2632_v40 = vmul.f32 %v2610_v56, %v4682_v20 }
 0x7b2   :  { %v4451_v10 = vpop.eup %4450  ;;  %v6412_v61 = vsub.f32 %v6305_v24, %v2632_v40 }
 0x7b3   :  { %v2819_v63 = vmul.f32 %v4451_v10, %v2739_v14  ;;  %vm2825_vm6 = vweird.f32 %v4451_v10 }
 0x7b4   :  { %v2664_v12 = vmul.f32 %v6412_v61, %v6412_v61  ;;  %vm2826_vm8 = vmor %vm2824_vm7, %vm2825_vm6 }
 0x7b5   :  { %v2820_v16 = vmul.f32 %v4451_v10, %v2819_v63 }
 0x7b6   :  { %v2704_v15 = vsel %vm102_vm0, %v2664_v12, 0.0 }
 0x7b7   :  { %v2821_v7 = vmul.f32 0.5, %v2820_v16  ;;  %2705 = vadd.xlane.f32.xlu2 %v2704_v15  ;;  %v2613_v52 = vpop.xlane.xlu0 %2612 }
 0x7b8   :  { %v2633_v17 = vmul.f32 %v2613_v52, %v4682_v20 }
 0x7b9   :  { %v2822_v37 = vsub.f32 1.5, %v2821_v7 }
 0x7ba   :  { %v6420_v53 = vsub.f32 %v6321_v5, %v2633_v17 }
 0x7bb   :  { %v2823_v18 = vmul.f32 %v4451_v10, %v2822_v37 }
 0x7bc   :  { %v3133_v1 = vpop.f32.mrf.mxu0  ;;  %v2665_v38 = vmul.f32 %v6420_v53, %v6420_v53 }
 0x7bd   :  { %v2827_v44 = vsel %vm2826_vm8, %v4451_v10, %v2823_v18  ;;  %v3134_v34 = vadd.f32 %v3133_v1, %v6429_v26 }
 0x7be   :  { %v2915_v30 = vmul.f32 %v2827_v44, %v6271_v47  ;;  %v2707_v3 = vsel %vm102_vm0, %v2665_v38, 0.0 }
 0x7bf   :  { %2708 = vadd.xlane.f32.xlu1 %v2707_v3  ;;  %v2616_v27 = vpop.xlane.xlu0 %2615  ;;  %v3271_v14 = vmax.f32 %v3134_v34, 0.0 }
 0x7c0   :  { %v2935_v55 = vmul.f32 %v6288_v19, %v2915_v30  ;;  %v2634_v11 = vmul.f32 %v2616_v27, %v4682_v20 }
 0x7c2   :  { %v2955_v21 = vadd.f32 %v6299_v13, %v2935_v55  ;;  %v6438_v47 = vsub.f32 %v6330_v6, %v2634_v11 }
 0x7c4   :  { %v3135_v4 = vpop.f32.mrf.mxu0  ;;  %v2967_v22 = vpack.c.bf16 %v2955_v21, %v2954_v8  ;;  %v2666_v42 = vmul.f32 %v6438_v47, %v6438_v47 }
 0x7c5   :  { %v3136_v32 = vadd.f32 %v3135_v4, %v6429_v26 }
 0x7c6   :  { %4005 = vmatmul.msk.bf16.gmra.mxu0 %vm102_vm0, %v2967_v22  ;;  %4013 = vmatmul.msk.bf16.gmra.mxu1 %vm102_vm0, %v2967_v22  ;;  %v2710_v51 = vsel %vm102_vm0, %v2666_v42, 0.0 }
 0x7c7   :  { %v3274_v49 = vmax.f32 %v3136_v32, 0.0  ;;  %4021 = vmatmul.msk.bf16.gmra.mxu2 %vm102_vm0, %v2967_v22  ;;  %2711 = vadd.xlane.f32.xlu0 %v2710_v51 }
 0x7c9   :  { %v3319_v50 = vpack.c.bf16 %v3274_v49, %v3271_v14 }
 0x7cb   :  { %3547 = vmatmul.bf16.vlgmr.msrb.gmra.mxu3 %v3319_v50 }
 0x7cc   :  { %v3138_v45 = vpop.f32.mrf.mxu0 }
 0x7cd   :  { %v3139_v56 = vadd.f32 %v3138_v45, %v6429_v26 }
 0x7cf   :  { %v3277_v28 = vmax.f32 %v3139_v56, 0.0 }
 0x7d4   :  { %v3140_v40 = vpop.f32.mrf.mxu0 }
 0x7d5   :  { %v3141_v10 = vadd.f32 %v3140_v40, %v6429_v26 }
 0x7d7   :  { %v3280_v63 = vmax.f32 %v3141_v10, 0.0 }
 0x7d9   :  { %v3322_v16 = vpack.c.bf16 %v3280_v63, %v3277_v28 }
 0x7db   :  { %3552 = vmatmul.bf16.gmra.mxu3 %v3322_v16 }
 0x7f2   :  { %v2694_v12 = vpop.xlane.xlu2 %2693 }
 0x7f3   :  { %v2724_v62 = vmul.f32 %v2694_v12, %v4682_v20 }
 0x7f5   :  { %v2740_v7 = vadd.f32 1e-05, %v2724_v62 }
 0x7f7   :  { %4452 = vrsqrt.f32 %v2740_v7  ;;  %vm2834_vm10 = vweird.f32 %v2740_v7 }
 0x7fa   :  { %v2697_v15 = vpop.xlane.xlu1 %2696  ;;  %v2619_v52 = vpop.xlane.xlu2 %2618 }
 0x7fb   :  { %v2725_v37 = vmul.f32 %v2697_v15, %v4682_v20  ;;  %v2635_v17 = vmul.f32 %v2619_v52, %v4682_v20 }
 0x7fd   :  { %v4453_v36 = vpop.eup %4452  ;;  %v2741_v18 = vadd.f32 1e-05, %v2725_v37  ;;  %v6453_v1 = vsub.f32 %v6351_v43, %v2635_v17 }
 0x7fe   :  { %v2829_v44 = vmul.f32 %v4453_v36, %v2740_v7  ;;  %vm2835_vm9 = vweird.f32 %v4453_v36 }
 0x7ff   :  { %4454 = vrsqrt.f32 %v2741_v18  ;;  %v2667_v38 = vmul.f32 %v6453_v1, %v6453_v1  ;;  %vm2836_vm11 = vmor %vm2834_vm10, %vm2835_vm9  ;;  %vm2844_vm13 = vweird.f32 %v2741_v18 }
 0x800   :  { %v2830_v30 = vmul.f32 %v4453_v36, %v2829_v44 }
 0x801   :  { %v2713_v46 = vsel %vm102_vm0, %v2667_v38, 0.0 }
 0x802   :  { %v2831_v3 = vmul.f32 0.5, %v2830_v30  ;;  %2714 = vadd.xlane.f32.xlu2 %v2713_v46 }
 0x804   :  { %v2832_v27 = vsub.f32 1.5, %v2831_v3 }
 0x805   :  { %v4455_v55 = vpop.eup %4454 }
 0x806   :  { %v2833_v11 = vmul.f32 %v4453_v36, %v2832_v27  ;;  %v2839_v8 = vmul.f32 %v4455_v55, %v2741_v18  ;;  %vm2845_vm12 = vweird.f32 %v4455_v55 }
 0x807   :  { %vm2846_vm14 = vmor %vm2844_vm13, %vm2845_vm12 }
 0x808   :  { %v2840_v21 = vmul.f32 %v4455_v55, %v2839_v8  ;;  %v2837_v34 = vsel %vm2836_vm11, %v4453_v36, %v2833_v11 }
 0x809   :  { %v2916_v32 = vmul.f32 %v2837_v34, %v6343_v39 }
 0x80a   :  { %v2841_v4 = vmul.f32 0.5, %v2840_v21 }
 0x80b   :  { %v2936_v51 = vmul.f32 %v6288_v19, %v2916_v32 }
 0x80c   :  { %v2842_v22 = vsub.f32 1.5, %v2841_v4 }
 0x80d   :  { %v2956_v45 = vadd.f32 %v6299_v13, %v2936_v51 }
 0x80e   :  { %v2843_v42 = vmul.f32 %v4455_v55, %v2842_v22 }
 0x810   :  { %v2847_v14 = vsel %vm2846_vm14, %v4455_v55, %v2843_v42 }
 0x811   :  { %v2917_v49 = vmul.f32 %v2847_v14, %v6354_v25 }
 0x813   :  { %v2937_v50 = vmul.f32 %v6288_v19, %v2917_v49 }
 0x815   :  { %v2957_v56 = vadd.f32 %v6299_v13, %v2937_v50 }
 0x817   :  { %v2968_v40 = vpack.c.bf16 %v2957_v56, %v2956_v45 }
 0x819   :  { %4006 = vmatmul.msk.bf16.gmra.mxu0 %vm102_vm0, %v2968_v40  ;;  %4014 = vmatmul.msk.bf16.gmra.mxu1 %vm102_vm0, %v2968_v40 }
 0x81a   :  { %v2700_v10 = vpop.xlane.xlu1 %2699  ;;  %4022 = vmatmul.msk.bf16.gmra.mxu2 %vm102_vm0, %v2968_v40 }
 0x81b   :  { %v2726_v39 = vmul.f32 %v2700_v10, %v4682_v20  ;;  %v3143_v28 = vpop.f32.mrf.mxu0 }
 0x81c   :  { %v3144_v16 = vadd.f32 %v3143_v28, %v6429_v26 }
 0x81d   :  { %v2742_v25 = vadd.f32 1e-05, %v2726_v39 }
 0x81e   :  { %v3283_v17 = vmax.f32 %v3144_v16, 0.0 }
 0x81f   :  { %4456 = vrsqrt.f32 %v2742_v25  ;;  %vm2854_vm1 = vweird.f32 %v2742_v25 }
 0x822   :  { %v2703_v63 = vpop.xlane.xlu0 %2702 }
 0x823   :  { %v2727_v12 = vmul.f32 %v2703_v63, %v4682_v20  ;;  %v3145_v62 = vpop.f32.mrf.mxu0 }
 0x824   :  { %v3146_v52 = vadd.f32 %v3145_v62, %v6429_v26 }
 0x825   :  { %v4457_v7 = vpop.eup %4456  ;;  %v2743_v15 = vadd.f32 1e-05, %v2727_v12 }
 0x826   :  { %v2849_v37 = vmul.f32 %v4457_v7, %v2742_v25  ;;  %v3286_v36 = vmax.f32 %v3146_v52, 0.0  ;;  %vm2855_vm15 = vweird.f32 %v4457_v7 }
 0x827   :  { %4458 = vrsqrt.f32 %v2743_v15  ;;  %vm2856_vm2 = vmor %vm2854_vm1, %vm2855_vm15  ;;  %vm2864_vm4 = vweird.f32 %v2743_v15 }
 0x828   :  { %v2850_v18 = vmul.f32 %v4457_v7, %v2849_v37  ;;  %v3325_v44 = vpack.c.bf16 %v3286_v36, %v3283_v17 }
 0x82a   :  { %v2851_v38 = vmul.f32 0.5, %v2850_v18  ;;  %v2706_v30 = vpop.xlane.xlu2 %2705  ;;  %3557 = vmatmul.bf16.gmra.mxu3 %v3325_v44 }
 0x82b   :  { %v2728_v3 = vmul.f32 %v2706_v30, %v4682_v20 }
 0x82c   :  { %v2852_v46 = vsub.f32 1.5, %v2851_v38 }
 0x82d   :  { %v4459_v27 = vpop.eup %4458  ;;  %v2744_v8 = vadd.f32 1e-05, %v2728_v3 }
 0x82e   :  { %v2853_v55 = vmul.f32 %v4457_v7, %v2852_v46  ;;  %v2859_v11 = vmul.f32 %v4459_v27, %v2743_v15  ;;  %vm2865_vm3 = vweird.f32 %v4459_v27 }
 0x82f   :  { %4460 = vrsqrt.f32 %v2744_v8  ;;  %vm2866_vm5 = vmor %vm2864_vm4, %vm2865_vm3  ;;  %vm2874_vm7 = vweird.f32 %v2744_v8 }
 0x830   :  { %v2860_v21 = vmul.f32 %v4459_v27, %v2859_v11  ;;  %v2857_v34 = vsel %vm2856_vm2, %v4457_v7, %v2853_v55 }
 0x831   :  { %v2918_v14 = vmul.f32 %v2857_v34, %v6391_v9 }
 0x832   :  { %v2861_v4 = vmul.f32 0.5, %v2860_v21  ;;  %v2709_v22 = vpop.xlane.xlu1 %2708 }
 0x833   :  { %v2729_v42 = vmul.f32 %v2709_v22, %v4682_v20  ;;  %v2938_v39 = vmul.f32 %v6288_v19, %v2918_v14  ;;  %v4179_v14 = vld [vmem:[%s6664_s10 + $0x78] sm:$0xff] }
 0x834   :  { %v2862_v32 = vsub.f32 1.5, %v2861_v4  ;;  %3588 = vmatpush.bf16.msrb.mxu0 %v4179_v14 }
 0x835   :  { %v4461_v49 = vpop.eup %4460  ;;  %v2745_v50 = vadd.f32 1e-05, %v2729_v42  ;;  %v2958_v16 = vadd.f32 %v6299_v13, %v2938_v39  ;;  %v4184_v39 = vld [vmem:[%s6664_s10 + $0xa0] sm:$0xff] }
 0x836   :  { %v2863_v51 = vmul.f32 %v4459_v27, %v2862_v32  ;;  %v2869_v45 = vmul.f32 %v4461_v49, %v2744_v8  ;;  %vm2875_vm6 = vweird.f32 %v4461_v49 }
 0x837   :  { %4462 = vrsqrt.f32 %v2745_v50  ;;  %vm2876_vm8 = vmor %vm2874_vm7, %vm2875_vm6  ;;  %vm2884_vm10 = vweird.f32 %v2745_v50 }
 0x838   :  { %v2867_v56 = vsel %vm2866_vm5, %v4459_v27, %v2863_v51  ;;  %v2870_v10 = vmul.f32 %v4461_v49, %v2869_v45  ;;  %v4178_v51 = vld [vmem:[%s6664_s10 + $0x70] sm:$0xff]  ;;  %v4177_v45 = vld [vmem:[%s6664_s10 + $0x68] sm:$0xff] }
 0x839   :  { %v2919_v40 = vmul.f32 %v2867_v56, %v6405_v41  ;;  %3589 = vmatpush.bf16.msrb.mxu0 %v4178_v51  ;;  %v4185_v56 = vld [vmem:[%s6664_s10 + $0xa8] sm:$0xff] }
 0x83a   :  { %v2871_v28 = vmul.f32 0.5, %v2870_v10  ;;  %v4176_v10 = vld [vmem:[%s6664_s10 + $0x60] sm:$0xff] }
 0x83b   :  { %v2939_v25 = vmul.f32 %v6288_v19, %v2919_v40 }
 0x83c   :  { %v2872_v63 = vsub.f32 1.5, %v2871_v28 }
 0x83d   :  { %v2959_v9 = vadd.f32 %v6299_v13, %v2939_v25  ;;  %v4463_v12 = vpop.eup %4462  ;;  %3590 = vmatpush.bf16.msrb.mxu0 %v4177_v45  ;;  %v6556_v45 = vperm.slane %v6422_v35, 2 }
 0x83e   :  { %v2873_v62 = vmul.f32 %v4461_v49, %v2872_v63  ;;  %v2879_v7 = vmul.f32 %v4463_v12, %v2745_v50  ;;  %vm2885_vm9 = vweird.f32 %v4463_v12  ;;  %v4186_v50 = vld [vmem:[%s6664_s10 + $0xb0] sm:$0xff] }
 0x83f   :  { %v2969_v15 = vpack.c.bf16 %v2959_v9, %v2958_v16  ;;  %vm2886_vm11 = vmor %vm2884_vm10, %vm2885_vm9  ;;  %v4175_v16 = vld [vmem:[%s6664_s10 + $0x58] sm:$0xff] }
 0x840   :  { %v2880_v52 = vmul.f32 %v4463_v12, %v2879_v7  ;;  %v2877_v41 = vsel %vm2876_vm8, %v4461_v49, %v2873_v62  ;;  %v4187_v49 = vld [vmem:[%s6664_s10 + $0xb8] sm:$0xff] }
 0x841   :  { %4007 = vmatmul.msk.bf16.gmra.mxu0 %vm102_vm0, %v2969_v15  ;;  %4015 = vmatmul.msk.bf16.gmra.mxu1 %vm102_vm0, %v2969_v15  ;;  %v2920_v18 = vmul.f32 %v2877_v41, %v6412_v61  ;;  %v4183_v9 = vld [vmem:[%s6664_s10 + $0x98] sm:$0xff]  ;;  %v3182_v41 = vpop.f32.mrf.mxu1 }
 0x842   :  { %4023 = vmatmul.msk.bf16.gmra.mxu2 %vm102_vm0, %v2969_v15  ;;  %v2881_v37 = vmul.f32 0.5, %v2880_v52  ;;  %3637 = vmatpush.bf16.msra.mxu1 %v4187_v49  ;;  %v4174_v15 = vld [vmem:[%s6664_s10 + $0x50] sm:$0xff] }
 0x843   :  { %v3148_v17 = vpop.f32.mrf.mxu0  ;;  %v2940_v3 = vmul.f32 %v6288_v19, %v2920_v18  ;;  %3591 = vmatpush.bf16.msrb.mxu0 %v4176_v10  ;;  %v4182_v52 = vld [vmem:[%s6664_s10 + $0x90] sm:$0xff] }
 0x844   :  { %v2882_v36 = vsub.f32 1.5, %v2881_v37  ;;  %v3149_v46 = vadd.f32 %v3148_v17, %v6429_v26  ;;  %v3231_v37 = vpop.f32.mrf.mxu2 }
 0x845   :  { %v2960_v34 = vadd.f32 %v6299_v13, %v2940_v3 }
 0x846   :  { %v2883_v44 = vmul.f32 %v4463_v12, %v2882_v36  ;;  %v3289_v8 = vmax.f32 %v3149_v46, 0.0  ;;  %3638 = vmatpush.bf16.msra.mxu1 %v4186_v50  ;;  %v4181_v36 = vld [vmem:[%s6664_s10 + $0x88] sm:$0xff]  ;;  %v4180_v46 = vld [vmem:[%s6664_s10 + $0x80] sm:$0xff] }
 0x847   :  { %3592 = vmatpush.bf16.msrb.mxu0 %v4175_v16 }
 0x848   :  { %v2887_v38 = vsel %vm2886_vm11, %v4463_v12, %v2883_v44 }
 0x849   :  { %v2921_v30 = vmul.f32 %v2887_v38, %v6420_v53  ;;  %v2712_v53 = vpop.xlane.xlu0 %2711 }
 0x84a   :  { %v2730_v32 = vmul.f32 %v2712_v53, %v4682_v20  ;;  %3639 = vmatpush.bf16.msra.mxu1 %v4185_v56 }
 0x84b   :  { %v3150_v27 = vpop.f32.mrf.mxu0  ;;  %v2941_v11 = vmul.f32 %v6288_v19, %v2921_v30  ;;  %3593 = vmatpush.bf16.msrb.mxu0 %v4174_v15  ;;  %v4172_v30 = vld [vmem:[%s6664_s10 + $0x40] sm:$0xff] }
 0x84c   :  { %v3151_v55 = vadd.f32 %v3150_v27, %v6429_v26  ;;  %v2746_v42 = vadd.f32 1e-05, %v2730_v32 }
 0x84d   :  { %v2961_v61 = vadd.f32 %v6299_v13, %v2941_v11  ;;  %v3184_v11 = vpop.f32.mrf.mxu1 }
 0x84e   :  { %v3292_v21 = vmax.f32 %v3151_v55, 0.0  ;;  %4464 = vrsqrt.f32 %v2746_v42  ;;  %3640 = vmatpush.bf16.msra.mxu1 %v4184_v39  ;;  %vm2894_vm13 = vweird.f32 %v2746_v42  ;;  %v3232_v39 = vadd.f32 %v3231_v37, %v6556_v45 }
 0x84f   :  { %v2970_v4 = vpack.c.bf16 %v2961_v61, %v2960_v34 }
 0x850   :  { %v3328_v22 = vpack.c.bf16 %v3292_v21, %v3289_v8  ;;  %v3233_v8 = vpop.f32.mrf.mxu2 }
 0x851   :  { %4008 = vmatmul.msk.bf16.gmra.mxu0 %vm102_vm0, %v2970_v4  ;;  %4016 = vmatmul.msk.bf16.gmra.mxu1 %vm102_vm0, %v2970_v4 }
 0x852   :  { %4024 = vmatmul.msk.bf16.gmra.mxu2 %vm102_vm0, %v2970_v4  ;;  %3562 = vmatmul.bf16.gmra.mxu3 %v3328_v22 }
 0x853   :  { %3641 = vmatpush.bf16.msra.mxu1 %v4183_v9 }
 0x854   :  { %v4465_v40 = vpop.eup %4464 }
 0x855   :  { %v2889_v28 = vmul.f32 %v4465_v40, %v2746_v42  ;;  %vm2895_vm12 = vweird.f32 %v4465_v40  ;;  %v3187_v49 = vpop.f32.mrf.mxu1 }
 0x856   :  { %vm2896_vm14 = vmor %vm2894_vm13, %vm2895_vm12 }
 0x857   :  { %v2890_v25 = vmul.f32 %v4465_v40, %v2889_v28  ;;  %3642 = vmatpush.bf16.msra.mxu1 %v4182_v52 }
 0x858   :  { %v3236_v51 = vpop.f32.mrf.mxu2 }
 0x859   :  { %v2891_v7 = vmul.f32 0.5, %v2890_v25 }
 0x85b   :  { %v2892_v17 = vsub.f32 1.5, %v2891_v7  ;;  %3643 = vmatpush.bf16.msra.mxu1 %v4181_v36 }
 0x85d   :  { %v2893_v44 = vmul.f32 %v4465_v40, %v2892_v17  ;;  %v3189_v56 = vpop.f32.mrf.mxu1 }
 0x85f   :  { %3644 = vmatpush.bf16.msra.mxu1 %v4180_v46  ;;  %v2897_v27 = vsel %vm2896_vm14, %v4465_v40, %v2893_v44  ;;  %v3237_v44 = vadd.f32 %v3236_v51, %v6556_v45 }
 0x860   :  { %v2922_v34 = vmul.f32 %v2897_v27, %v6438_v47  ;;  %v3238_v40 = vpop.f32.mrf.mxu2 }
 0x861   :  { %v3239_v37 = vadd.f32 %v3238_v40, %v6556_v45 }
 0x862   :  { %v2942_v53 = vmul.f32 %v6288_v19, %v2922_v34 }
 0x864   :  { %v2962_v42 = vadd.f32 %v6299_v13, %v2942_v53 }
 0x865   :  { %v3192_v17 = vpop.f32.mrf.mxu1 }
 0x875   :  { %v2715_v63 = vpop.xlane.xlu2 %2714 }
 0x876   :  { %v2731_v12 = vmul.f32 %v2715_v63, %v4682_v20  ;;  %v4173_v20 = vld [vmem:[%s6664_s10 + $0x48] sm:$0xff]  ;;  %s4597_s10 = smov [#allocation8]  }
 0x877   :  { %3594 = vmatpush.bf16.msrb.mxu0 %v4173_v20  ;;  %v3241_v20 = vpop.f32.mrf.mxu2  ;;  %s3722_s4 = sshll.u32 %s4597_s10, 4  ;;  %s3723_s4 = int_to_ptr.vmem [resolvable:$true] %s3722_s4 }
 0x878   :  { %v2747_v62 = vadd.f32 1e-05, %v2731_v12  ;;  %v3242_v53 = vadd.f32 %v3241_v20, %v6556_v45 }
 0x87a   :  { %4466 = vrsqrt.f32 %v2747_v62  ;;  %vm2904_vm1 = vweird.f32 %v2747_v62 }
 0x87b   :  { %3595 = vmatpush.bf16.msrb.mxu0 %v4172_v30 }
 0x87f   :  { %v3243_v30 = vpop.f32.mrf.mxu2 }
 0x880   :  { %v4467_v18 = vpop.eup %4466 }
 0x881   :  { %v2899_v38 = vmul.f32 %v4467_v18, %v2747_v62  ;;  %vm2905_vm15 = vweird.f32 %v4467_v18 }
 0x882   :  { %vm2906_vm2 = vmor %vm2904_vm1, %vm2905_vm15 }
 0x883   :  { %v2900_v3 = vmul.f32 %v4467_v18, %v2899_v38  ;;  %v3194_v38 = vpop.f32.mrf.mxu1 }
 0x885   :  { %v2901_v55 = vmul.f32 0.5, %v2900_v3  ;;  %v3282_v3 = vmax.f32 %v3239_v37, 0.0 }
 0x887   :  { %v2902_v21 = vsub.f32 1.5, %v2901_v55  ;;  %v3279_v55 = vmax.f32 %v3237_v44, 0.0  ;;  %v3246_v34 = vpop.f32.mrf.mxu2 }
 0x889   :  { %v2903_v61 = vmul.f32 %v4467_v18, %v2902_v21 }
 0x88b   :  { %v2907_v4 = vsel %vm2906_vm2, %v4467_v18, %v2903_v61  ;;  %v3197_v21 = vpop.f32.mrf.mxu1 }
 0x88c   :  { %v2923_v22 = vmul.f32 %v2907_v4, %v6453_v1  ;;  %v6553_v1 = vperm.slane %v6422_v35, 1  ;;  %v3273_v35 = vmax.f32 %v3232_v39, 0.0  ;;  %v3244_v4 = vadd.f32 %v3243_v30, %v6556_v45 }
 0x88e   :  { %v2943_v32 = vmul.f32 %v6288_v19, %v2923_v22  ;;  %v3185_v19 = vadd.f32 %v3184_v11, %v6553_v1  ;;  %v3183_v10 = vadd.f32 %v3182_v41, %v6553_v1  ;;  %v3190_v41 = vadd.f32 %v3189_v56, %v6553_v1 }
 0x88f   :  { %v3188_v18 = vadd.f32 %v3187_v49, %v6553_v1  ;;  %v3324_v11 = vpack.c.bf16 %v3282_v3, %v3279_v55  ;;  %v3195_v61 = vadd.f32 %v3194_v38, %v6553_v1  ;;  %v3193_v22 = vadd.f32 %v3192_v17, %v6553_v1  ;;  %v3248_v51 = vpop.f32.mrf.mxu2 }
 0x890   :  { %v2963_v14 = vadd.f32 %v6299_v13, %v2943_v32  ;;  %v3234_v13 = vadd.f32 %v3233_v8, %v6556_v45  ;;  %v3275_v25 = vmax.f32 %v3185_v19, 0.0  ;;  %v3272_v12 = vmax.f32 %v3183_v10, 0.0 }
 0x891   :  { %v3281_v46 = vmax.f32 %v3190_v41, 0.0  ;;  %v3278_v27 = vmax.f32 %v3188_v18, 0.0 }
 0x892   :  { %v2971_v50 = vpack.c.bf16 %v2963_v14, %v2962_v42  ;;  %v3276_v63 = vmax.f32 %v3234_v13, 0.0  ;;  %v3320_v15 = vpack.c.bf16 %v3275_v25, %v3272_v12  ;;  %v3287_v42 = vmax.f32 %v3195_v61, 0.0 }
 0x893   :  { %v3323_v8 = vpack.c.bf16 %v3281_v46, %v3278_v27  ;;  %v3288_v14 = vmax.f32 %v3244_v4, 0.0  ;;  %v3199_v49 = vpop.f32.mrf.mxu1 }
 0x894   :  { %4009 = vmatmul.msk.bf16.gmra.mxu0 %vm102_vm0, %v2971_v50  ;;  %4017 = vmatmul.msk.bf16.gmra.mxu1 %vm102_vm0, %v2971_v50  ;;  %v3321_v52 = vpack.c.bf16 %v3276_v63, %v3273_v35  ;;  %v3198_v35 = vadd.f32 %v3197_v21, %v6553_v1 }
 0x895   :  { %4025 = vmatmul.msk.bf16.gmra.mxu2 %vm102_vm0, %v2971_v50  ;;  %v3284_v50 = vmax.f32 %v3193_v22, 0.0 }
 0x896   :  { %v3153_v47 = vpop.f32.mrf.mxu0  ;;  %v3290_v17 = vmax.f32 %v3198_v35, 0.0 }
 0x897   :  { %v3154_v28 = vadd.f32 %v3153_v47, %v6429_v26  ;;  %v3285_v47 = vmax.f32 %v3242_v53, 0.0  ;;  %v3326_v13 = vpack.c.bf16 %v3287_v42, %v3284_v50 }
 0x899   :  { %v3295_v62 = vmax.f32 %v3154_v28, 0.0  ;;  %v3327_v19 = vpack.c.bf16 %v3288_v14, %v3285_v47 }
 0x89b   :  { %v3202_v39 = vpop.f32.mrf.mxu1 }
 0x89d   :  { %v3251_v28 = vpop.f32.mrf.mxu2 }
 0x89e   :  { %v3155_v16 = vpop.f32.mrf.mxu0  ;;  %v3252_v61 = vadd.f32 %v3251_v28, %v6556_v45 }
 0x89f   :  { %v3156_v9 = vadd.f32 %v3155_v16, %v6429_v26  ;;  %v3200_v16 = vadd.f32 %v3199_v49, %v6553_v1 }
 0x8a1   :  { %v3298_v7 = vmax.f32 %v3156_v9, 0.0  ;;  %v3249_v9 = vadd.f32 %v3248_v51, %v6556_v45 }
 0x8a3   :  { %v3331_v36 = vpack.c.bf16 %v3298_v7, %v3295_v62  ;;  %v3247_v62 = vadd.f32 %v3246_v34, %v6556_v45  ;;  %v3293_v7 = vmax.f32 %v3200_v16, 0.0  ;;  %v3203_v34 = vadd.f32 %v3202_v39, %v6553_v1 }
 0x8a4   :  { %3596 = vmatmul.bf16.vlgmr.msrb.gmra.mxu0 %v3320_v15  ;;  %3645 = vmatmul.bf16.vlgmr.msra.gmra.mxu1 %v3321_v52  ;;  %v3294_v15 = vmax.f32 %v3249_v9, 0.0 }
 0x8a5   :  { %3567 = vmatmul.bf16.gmra.mxu3 %v3331_v36  ;;  %v3291_v20 = vmax.f32 %v3247_v62, 0.0  ;;  %v3204_v36 = vpop.f32.mrf.mxu1  ;;  %v3253_v41 = vpop.f32.mrf.mxu2  ;;  %v3329_v18 = vpack.c.bf16 %v3293_v7, %v3290_v17  ;;  %v3296_v53 = vmax.f32 %v3203_v34, 0.0  ;;  %v6596_v34 = vld [vmem:[#allocation7] ss:$0 sm:$0xff] }
 0x8a7   :  { %v3330_v37 = vpack.c.bf16 %v3294_v15, %v3291_v20 }
 0x8b4   :  { %3601 = vmatmul.bf16.gmra.mxu0 %v3323_v8  ;;  %3650 = vmatmul.bf16.gmra.mxu1 %v3324_v11  ;;  %v3205_v11 = vadd.f32 %v3204_v36, %v6553_v1  ;;  %v3254_v8 = vadd.f32 %v3253_v41, %v6556_v45 }
 0x8b6   :  { %v3299_v4 = vmax.f32 %v3205_v11, 0.0  ;;  %v3300_v22 = vmax.f32 %v3254_v8, 0.0 }
 0x8b8   :  { %v3332_v42 = vpack.c.bf16 %v3299_v4, %v3296_v53 }
 0x8be   :  { %v3158_v32 = vpop.f32.mrf.mxu0  ;;  %v3207_v46 = vpop.f32.mrf.mxu1 }
 0x8bf   :  { %v3159_v56 = vadd.f32 %v3158_v32, %v6429_v26  ;;  %v3297_v32 = vmax.f32 %v3252_v61, 0.0 }
 0x8c1   :  { %v3301_v25 = vmax.f32 %v3159_v56, 0.0  ;;  %v3333_v14 = vpack.c.bf16 %v3300_v22, %v3297_v32 }
 0x8c4   :  { %3606 = vmatmul.bf16.gmra.mxu0 %v3326_v13  ;;  %3655 = vmatmul.bf16.gmra.mxu1 %v3327_v19  ;;  %v3208_v19 = vadd.f32 %v3207_v46, %v6553_v1 }
 0x8c5   :  { %v3256_v3 = vpop.f32.mrf.mxu2 }
 0x8c6   :  { %v3160_v40 = vpop.f32.mrf.mxu0  ;;  %v3209_v49 = vpop.f32.mrf.mxu1  ;;  %v3257_v13 = vadd.f32 %v3256_v3, %v6556_v45  ;;  %v3302_v28 = vmax.f32 %v3208_v19, 0.0 }
 0x8c7   :  { %v3161_v10 = vadd.f32 %v3160_v40, %v6429_v26  ;;  %v3210_v50 = vadd.f32 %v3209_v49, %v6553_v1 }
 0x8c9   :  { %v3304_v63 = vmax.f32 %v3161_v10, 0.0  ;;  %v3305_v10 = vmax.f32 %v3210_v50, 0.0 }
 0x8cb   :  { %v3334_v12 = vpack.c.bf16 %v3304_v63, %v3301_v25  ;;  %v3303_v25 = vmax.f32 %v3257_v13, 0.0  ;;  %v3335_v63 = vpack.c.bf16 %v3305_v10, %v3302_v28 }
 0x8cd   :  { %3572 = vmatmul.bf16.gmra.mxu3 %v3334_v12  ;;  %v3258_v51 = vpop.f32.mrf.mxu2 }
 0x8ce   :  { %v3163_v52 = vpop.f32.mrf.mxu0  ;;  %v3259_v47 = vadd.f32 %v3258_v51, %v6556_v45  ;;  %v3212_v56 = vpop.f32.mrf.mxu1 }
 0x8cf   :  { %v3164_v44 = vadd.f32 %v3163_v52, %v6429_v26  ;;  %v3213_v7 = vadd.f32 %v3212_v56, %v6553_v1 }
 0x8d0   :  { %v3306_v39 = vmax.f32 %v3259_v47, 0.0 }
 0x8d1   :  { %v3307_v27 = vmax.f32 %v3164_v44, 0.0  ;;  %v3308_v20 = vmax.f32 %v3213_v7, 0.0 }
 0x8d2   :  { %v3336_v16 = vpack.c.bf16 %v3306_v39, %v3303_v25 }
 0x8d4   :  { %3611 = vmatmul.bf16.gmra.mxu0 %v3329_v18  ;;  %3660 = vmatmul.bf16.gmra.mxu1 %v3330_v37  ;;  %v3548_v18 = vpop.f32.mrf.mxu3 }
 0x8d5   :  { %v3261_v40 = vpop.f32.mrf.mxu2  ;;  %v3549_v51 = vadd.f32 %v6596_v34, %v3548_v18 }
 0x8d6   :  { %v3165_v38 = vpop.f32.mrf.mxu0  ;;  %v3214_v9 = vpop.f32.mrf.mxu1  ;;  %v3262_v15 = vadd.f32 %v3261_v40, %v6556_v45 }
 0x8d7   :  { %v3166_v30 = vadd.f32 %v3165_v38, %v6429_v26  ;;  %v3215_v35 = vadd.f32 %v3214_v9, %v6553_v1 }
 0x8d8   :  { %v3309_v36 = vmax.f32 %v3262_v15, 0.0 }
 0x8d9   :  { %v3310_v55 = vmax.f32 %v3166_v30, 0.0  ;;  %v3311_v52 = vmax.f32 %v3215_v35, 0.0 }
 0x8db   :  { %v3337_v21 = vpack.c.bf16 %v3310_v55, %v3307_v27  ;;  %v3338_v41 = vpack.c.bf16 %v3311_v52, %v3308_v20 }
 0x8dc   :  { %v3550_v30 = vpop.f32.mrf.mxu3 }
 0x8dd   :  { %3577 = vmatmul.bf16.gmra.mxu3 %v3337_v21  ;;  %v3263_v12 = vpop.f32.mrf.mxu2  ;;  %v3551_v28 = vadd.f32 %v6596_v34, %v3550_v30 }
 0x8de   :  { %v3264_v62 = vadd.f32 %v3263_v12, %v6556_v45 }
 0x8e0   :  { %v3312_v17 = vmax.f32 %v3264_v62, 0.0 }
 0x8e2   :  { %v3339_v37 = vpack.c.bf16 %v3312_v17, %v3309_v36 }
 0x8e4   :  { %3616 = vmatmul.bf16.gmra.mxu0 %v3332_v42  ;;  %3665 = vmatmul.bf16.gmra.mxu1 %v3333_v14  ;;  %v3553_v32 = vpop.f32.mrf.mxu3 }
 0x8e5   :  { %v3554_v35 = vadd.f32 %v6596_v34, %v3553_v32 }
 0x8ec   :  { %v3555_v25 = vpop.f32.mrf.mxu3 }
 0x8ed   :  { %v3556_v20 = vadd.f32 %v6596_v34, %v3555_v25 }
 0x8f4   :  { %3621 = vmatmul.bf16.gmra.mxu0 %v3335_v63  ;;  %3670 = vmatmul.bf16.gmra.mxu1 %v3336_v16  ;;  %v3558_v62 = vpop.f32.mrf.mxu3 }
 0x904   :  { %3626 = vmatmul.bf16.gmra.mxu0 %v3338_v41  ;;  %3675 = vmatmul.bf16.gmra.mxu1 %v3339_v37  ;;  %v3560_v37 = vpop.f32.mrf.mxu3 }
 0x911   :  { %v3168_v44 = vpop.f32.mrf.mxu0  ;;  %v3217_v38 = vpop.f32.mrf.mxu1 }
 0x912   :  { %v3169_v46 = vadd.f32 %v3168_v44, %v6429_v26  ;;  %v3218_v3 = vadd.f32 %v3217_v38, %v6553_v1  ;;  %v3559_v38 = vadd.f32 %v6596_v34, %v3558_v62 }
 0x914   :  { %v3313_v61 = vmax.f32 %v3169_v46, 0.0  ;;  %v3314_v4 = vmax.f32 %v3218_v3, 0.0  ;;  %v3563_v3 = vpop.f32.mrf.mxu3 }
 0x918   :  { %v3266_v27 = vpop.f32.mrf.mxu2 }
 0x919   :  { %v3170_v55 = vpop.f32.mrf.mxu0  ;;  %v3219_v11 = vpop.f32.mrf.mxu1  ;;  %v3267_v49 = vadd.f32 %v3266_v27, %v6556_v45 }
 0x91a   :  { %v3171_v8 = vadd.f32 %v3170_v55, %v6429_v26  ;;  %v3220_v21 = vadd.f32 %v3219_v11, %v6553_v1  ;;  %v3561_v11 = vadd.f32 %v6596_v34, %v3560_v37 }
 0x91b   :  { %v3315_v13 = vmax.f32 %v3267_v49, 0.0 }
 0x91c   :  { %v3316_v22 = vmax.f32 %v3171_v8, 0.0  ;;  %v3317_v53 = vmax.f32 %v3220_v21, 0.0 }
 0x91e   :  { %v3340_v42 = vpack.c.bf16 %v3316_v22, %v3313_v61  ;;  %v3341_v14 = vpack.c.bf16 %v3317_v53, %v3314_v4  ;;  %v3565_v4 = vpop.f32.mrf.mxu3  ;;  %v3564_v53 = vadd.f32 %v6596_v34, %v3563_v3 }
 0x920   :  { %v3268_v50 = vpop.f32.mrf.mxu2  ;;  %3582 = vmatmul.bf16.gmra.mxu3 %v3340_v42  ;;  %3631 = vmatmul.bf16.gmra.mxu0 %v3341_v14 }
 0x921   :  { %v3269_v26 = vadd.f32 %v3268_v50, %v6556_v45  ;;  %v3597_v47 = vpop.f32.mrf.mxu0  ;;  %v3646_v1 = vpop.f32.mrf.mxu1  ;;  %v3566_v50 = vadd.f32 %v6596_v34, %v3565_v4 }
 0x922   :  { %v3598_v19 = vadd.f32 %v3597_v47, %v3549_v51 }
 0x923   :  { %v3318_v56 = vmax.f32 %v3269_v26, 0.0 }
 0x924   :  { %v3647_v40 = vadd.f32 %v3646_v1, %v3598_v19 }
 0x925   :  { %v3342_v10 = vpack.c.bf16 %v3318_v56, %v3315_v13 }
 0x926   :  { %v3686_v39 = vadd.f32 %v3647_v40, %v6016_v48 }
 0x927   :  { %3680 = vmatmul.bf16.gmra.mxu1 %v3342_v10 }
 0x928   :  { %3702 = vst.msk [vmem:[#allocation8] sm:$0xff] %vm102_vm0, %v3686_v39  ;;  %v3568_v49 = vpop.f32.mrf.mxu3 }
 0x929   :  { %v3599_v63 = vpop.f32.mrf.mxu0  ;;  %v3648_v16 = vpop.f32.mrf.mxu1  ;;  %v3569_v56 = vadd.f32 %v6596_v34, %v3568_v49 }
 0x92a   :  { %v3600_v9 = vadd.f32 %v3599_v63, %v3551_v28 }
 0x92c   :  { %v3649_v12 = vadd.f32 %v3648_v16, %v3600_v9 }
 0x92e   :  { %v3687_v45 = vadd.f32 %v3649_v12, %v6002_v23 }
 0x930   :  { %3703 = vst.msk [vmem:[#allocation8 + $0x8] sm:$0xff] %vm102_vm0, %v3687_v45 }
 0x931   :  { %v3602_v7 = vpop.f32.mrf.mxu0  ;;  %v3651_v15 = vpop.f32.mrf.mxu1 }
 0x932   :  { %v3603_v48 = vadd.f32 %v3602_v7, %v3554_v35 }
 0x934   :  { %v3652_v52 = vadd.f32 %v3651_v15, %v3603_v48 }
 0x936   :  { %v3688_v17 = vadd.f32 %v3652_v52, %v6032_v60 }
 0x938   :  { %3704 = vst.msk [vmem:[#allocation8 + $0x10] sm:$0xff] %vm102_vm0, %v3688_v17 }
 0x939   :  { %v3604_v36 = vpop.f32.mrf.mxu0  ;;  %v3653_v41 = vpop.f32.mrf.mxu1 }
 0x93a   :  { %v3605_v18 = vadd.f32 %v3604_v36, %v3556_v20 }
 0x93c   :  { %v3654_v23 = vadd.f32 %v3653_v41, %v3605_v18 }
 0x93e   :  { %v3689_v44 = vadd.f32 %v3654_v23, %v6036_v58 }
 0x940   :  { %3705 = vst.msk [vmem:[#allocation8 + $0x18] sm:$0xff] %vm102_vm0, %v3689_v44 }
 0x941   :  { %v3607_v30 = vpop.f32.mrf.mxu0  ;;  %v3656_v46 = vpop.f32.mrf.mxu1 }
 0x942   :  { %v3608_v27 = vadd.f32 %v3607_v30, %v3559_v38 }
 0x944   :  { %v3657_v60 = vadd.f32 %v3656_v46, %v3608_v27 }
 0x946   :  { %v3690_v55 = vadd.f32 %v3657_v60, %v6020_v31 }
 0x948   :  { %3706 = vst.msk [vmem:[#allocation8 + $0x20] sm:$0xff] %vm102_vm0, %v3690_v55 }
 0x949   :  { %v3609_v8 = vpop.f32.mrf.mxu0  ;;  %v3658_v21 = vpop.f32.mrf.mxu1 }
 0x94a   :  { %v3610_v61 = vadd.f32 %v3609_v8, %v3561_v11 }
 0x94c   :  { %v3659_v58 = vadd.f32 %v3658_v21, %v3610_v61 }
 0x94e   :  { %v3691_v22 = vadd.f32 %v3659_v58, %v6047_v54  ;;  %v3570_v54 = vpop.f32.mrf.mxu3 }
 0x94f   :  { %v3571_v63 = vadd.f32 %v6596_v34, %v3570_v54 }
 0x950   :  { %3707 = vst.msk [vmem:[#allocation8 + $0x28] sm:$0xff] %vm102_vm0, %v3691_v22 }
 0x951   :  { %v3612_v32 = vpop.f32.mrf.mxu0  ;;  %v3661_v42 = vpop.f32.mrf.mxu1 }
 0x952   :  { %v3613_v14 = vadd.f32 %v3612_v32, %v3564_v53 }
 0x954   :  { %v3662_v31 = vadd.f32 %v3661_v42, %v3613_v14 }
 0x956   :  { %v3692_v51 = vadd.f32 %v3662_v31, %v6054_v59  ;;  %v3573_v59 = vpop.f32.mrf.mxu3 }
 0x957   :  { %v3574_v35 = vadd.f32 %v6596_v34, %v3573_v59 }
 0x958   :  { %3708 = vst.msk [vmem:[#allocation8 + $0x30] sm:$0xff] %vm102_vm0, %v3692_v51 }
 0x959   :  { %v3614_v26 = vpop.f32.mrf.mxu0  ;;  %v3663_v47 = vpop.f32.mrf.mxu1 }
 0x95a   :  { %v3615_v1 = vadd.f32 %v3614_v26, %v3566_v50 }
 0x95c   :  { %v3664_v19 = vadd.f32 %v3663_v47, %v3615_v1 }
 0x95e   :  { %v3693_v13 = vadd.f32 %v3664_v19, %v6091_v2  ;;  %v3575_v62 = vpop.f32.mrf.mxu3 }
 0x95f   :  { %v3576_v17 = vadd.f32 %v6596_v34, %v3575_v62 }
 0x960   :  { %3709 = vst.msk [vmem:[#allocation8 + $0x38] sm:$0xff] %vm102_vm0, %v3693_v13 }
 0x961   :  { %v3617_v40 = vpop.f32.mrf.mxu0  ;;  %v3666_v10 = vpop.f32.mrf.mxu1 }
 0x962   :  { %v3618_v39 = vadd.f32 %v3617_v40, %v3569_v56 }
 0x964   :  { %v3667_v28 = vadd.f32 %v3666_v10, %v3618_v39 }
 0x966   :  { %v3694_v25 = vadd.f32 %v3667_v28, %v6128_v0  ;;  %v3578_v37 = vpop.f32.mrf.mxu3 }
 0x967   :  { %v3579_v23 = vadd.f32 %v6596_v34, %v3578_v37 }
 0x968   :  { %3710 = vst.msk [vmem:[#allocation8 + $0x40] sm:$0xff] %vm102_vm0, %v3694_v25 }
 0x969   :  { %v3619_v16 = vpop.f32.mrf.mxu0  ;;  %v3668_v9 = vpop.f32.mrf.mxu1 }
 0x96a   :  { %v3620_v12 = vadd.f32 %v3619_v16, %v3571_v63 }
 0x96c   :  { %v3669_v45 = vadd.f32 %v3668_v9, %v3620_v12 }
 0x96e   :  { %v3695_v2 = vadd.f32 %v3669_v45, %v6160_v57 }
 0x970   :  { %3711 = vst.msk [vmem:[#allocation8 + $0x48] sm:$0xff] %vm102_vm0, %v3695_v2 }
 0x971   :  { %v3622_v7 = vpop.f32.mrf.mxu0  ;;  %v3671_v15 = vpop.f32.mrf.mxu1 }
 0x972   :  { %v3623_v48 = vadd.f32 %v3622_v7, %v3574_v35 }
 0x974   :  { %v3672_v52 = vadd.f32 %v3671_v15, %v3623_v48 }
 0x976   :  { %v3696_v0 = vadd.f32 %v3672_v52, %v6266_v33  ;;  %v3580_v33 = vpop.f32.mrf.mxu3 }
 0x977   :  { %v3581_v27 = vadd.f32 %v6596_v34, %v3580_v33 }
 0x978   :  { %3712 = vst.msk [vmem:[#allocation8 + $0x50] sm:$0xff] %vm102_vm0, %v3696_v0 }
 0x979   :  { %v3624_v20 = vpop.f32.mrf.mxu0  ;;  %v3673_v36 = vpop.f32.mrf.mxu1 }
 0x97a   :  { %v3625_v41 = vadd.f32 %v3624_v20, %v3576_v17 }
 0x97c   :  { %v3674_v57 = vadd.f32 %v3673_v36, %v3625_v41 }
 0x97e   :  { %v3697_v18 = vadd.f32 %v3674_v57, %v6283_v29 }
 0x980   :  { %3713 = vst.msk [vmem:[#allocation8 + $0x58] sm:$0xff] %vm102_vm0, %v3697_v18 }
 0x981   :  { %v3627_v44 = vpop.f32.mrf.mxu0  ;;  %v3676_v38 = vpop.f32.mrf.mxu1 }
 0x982   :  { %v3628_v30 = vadd.f32 %v3627_v44, %v3579_v23 }
 0x984   :  { %v3677_v46 = vadd.f32 %v3676_v38, %v3628_v30 }
 0x986   :  { %v3698_v3 = vadd.f32 %v3677_v46, %v6305_v24 }
 0x988   :  { %3714 = vst.msk [vmem:[#allocation8 + $0x60] sm:$0xff] %vm102_vm0, %v3698_v3 }
 0x989   :  { %v3629_v60 = vpop.f32.mrf.mxu0  ;;  %v3678_v11 = vpop.f32.mrf.mxu1 }
 0x98a   :  { %v3630_v55 = vadd.f32 %v3629_v60, %v3581_v27 }
 0x98c   :  { %v3679_v8 = vadd.f32 %v3678_v11, %v3630_v55 }
 0x98e   :  { %v3699_v29 = vadd.f32 %v3679_v8, %v6321_v5 }
 0x990   :  { %3715 = vst.msk [vmem:[#allocation8 + $0x68] sm:$0xff] %vm102_vm0, %v3699_v29 }
 0x99d   :  { %v3632_v21 = vpop.f32.mrf.mxu0 }
 0x9a3   :  { %v3583_v61 = vpop.f32.mrf.mxu3 }
 0x9a4   :  { %v3584_v4 = vadd.f32 %v6596_v34, %v3583_v61  ;;  %v3681_v58 = vpop.f32.mrf.mxu1 }
 0x9a5   :  { %v3634_v14 = vpop.f32.mrf.mxu0 }
 0x9a6   :  { %v3633_v22 = vadd.f32 %v3632_v21, %v3584_v4 }
 0x9a8   :  { %v3682_v53 = vadd.f32 %v3681_v58, %v3633_v22 }
 0x9aa   :  { %v3700_v24 = vadd.f32 %v3682_v53, %v6330_v6 }
 0x9ab   :  { %v3585_v32 = vpop.f32.mrf.mxu3 }
 0x9ac   :  { %3716 = vst.msk [vmem:[#allocation8 + $0x70] sm:$0xff] %vm102_vm0, %v3700_v24  ;;  %v3586_v42 = vadd.f32 %v6596_v34, %v3585_v32  ;;  %v3683_v31 = vpop.f32.mrf.mxu1 }
 0x9ae   :  { %v3635_v49 = vadd.f32 %v3634_v14, %v3586_v42 }
 0x9b0   :  { %v3684_v5 = vadd.f32 %v3683_v31, %v3635_v49 }
 0x9b2   :  { %v3701_v51 = vadd.f32 %v3684_v5, %v6351_v43 }
 0x9b4   :  { %3717 = vst.msk [vmem:[#allocation8 + $0x78] sm:$0xff] %vm102_vm0, %v3701_v51 }
 0x9b5   :  { %3730 = dma.vmem_to_hbm [thread:$0]  %s3723_s4, 2048, %s3725_s5, [#allocation4], %s4590_s13, %s4590_s13, %s4591_s14  }
 0x9b6   :  { %4586 = dma.done.wait [#allocation4], 2048  }
 0x9b7   :  { %4587 = vsyncadd [#allocation4], 4294965248 }
 0x9b8   :  { %3735 = vsyncpa [#allocation3], 1 }
 0x9b9   :  { %3736 = vsyncpa [#allocation6], 1 }
 0x9ba   :  { %3737 = vsyncpa [#allocation4], 1 }

</bundles_post_ra>
